<compile_context>
chip_gen: v7x
topology: tpu7x:2x2x1
jax: 0.10.0
libtpu: 0.0.40
codegen_flags: <defaults>
</compile_context>

<pallas_src>
import numpy as np
import jax
import jax.numpy as jnp
from jax.experimental import pallas as pl
from jax.experimental.pallas import tpu as pltpu


def _round_up(x, m):
    return (x + m - 1) // m * m


# ----------------------------------------------------------------------------
# Fused Pallas kernel (all conv blocks + global average pool)
# ----------------------------------------------------------------------------
def _make_fused_kernel(num_blocks, kw, channels, widths, slope, inv_pool):
    """channels: [C0, ..., CL]; widths: [V0, ..., VL] lane widths per activation."""

    def kernel(*refs):
        x_ref = refs[0]                              # bf16 (C0, V0)
        w_refs = refs[1:1 + num_blocks]              # bf16 (Ci+1, Ci*kw + 1); last col = shift
        pool_ref = refs[1 + num_blocks]              # bf16 (VL, N)   0/1 summation matrix
        mask_ref = refs[2 + num_blocks]              # bf16 (1, VL)   valid-lane mask
        out_ref = refs[3 + num_blocks]               # f32  (CL, N)
        col = refs[4 + num_blocks]                   # bf16 (Kmax, Vmax) shared im2col scratch

        a = x_ref[...]                               # bf16 activation, lane-dense (C, P)
        for i in range(num_blocks):
            cin, vout = channels[i], widths[i + 1]
            K = cin * kw + 1                         # k-major taps + constant bias row
            ones_row = jnp.ones((1, vout), jnp.bfloat16)
            if cin == 1:
                # Group the 1-sublane taps (+ bias row) into 8-row slabs so every
                # store covers whole (8,128) tiles instead of 27 single-row RMWs.
                rows = [a[:, k:k + vout] for k in range(kw)] + [ones_row]
                for r0 in range(0, K, 8):
                    r1 = min(r0 + 8, K)
                    col[r0:r1, :vout] = jnp.concatenate(rows[r0:r1], axis=0)
            else:
                for k in range(kw):
                    col[k * cin:(k + 1) * cin, :vout] = a[:, k:k + vout]
                col[cin * kw:K, :vout] = ones_row
            # Conv + folded BN scale + folded bias/BN shift: one bf16 MXU matmul,
            # f32 accumulation.  Only LeakyReLU remains in the VPU epilogue.
            z = jnp.dot(w_refs[i][...], col[:K, :vout],
                        preferred_element_type=jnp.float32)      # (cout, vout) f32
            y = jnp.maximum(z, slope * z)                        # LeakyReLU(slope)
            a = y.astype(jnp.bfloat16)

        # Zero the garbage (cross-row / padded) lanes before the pool (NaN/Inf
        # insurance), sum valid positions with a bf16 0/1 matmul, then apply the
        # exact 1/(H*Wout) mean scale as an f32 scalar.
        av = jnp.where(mask_ref[...] != 0, a, jnp.zeros_like(a))
        out_ref[...] = inv_pool * jnp.dot(av, pool_ref[...],
                                          preferred_element_type=jnp.float32)

    return kernel


def convnet_forward(x, params, *, slope=0.1, eps=1e-3):
    """Eval-mode ConvNet forward: conv blocks + global average pool -> (N, C_last)."""
    N, c0, H, Win = x.shape
    L = len(params)
    kw = int(params[0][0].shape[3])
    assert all(p[0].shape[2] == 1 and p[0].shape[3] == kw for p in params)
    assert kw - 1 <= 128, "per-block lane headroom is 128"
    wout_last = Win - L * (kw - 1)
    assert wout_last >= 1, "input too short for this many conv blocks"

    NH = N * H
    v_last = _round_up(NH * Win, 128)
    # widths[i] = lane width of activation i (0 = padded input, L = last block out)
    widths = [v_last + 128 * (L - i) for i in range(L + 1)]

    # Fold BN (eval) scale into the conv weights; fold conv-bias + BN shift into an
    # extra weight column (matched by a constant-ones row in the im2col).
    channels = [c0]
    w_mats = []
    for (w, b, gamma, beta, rmean, rvar) in params:
        cout, cin, _, _ = w.shape
        s = gamma / jnp.sqrt(rvar + eps)                         # BN scale
        # wm[co, k*cin + ci] = w[co, ci, 0, k] * s[co]   (k-major, matches im2col)
        wm = jnp.transpose(w[:, :, 0, :], (0, 2, 1)).reshape(cout, kw * cin) * s[:, None]
        shift = ((b - rmean) * s + beta).reshape(cout, 1)        # bias + BN shift
        w_mats.append(jnp.concatenate([wm, shift], axis=1).astype(jnp.bfloat16))
        channels.append(cout)

    # Flatten (N, C0, H, W) -> (C0, N*H*W) bf16, zero-pad the lane axis.
    x_flat = jnp.transpose(x, (1, 0, 2, 3)).reshape(c0, NH * Win)
    x_pad = jnp.pad(x_flat, ((0, 0), (0, widths[0] - NH * Win))).astype(jnp.bfloat16)

    # Constant 0/1 summation matrix + valid-lane mask (scale applied in-kernel).
    VL = widths[L]
    pool_np = np.zeros((VL, N), np.float32)
    mask_np = np.zeros((1, VL), np.float32)
    for n in range(N):
        for h in range(H):
            base = (n * H + h) * Win
            pool_np[base:base + wout_last, n] = 1.0
            mask_np[0, base:base + wout_last] = 1.0
    pool = jnp.asarray(pool_np).astype(jnp.bfloat16)
    mask = jnp.asarray(mask_np).astype(jnp.bfloat16)
    inv_pool = float(1.0 / (H * wout_last))

    # One shared im2col scratch (peak VMEM = max over blocks, not sum).
    k_max = max(channels[i] * kw + 1 for i in range(L))
    v_max = widths[1]
    kernel = _make_fused_kernel(L, kw, channels, widths, slope, inv_pool)

    out_cn = pl.pallas_call(
        kernel,
        out_shape=jax.ShapeDtypeStruct((channels[-1], N), jnp.float32),
        scratch_shapes=[pltpu.VMEM((k_max, v_max), jnp.bfloat16)],
    )(x_pad, *w_mats, pool, mask)
    return out_cn.T                                              # (N, C_last)


# ----------------------------------------------------------------------------
# Deterministic parameter initialization (shapes from ConvNet.__init__)
# ----------------------------------------------------------------------------
def init_convnet_params(key, number_of_blocks, number_of_features_output,
                        filter_size=(1, 26)):
    params = []
    kh, kw = filter_size
    cin = 1
    for i in range(number_of_blocks):
        cout = number_of_features_output[i]
        key, k1, k2, k3, k4, k5, k6 = jax.random.split(key, 7)
        fan_in = cin * kh * kw
        bound = 1.0 / np.sqrt(fan_in)
        w = jax.random.uniform(k1, (cout, cin, kh, kw), jnp.float32, -bound, bound)
        b = jax.random.uniform(k2, (cout,), jnp.float32, -bound, bound)
        gamma = 1.0 + 0.1 * jax.random.normal(k3, (cout,), dtype=jnp.float32)
        beta = 0.1 * jax.random.normal(k4, (cout,), dtype=jnp.float32)
        rmean = 0.1 * jax.random.normal(k5, (cout,), dtype=jnp.float32)
        rvar = 0.5 + jax.random.uniform(k6, (cout,), jnp.float32, 0.0, 1.0)
        params.append((w, b, gamma, beta, rmean, rvar))
        cin = cout
    return params


# ----------------------------------------------------------------------------
# Pure-JAX reference (for a sanity check)
# ----------------------------------------------------------------------------
def convnet_reference(x, params, *, eps=1e-3, slope=0.1):
    for (w, b, gamma, beta, rmean, rvar) in params:
        x = jax.lax.conv_general_dilated(
            x, w, window_strides=(1, 1), padding="VALID",
            dimension_numbers=("NCHW", "OIHW", "NCHW"))
        x = x + b[None, :, None, None]
        s = gamma / jnp.sqrt(rvar + eps)
        x = (x - rmean[None, :, None, None]) * s[None, :, None, None] \
            + beta[None, :, None, None]
        x = jnp.where(x >= 0, x, slope * x)
    return jnp.mean(x, axis=(2, 3))


if __name__ == "__main__":
    key = jax.random.PRNGKey(0)
    kx, kp = jax.random.split(key)

    number_of_blocks = 2
    number_of_features_output = [8, 16]
    # x: (batch=2, in_channels=1, 10 EMG channels (H), 64 time samples (W))
    N, Cin, H, W = 2, 1, 10, 64
    x = jax.random.normal(kx, (N, Cin, H, W), dtype=jnp.float32)

    params = init_convnet_params(kp, number_of_blocks, number_of_features_output)

    out = convnet_forward(x, params)
    out = jax.block_until_ready(out)
    assert out.shape == (N, number_of_features_output[-1])

    ref = convnet_reference(x, params)
    # bf16 weights + bf16 activations (f32 accumulation) -> a bit more rounding
    # than a pure-f32 reference; 3e-2 still catches any real bug (O(1) errors).
    np.testing.assert_allclose(np.asarray(out), np.asarray(ref), rtol=3e-2, atol=3e-2)

    print("KERNEL_OK")
</pallas_src>

<mosaic_0001>
module attributes {stable_mosaic.version = 11 : i64} {
  func.func @kernel(%arg0: memref<1x1536xbf16, #tpu.memory_space<vmem>>, %arg1: memref<8x27xbf16, #tpu.memory_space<vmem>>, %arg2: memref<16x209xbf16, #tpu.memory_space<vmem>>, %arg3: memref<1280x2xbf16, #tpu.memory_space<vmem>>, %arg4: memref<1x1280xbf16, #tpu.memory_space<vmem>>, %arg5: memref<16x2xf32, #tpu.memory_space<vmem>>, %arg6: memref<209x1408xbf16, #tpu.memory_space<vmem>>) attributes {dimension_semantics = [], scalar_prefetch = 0 : i64, scratch_operands = 1 : i64, tpu.core_type = #tpu.core_type<tc>} {
    %c0 = arith.constant 0 : index
    %c0_0 = arith.constant 0 : index
    %0 = vector.load %arg0[%c0, %c0_0] : memref<1x1536xbf16, #tpu.memory_space<vmem>>, vector<1x1536xbf16>
    %cst = arith.constant 1.000000e+00 : bf16
    %1 = vector.broadcast %cst : bf16 to vector<1x1408xbf16>
    %2 = vector.extract_strided_slice %0 {offsets = [0, 0], sizes = [1, 1408], strides = [1, 1]} : vector<1x1536xbf16> to vector<1x1408xbf16>
    %3 = vector.extract_strided_slice %0 {offsets = [0, 1], sizes = [1, 1408], strides = [1, 1]} : vector<1x1536xbf16> to vector<1x1408xbf16>
    %4 = vector.extract_strided_slice %0 {offsets = [0, 2], sizes = [1, 1408], strides = [1, 1]} : vector<1x1536xbf16> to vector<1x1408xbf16>
    %5 = vector.extract_strided_slice %0 {offsets = [0, 3], sizes = [1, 1408], strides = [1, 1]} : vector<1x1536xbf16> to vector<1x1408xbf16>
    %6 = vector.extract_strided_slice %0 {offsets = [0, 4], sizes = [1, 1408], strides = [1, 1]} : vector<1x1536xbf16> to vector<1x1408xbf16>
    %7 = vector.extract_strided_slice %0 {offsets = [0, 5], sizes = [1, 1408], strides = [1, 1]} : vector<1x1536xbf16> to vector<1x1408xbf16>
    %8 = vector.extract_strided_slice %0 {offsets = [0, 6], sizes = [1, 1408], strides = [1, 1]} : vector<1x1536xbf16> to vector<1x1408xbf16>
    %9 = vector.extract_strided_slice %0 {offsets = [0, 7], sizes = [1, 1408], strides = [1, 1]} : vector<1x1536xbf16> to vector<1x1408xbf16>
    %10 = vector.extract_strided_slice %0 {offsets = [0, 8], sizes = [1, 1408], strides = [1, 1]} : vector<1x1536xbf16> to vector<1x1408xbf16>
    %11 = vector.extract_strided_slice %0 {offsets = [0, 9], sizes = [1, 1408], strides = [1, 1]} : vector<1x1536xbf16> to vector<1x1408xbf16>
    %12 = vector.extract_strided_slice %0 {offsets = [0, 10], sizes = [1, 1408], strides = [1, 1]} : vector<1x1536xbf16> to vector<1x1408xbf16>
    %13 = vector.extract_strided_slice %0 {offsets = [0, 11], sizes = [1, 1408], strides = [1, 1]} : vector<1x1536xbf16> to vector<1x1408xbf16>
    %14 = vector.extract_strided_slice %0 {offsets = [0, 12], sizes = [1, 1408], strides = [1, 1]} : vector<1x1536xbf16> to vector<1x1408xbf16>
    %15 = vector.extract_strided_slice %0 {offsets = [0, 13], sizes = [1, 1408], strides = [1, 1]} : vector<1x1536xbf16> to vector<1x1408xbf16>
    %16 = vector.extract_strided_slice %0 {offsets = [0, 14], sizes = [1, 1408], strides = [1, 1]} : vector<1x1536xbf16> to vector<1x1408xbf16>
    %17 = vector.extract_strided_slice %0 {offsets = [0, 15], sizes = [1, 1408], strides = [1, 1]} : vector<1x1536xbf16> to vector<1x1408xbf16>
    %18 = vector.extract_strided_slice %0 {offsets = [0, 16], sizes = [1, 1408], strides = [1, 1]} : vector<1x1536xbf16> to vector<1x1408xbf16>
    %19 = vector.extract_strided_slice %0 {offsets = [0, 17], sizes = [1, 1408], strides = [1, 1]} : vector<1x1536xbf16> to vector<1x1408xbf16>
    %20 = vector.extract_strided_slice %0 {offsets = [0, 18], sizes = [1, 1408], strides = [1, 1]} : vector<1x1536xbf16> to vector<1x1408xbf16>
    %21 = vector.extract_strided_slice %0 {offsets = [0, 19], sizes = [1, 1408], strides = [1, 1]} : vector<1x1536xbf16> to vector<1x1408xbf16>
    %22 = vector.extract_strided_slice %0 {offsets = [0, 20], sizes = [1, 1408], strides = [1, 1]} : vector<1x1536xbf16> to vector<1x1408xbf16>
    %23 = vector.extract_strided_slice %0 {offsets = [0, 21], sizes = [1, 1408], strides = [1, 1]} : vector<1x1536xbf16> to vector<1x1408xbf16>
    %24 = vector.extract_strided_slice %0 {offsets = [0, 22], sizes = [1, 1408], strides = [1, 1]} : vector<1x1536xbf16> to vector<1x1408xbf16>
    %25 = vector.extract_strided_slice %0 {offsets = [0, 23], sizes = [1, 1408], strides = [1, 1]} : vector<1x1536xbf16> to vector<1x1408xbf16>
    %26 = vector.extract_strided_slice %0 {offsets = [0, 24], sizes = [1, 1408], strides = [1, 1]} : vector<1x1536xbf16> to vector<1x1408xbf16>
    %27 = vector.extract_strided_slice %0 {offsets = [0, 25], sizes = [1, 1408], strides = [1, 1]} : vector<1x1536xbf16> to vector<1x1408xbf16>
    %28 = tpu.concatenate %2, %3, %4, %5, %6, %7, %8, %9 in 0 : vector<1x1408xbf16>, vector<1x1408xbf16>, vector<1x1408xbf16>, vector<1x1408xbf16>, vector<1x1408xbf16>, vector<1x1408xbf16>, vector<1x1408xbf16>, vector<1x1408xbf16> -> vector<8x1408xbf16>
    %c0_1 = arith.constant 0 : index
    %c0_2 = arith.constant 0 : index
    %29 = vector.load %arg6[%c0_1, %c0_2] : memref<209x1408xbf16, #tpu.memory_space<vmem>>, vector<8x1408xbf16>
    tpu.vector_store %arg6[%c0_1, %c0_2], %28 {strides = array<i32>} : memref<209x1408xbf16, #tpu.memory_space<vmem>>, vector<8x1408xbf16>,
    %30 = tpu.concatenate %10, %11, %12, %13, %14, %15, %16, %17 in 0 : vector<1x1408xbf16>, vector<1x1408xbf16>, vector<1x1408xbf16>, vector<1x1408xbf16>, vector<1x1408xbf16>, vector<1x1408xbf16>, vector<1x1408xbf16>, vector<1x1408xbf16> -> vector<8x1408xbf16>
    %c8 = arith.constant 8 : index
    %c0_3 = arith.constant 0 : index
    %31 = vector.load %arg6[%c8, %c0_3] : memref<209x1408xbf16, #tpu.memory_space<vmem>>, vector<8x1408xbf16>
    tpu.vector_store %arg6[%c8, %c0_3], %30 {strides = array<i32>} : memref<209x1408xbf16, #tpu.memory_space<vmem>>, vector<8x1408xbf16>,
    %32 = tpu.concatenate %18, %19, %20, %21, %22, %23, %24, %25 in 0 : vector<1x1408xbf16>, vector<1x1408xbf16>, vector<1x1408xbf16>, vector<1x1408xbf16>, vector<1x1408xbf16>, vector<1x1408xbf16>, vector<1x1408xbf16>, vector<1x1408xbf16> -> vector<8x1408xbf16>
    %c16 = arith.constant 16 : index
    %c0_4 = arith.constant 0 : index
    %33 = vector.load %arg6[%c16, %c0_4] : memref<209x1408xbf16, #tpu.memory_space<vmem>>, vector<8x1408xbf16>
    tpu.vector_store %arg6[%c16, %c0_4], %32 {strides = array<i32>} : memref<209x1408xbf16, #tpu.memory_space<vmem>>, vector<8x1408xbf16>,
    %34 = tpu.concatenate %26, %27, %1 in 0 : vector<1x1408xbf16>, vector<1x1408xbf16>, vector<1x1408xbf16> -> vector<3x1408xbf16>
    %c24 = arith.constant 24 : index
    %c0_5 = arith.constant 0 : index
    %35 = vector.load %arg6[%c24, %c0_5] : memref<209x1408xbf16, #tpu.memory_space<vmem>>, vector<3x1408xbf16>
    tpu.vector_store %arg6[%c24, %c0_5], %34 {strides = array<i32>} : memref<209x1408xbf16, #tpu.memory_space<vmem>>, vector<3x1408xbf16>,
    %c0_6 = arith.constant 0 : index
    %c0_7 = arith.constant 0 : index
    %36 = vector.load %arg1[%c0_6, %c0_7] : memref<8x27xbf16, #tpu.memory_space<vmem>>, vector<8x27xbf16>
    %c0_8 = arith.constant 0 : index
    %c0_9 = arith.constant 0 : index
    %37 = vector.load %arg6[%c0_8, %c0_9] : memref<209x1408xbf16, #tpu.memory_space<vmem>>, vector<27x1408xbf16>
    %cst_10 = arith.constant dense<0.000000e+00> : vector<8x1408xf32>
    %38 = tpu.matmul %36, %37, %cst_10 {dimension_numbers = #tpu.dot_dimension_numbers<[1], [0], [0], [1], [0, 0, 1, 1], [], []>} : vector<8x27xbf16>, vector<27x1408xbf16>, vector<8x1408xf32> -> vector<8x1408xf32>
    %cst_11 = arith.constant 1.000000e-01 : f32
    %39 = vector.broadcast %cst_11 : f32 to vector<8x1408xf32>
    %40 = arith.mulf %39, %38 : vector<8x1408xf32>
    %41 = arith.maximumf %38, %40 : vector<8x1408xf32>
    %42 = arith.truncf %41 : vector<8x1408xf32> to vector<8x1408xbf16>
    %cst_12 = arith.constant 1.000000e+00 : bf16
    %43 = vector.broadcast %cst_12 : bf16 to vector<1x1280xbf16>
    %44 = vector.extract_strided_slice %42 {offsets = [0, 0], sizes = [8, 1280], strides = [1, 1]} : vector<8x1408xbf16> to vector<8x1280xbf16>
    %c0_13 = arith.constant 0 : index
    %c0_14 = arith.constant 0 : index
    %45 = vector.load %arg6[%c0_13, %c0_14] : memref<209x1408xbf16, #tpu.memory_space<vmem>>, vector<8x1280xbf16>
    tpu.vector_store %arg6[%c0_13, %c0_14], %44 {strides = array<i32>} : memref<209x1408xbf16, #tpu.memory_space<vmem>>, vector<8x1280xbf16>,
    %46 = vector.extract_strided_slice %42 {offsets = [0, 1], sizes = [8, 1280], strides = [1, 1]} : vector<8x1408xbf16> to vector<8x1280xbf16>
    %c8_15 = arith.constant 8 : index
    %c0_16 = arith.constant 0 : index
    %47 = vector.load %arg6[%c8_15, %c0_16] : memref<209x1408xbf16, #tpu.memory_space<vmem>>, vector<8x1280xbf16>
    tpu.vector_store %arg6[%c8_15, %c0_16], %46 {strides = array<i32>} : memref<209x1408xbf16, #tpu.memory_space<vmem>>, vector<8x1280xbf16>,
    %48 = vector.extract_strided_slice %42 {offsets = [0, 2], sizes = [8, 1280], strides = [1, 1]} : vector<8x1408xbf16> to vector<8x1280xbf16>
    %c16_17 = arith.constant 16 : index
    %c0_18 = arith.constant 0 : index
    %49 = vector.load %arg6[%c16_17, %c0_18] : memref<209x1408xbf16, #tpu.memory_space<vmem>>, vector<8x1280xbf16>
    tpu.vector_store %arg6[%c16_17, %c0_18], %48 {strides = array<i32>} : memref<209x1408xbf16, #tpu.memory_space<vmem>>, vector<8x1280xbf16>,
    %50 = vector.extract_strided_slice %42 {offsets = [0, 3], sizes = [8, 1280], strides = [1, 1]} : vector<8x1408xbf16> to vector<8x1280xbf16>
    %c24_19 = arith.constant 24 : index
    %c0_20 = arith.constant 0 : index
    %51 = vector.load %arg6[%c24_19, %c0_20] : memref<209x1408xbf16, #tpu.memory_space<vmem>>, vector<8x1280xbf16>
    tpu.vector_store %arg6[%c24_19, %c0_20], %50 {strides = array<i32>} : memref<209x1408xbf16, #tpu.memory_space<vmem>>, vector<8x1280xbf16>,
    %52 = vector.extract_strided_slice %42 {offsets = [0, 4], sizes = [8, 1280], strides = [1, 1]} : vector<8x1408xbf16> to vector<8x1280xbf16>
    %c32 = arith.constant 32 : index
    %c0_21 = arith.constant 0 : index
    %53 = vector.load %arg6[%c32, %c0_21] : memref<209x1408xbf16, #tpu.memory_space<vmem>>, vector<8x1280xbf16>
    tpu.vector_store %arg6[%c32, %c0_21], %52 {strides = array<i32>} : memref<209x1408xbf16, #tpu.memory_space<vmem>>, vector<8x1280xbf16>,
    %54 = vector.extract_strided_slice %42 {offsets = [0, 5], sizes = [8, 1280], strides = [1, 1]} : vector<8x1408xbf16> to vector<8x1280xbf16>
    %c40 = arith.constant 40 : index
    %c0_22 = arith.constant 0 : index
    %55 = vector.load %arg6[%c40, %c0_22] : memref<209x1408xbf16, #tpu.memory_space<vmem>>, vector<8x1280xbf16>
    tpu.vector_store %arg6[%c40, %c0_22], %54 {strides = array<i32>} : memref<209x1408xbf16, #tpu.memory_space<vmem>>, vector<8x1280xbf16>,
    %56 = vector.extract_strided_slice %42 {offsets = [0, 6], sizes = [8, 1280], strides = [1, 1]} : vector<8x1408xbf16> to vector<8x1280xbf16>
    %c48 = arith.constant 48 : index
    %c0_23 = arith.constant 0 : index
    %57 = vector.load %arg6[%c48, %c0_23] : memref<209x1408xbf16, #tpu.memory_space<vmem>>, vector<8x1280xbf16>
    tpu.vector_store %arg6[%c48, %c0_23], %56 {strides = array<i32>} : memref<209x1408xbf16, #tpu.memory_space<vmem>>, vector<8x1280xbf16>,
    %58 = vector.extract_strided_slice %42 {offsets = [0, 7], sizes = [8, 1280], strides = [1, 1]} : vector<8x1408xbf16> to vector<8x1280xbf16>
    %c56 = arith.constant 56 : index
    %c0_24 = arith.constant 0 : index
    %59 = vector.load %arg6[%c56, %c0_24] : memref<209x1408xbf16, #tpu.memory_space<vmem>>, vector<8x1280xbf16>
    tpu.vector_store %arg6[%c56, %c0_24], %58 {strides = array<i32>} : memref<209x1408xbf16, #tpu.memory_space<vmem>>, vector<8x1280xbf16>,
    %60 = vector.extract_strided_slice %42 {offsets = [0, 8], sizes = [8, 1280], strides = [1, 1]} : vector<8x1408xbf16> to vector<8x1280xbf16>
    %c64 = arith.constant 64 : index
    %c0_25 = arith.constant 0 : index
    %61 = vector.load %arg6[%c64, %c0_25] : memref<209x1408xbf16, #tpu.memory_space<vmem>>, vector<8x1280xbf16>
    tpu.vector_store %arg6[%c64, %c0_25], %60 {strides = array<i32>} : memref<209x1408xbf16, #tpu.memory_space<vmem>>, vector<8x1280xbf16>,
    %62 = vector.extract_strided_slice %42 {offsets = [0, 9], sizes = [8, 1280], strides = [1, 1]} : vector<8x1408xbf16> to vector<8x1280xbf16>
    %c72 = arith.constant 72 : index
    %c0_26 = arith.constant 0 : index
    %63 = vector.load %arg6[%c72, %c0_26] : memref<209x1408xbf16, #tpu.memory_space<vmem>>, vector<8x1280xbf16>
    tpu.vector_store %arg6[%c72, %c0_26], %62 {strides = array<i32>} : memref<209x1408xbf16, #tpu.memory_space<vmem>>, vector<8x1280xbf16>,
    %64 = vector.extract_strided_slice %42 {offsets = [0, 10], sizes = [8, 1280], strides = [1, 1]} : vector<8x1408xbf16> to vector<8x1280xbf16>
    %c80 = arith.constant 80 : index
    %c0_27 = arith.constant 0 : index
    %65 = vector.load %arg6[%c80, %c0_27] : memref<209x1408xbf16, #tpu.memory_space<vmem>>, vector<8x1280xbf16>
    tpu.vector_store %arg6[%c80, %c0_27], %64 {strides = array<i32>} : memref<209x1408xbf16, #tpu.memory_space<vmem>>, vector<8x1280xbf16>,
    %66 = vector.extract_strided_slice %42 {offsets = [0, 11], sizes = [8, 1280], strides = [1, 1]} : vector<8x1408xbf16> to vector<8x1280xbf16>
    %c88 = arith.constant 88 : index
    %c0_28 = arith.constant 0 : index
    %67 = vector.load %arg6[%c88, %c0_28] : memref<209x1408xbf16, #tpu.memory_space<vmem>>, vector<8x1280xbf16>
    tpu.vector_store %arg6[%c88, %c0_28], %66 {strides = array<i32>} : memref<209x1408xbf16, #tpu.memory_space<vmem>>, vector<8x1280xbf16>,
    %68 = vector.extract_strided_slice %42 {offsets = [0, 12], sizes = [8, 1280], strides = [1, 1]} : vector<8x1408xbf16> to vector<8x1280xbf16>
    %c96 = arith.constant 96 : index
    %c0_29 = arith.constant 0 : index
    %69 = vector.load %arg6[%c96, %c0_29] : memref<209x1408xbf16, #tpu.memory_space<vmem>>, vector<8x1280xbf16>
    tpu.vector_store %arg6[%c96, %c0_29], %68 {strides = array<i32>} : memref<209x1408xbf16, #tpu.memory_space<vmem>>, vector<8x1280xbf16>,
    %70 = vector.extract_strided_slice %42 {offsets = [0, 13], sizes = [8, 1280], strides = [1, 1]} : vector<8x1408xbf16> to vector<8x1280xbf16>
    %c104 = arith.constant 104 : index
    %c0_30 = arith.constant 0 : index
    %71 = vector.load %arg6[%c104, %c0_30] : memref<209x1408xbf16, #tpu.memory_space<vmem>>, vector<8x1280xbf16>
    tpu.vector_store %arg6[%c104, %c0_30], %70 {strides = array<i32>} : memref<209x1408xbf16, #tpu.memory_space<vmem>>, vector<8x1280xbf16>,
    %72 = vector.extract_strided_slice %42 {offsets = [0, 14], sizes = [8, 1280], strides = [1, 1]} : vector<8x1408xbf16> to vector<8x1280xbf16>
    %c112 = arith.constant 112 : index
    %c0_31 = arith.constant 0 : index
    %73 = vector.load %arg6[%c112, %c0_31] : memref<209x1408xbf16, #tpu.memory_space<vmem>>, vector<8x1280xbf16>
    tpu.vector_store %arg6[%c112, %c0_31], %72 {strides = array<i32>} : memref<209x1408xbf16, #tpu.memory_space<vmem>>, vector<8x1280xbf16>,
    %74 = vector.extract_strided_slice %42 {offsets = [0, 15], sizes = [8, 1280], strides = [1, 1]} : vector<8x1408xbf16> to vector<8x1280xbf16>
    %c120 = arith.constant 120 : index
    %c0_32 = arith.constant 0 : index
    %75 = vector.load %arg6[%c120, %c0_32] : memref<209x1408xbf16, #tpu.memory_space<vmem>>, vector<8x1280xbf16>
    tpu.vector_store %arg6[%c120, %c0_32], %74 {strides = array<i32>} : memref<209x1408xbf16, #tpu.memory_space<vmem>>, vector<8x1280xbf16>,
    %76 = vector.extract_strided_slice %42 {offsets = [0, 16], sizes = [8, 1280], strides = [1, 1]} : vector<8x1408xbf16> to vector<8x1280xbf16>
    %c128 = arith.constant 128 : index
    %c0_33 = arith.constant 0 : index
    %77 = vector.load %arg6[%c128, %c0_33] : memref<209x1408xbf16, #tpu.memory_space<vmem>>, vector<8x1280xbf16>
    tpu.vector_store %arg6[%c128, %c0_33], %76 {strides = array<i32>} : memref<209x1408xbf16, #tpu.memory_space<vmem>>, vector<8x1280xbf16>,
    %78 = vector.extract_strided_slice %42 {offsets = [0, 17], sizes = [8, 1280], strides = [1, 1]} : vector<8x1408xbf16> to vector<8x1280xbf16>
    %c136 = arith.constant 136 : index
    %c0_34 = arith.constant 0 : index
    %79 = vector.load %arg6[%c136, %c0_34] : memref<209x1408xbf16, #tpu.memory_space<vmem>>, vector<8x1280xbf16>
    tpu.vector_store %arg6[%c136, %c0_34], %78 {strides = array<i32>} : memref<209x1408xbf16, #tpu.memory_space<vmem>>, vector<8x1280xbf16>,
    %80 = vector.extract_strided_slice %42 {offsets = [0, 18], sizes = [8, 1280], strides = [1, 1]} : vector<8x1408xbf16> to vector<8x1280xbf16>
    %c144 = arith.constant 144 : index
    %c0_35 = arith.constant 0 : index
    %81 = vector.load %arg6[%c144, %c0_35] : memref<209x1408xbf16, #tpu.memory_space<vmem>>, vector<8x1280xbf16>
    tpu.vector_store %arg6[%c144, %c0_35], %80 {strides = array<i32>} : memref<209x1408xbf16, #tpu.memory_space<vmem>>, vector<8x1280xbf16>,
    %82 = vector.extract_strided_slice %42 {offsets = [0, 19], sizes = [8, 1280], strides = [1, 1]} : vector<8x1408xbf16> to vector<8x1280xbf16>
    %c152 = arith.constant 152 : index
    %c0_36 = arith.constant 0 : index
    %83 = vector.load %arg6[%c152, %c0_36] : memref<209x1408xbf16, #tpu.memory_space<vmem>>, vector<8x1280xbf16>
    tpu.vector_store %arg6[%c152, %c0_36], %82 {strides = array<i32>} : memref<209x1408xbf16, #tpu.memory_space<vmem>>, vector<8x1280xbf16>,
    %84 = vector.extract_strided_slice %42 {offsets = [0, 20], sizes = [8, 1280], strides = [1, 1]} : vector<8x1408xbf16> to vector<8x1280xbf16>
    %c160 = arith.constant 160 : index
    %c0_37 = arith.constant 0 : index
    %85 = vector.load %arg6[%c160, %c0_37] : memref<209x1408xbf16, #tpu.memory_space<vmem>>, vector<8x1280xbf16>
    tpu.vector_store %arg6[%c160, %c0_37], %84 {strides = array<i32>} : memref<209x1408xbf16, #tpu.memory_space<vmem>>, vector<8x1280xbf16>,
    %86 = vector.extract_strided_slice %42 {offsets = [0, 21], sizes = [8, 1280], strides = [1, 1]} : vector<8x1408xbf16> to vector<8x1280xbf16>
    %c168 = arith.constant 168 : index
    %c0_38 = arith.constant 0 : index
    %87 = vector.load %arg6[%c168, %c0_38] : memref<209x1408xbf16, #tpu.memory_space<vmem>>, vector<8x1280xbf16>
    tpu.vector_store %arg6[%c168, %c0_38], %86 {strides = array<i32>} : memref<209x1408xbf16, #tpu.memory_space<vmem>>, vector<8x1280xbf16>,
    %88 = vector.extract_strided_slice %42 {offsets = [0, 22], sizes = [8, 1280], strides = [1, 1]} : vector<8x1408xbf16> to vector<8x1280xbf16>
    %c176 = arith.constant 176 : index
    %c0_39 = arith.constant 0 : index
    %89 = vector.load %arg6[%c176, %c0_39] : memref<209x1408xbf16, #tpu.memory_space<vmem>>, vector<8x1280xbf16>
    tpu.vector_store %arg6[%c176, %c0_39], %88 {strides = array<i32>} : memref<209x1408xbf16, #tpu.memory_space<vmem>>, vector<8x1280xbf16>,
    %90 = vector.extract_strided_slice %42 {offsets = [0, 23], sizes = [8, 1280], strides = [1, 1]} : vector<8x1408xbf16> to vector<8x1280xbf16>
    %c184 = arith.constant 184 : index
    %c0_40 = arith.constant 0 : index
    %91 = vector.load %arg6[%c184, %c0_40] : memref<209x1408xbf16, #tpu.memory_space<vmem>>, vector<8x1280xbf16>
    tpu.vector_store %arg6[%c184, %c0_40], %90 {strides = array<i32>} : memref<209x1408xbf16, #tpu.memory_space<vmem>>, vector<8x1280xbf16>,
    %92 = vector.extract_strided_slice %42 {offsets = [0, 24], sizes = [8, 1280], strides = [1, 1]} : vector<8x1408xbf16> to vector<8x1280xbf16>
    %c192 = arith.constant 192 : index
    %c0_41 = arith.constant 0 : index
    %93 = vector.load %arg6[%c192, %c0_41] : memref<209x1408xbf16, #tpu.memory_space<vmem>>, vector<8x1280xbf16>
    tpu.vector_store %arg6[%c192, %c0_41], %92 {strides = array<i32>} : memref<209x1408xbf16, #tpu.memory_space<vmem>>, vector<8x1280xbf16>,
    %94 = vector.extract_strided_slice %42 {offsets = [0, 25], sizes = [8, 1280], strides = [1, 1]} : vector<8x1408xbf16> to vector<8x1280xbf16>
    %c200 = arith.constant 200 : index
    %c0_42 = arith.constant 0 : index
    %95 = vector.load %arg6[%c200, %c0_42] : memref<209x1408xbf16, #tpu.memory_space<vmem>>, vector<8x1280xbf16>
    tpu.vector_store %arg6[%c200, %c0_42], %94 {strides = array<i32>} : memref<209x1408xbf16, #tpu.memory_space<vmem>>, vector<8x1280xbf16>,
    %c208 = arith.constant 208 : index
    %c0_43 = arith.constant 0 : index
    %96 = vector.load %arg6[%c208, %c0_43] : memref<209x1408xbf16, #tpu.memory_space<vmem>>, vector<1x1280xbf16>
    tpu.vector_store %arg6[%c208, %c0_43], %43 {strides = array<i32>} : memref<209x1408xbf16, #tpu.memory_space<vmem>>, vector<1x1280xbf16>,
    %c0_44 = arith.constant 0 : index
    %c0_45 = arith.constant 0 : index
    %97 = vector.load %arg2[%c0_44, %c0_45] : memref<16x209xbf16, #tpu.memory_space<vmem>>, vector<16x209xbf16>
    %c0_46 = arith.constant 0 : index
    %c0_47 = arith.constant 0 : index
    %98 = vector.load %arg6[%c0_46, %c0_47] : memref<209x1408xbf16, #tpu.memory_space<vmem>>, vector<209x1280xbf16>
    %cst_48 = arith.constant dense<0.000000e+00> : vector<16x1280xf32>
    %99 = tpu.matmul %97, %98, %cst_48 {dimension_numbers = #tpu.dot_dimension_numbers<[1], [0], [0], [1], [0, 0, 1, 1], [], []>} : vector<16x209xbf16>, vector<209x1280xbf16>, vector<16x1280xf32> -> vector<16x1280xf32>
    %cst_49 = arith.constant 1.000000e-01 : f32
    %100 = vector.broadcast %cst_49 : f32 to vector<16x1280xf32>
    %101 = arith.mulf %100, %99 : vector<16x1280xf32>
    %102 = arith.maximumf %99, %101 : vector<16x1280xf32>
    %103 = arith.truncf %102 : vector<16x1280xf32> to vector<16x1280xbf16>
    %c0_50 = arith.constant 0 : index
    %c0_51 = arith.constant 0 : index
    %104 = vector.load %arg4[%c0_50, %c0_51] : memref<1x1280xbf16, #tpu.memory_space<vmem>>, vector<1x1280xbf16>
    %cst_52 = arith.constant 0.000000e+00 : bf16
    %105 = vector.broadcast %cst_52 : bf16 to vector<1x1280xbf16>
    %106 = arith.cmpf one, %104, %105 : vector<1x1280xbf16>
    %cst_53 = arith.constant 0.000000e+00 : bf16
    %107 = vector.broadcast %cst_53 : bf16 to vector<16x1280xbf16>
    %108 = vector.shape_cast %106 : vector<1x1280xi1> to vector<1x1280xi1>
    %109 = vector.broadcast %108 : vector<1x1280xi1> to vector<16x1280xi1>
    %110 = arith.select %109, %103, %107 : vector<16x1280xi1>, vector<16x1280xbf16>
    %c0_54 = arith.constant 0 : index
    %c0_55 = arith.constant 0 : index
    %111 = vector.load %arg3[%c0_54, %c0_55] : memref<1280x2xbf16, #tpu.memory_space<vmem>>, vector<1280x2xbf16>
    %cst_56 = arith.constant dense<0.000000e+00> : vector<16x2xf32>
    %112 = tpu.matmul %110, %111, %cst_56 {dimension_numbers = #tpu.dot_dimension_numbers<[1], [0], [0], [1], [0, 0, 1, 1], [], []>} : vector<16x1280xbf16>, vector<1280x2xbf16>, vector<16x2xf32> -> vector<16x2xf32>
    %cst_57 = arith.constant 0.00714285718 : f32
    %113 = vector.broadcast %cst_57 : f32 to vector<16x2xf32>
    %114 = arith.mulf %113, %112 : vector<16x2xf32>
    %c0_58 = arith.constant 0 : index
    %c0_59 = arith.constant 0 : index
    %115 = vector.load %arg5[%c0_58, %c0_59] : memref<16x2xf32, #tpu.memory_space<vmem>>, vector<16x2xf32>
    tpu.vector_store %arg5[%c0_58, %c0_59], %114 {strides = array<i32>} : memref<16x2xf32, #tpu.memory_space<vmem>>, vector<16x2xf32>,
    return
  }
}

</mosaic_0001>

<bundles_post_ra>
// kernel: tpu_custom_call.1
= control target key start
LH: loop header
LB: loop body
LE: loop exit
PB: predicated region body
PF: predicated region fallthrough
CT: control target
= control target key end

     0   :  { %v32_v0 = vlaneseq  ;;  %v5300_v2 = vmov 1966171168   ;;  %s5302_s22 = smov 127   ;;  %s5303_s23 = smov 125   ;;  %vm172_vm0 = vcmask 1039360   ;;  %vm7774_vm1 = vcmask 1040384   ;;  %s7763_s0 = inlined_call_operand.vmem [shape: bf16[1,1536], index: 0, kind: input, shape index: {}]   ;;  %s7764_s1 = inlined_call_operand.vmem [shape: bf16[8,27], index: 1, kind: input, shape index: {}]   ;;  %s7765_s2 = inlined_call_operand.vmem [shape: bf16[16,209], index: 2, kind: input, shape index: {}]   ;;  %s7766_s3 = inlined_call_operand.vmem [shape: bf16[1280,2], index: 3, kind: input, shape index: {}]   ;;  %s7767_s4 = inlined_call_operand.vmem [shape: bf16[1,1280], index: 4, kind: input, shape index: {}]   ;;  %s7768_s5 = inlined_call_operand.vmem [shape: f32[16,2], index: 5, kind: output, shape index: {}]  }
   0x1   :  { %v24_v1 = vld [vmem:[%s7763_s0] sm:$0xff]  ;;  %v30_v3 = vunpack.c.l.s4 %v5300_v2  ;;  %v25_v5 = vld [vmem:[%s7763_s0 + $0x8] sm:$0xf]  ;;  %s5301_s0 = smov 126   ;;  %s5304_s24 = smov 124   ;;  %vm7776_vm4 = vcmask 1031168  }
   0x2   :  { %v5363_v4 = vshrl.u32 %v32_v0, 7  ;;  %v195_v7 = vcombine.low %v24_v1, %v24_v1  ;;  %v28_v8 = vcombine.high %v24_v1, %v24_v1  ;;  %v220_v9 = vcombine.low %v25_v5, %v25_v5  ;;  %s5305_s25 = smov 123   ;;  %s5306_s26 = smov 122  }
   0x3   :  { %v31_v6 = vunpack.c.0.s8 %v30_v3  ;;  %s5307_s27 = smov 121   ;;  %vm576_vm2 = vsmask.f32 256  ;;  %s5308_s28 = smov 104   ;;  %vm7775_vm5 = vcmask 1022976   ;;  %vm7777_vm6 = vcmask 1014784  }
   0x4   :  { %7846 = vst [vmem:[#allocation3_spill] sm:$0xff] %v5363_v4  ;;  %vm5597_vm3 = vmand %vm7774_vm1, %vm576_vm2  ;;  %vm7773_vm7 = vcmask 1041408   ;;  %vm635_vm8 = vsmask.f32 1280  ;;  %vm7772_vm9 = vcmask 1006592   ;;  %vm7770_vm10 = vcmask 1042432  }
   0x5   :  { %v5369_v10 = vsub.s32 %v31_v6, %v5363_v4  ;;  %vm694_vm11 = vsmask.f32 2304  ;;  %vm7771_vm12 = vcmask 998400   ;;  %vm752_vm13 = vcmask 1043456   ;;  %vm5659_vm2 = vmand %vm7773_vm7, %vm635_vm8  ;;  %s5309_s29 = smov 120   ;;  %s5310_s30 = smov 112  }
   0x6   :  { %vm753_vm14 = vsmask.f32 3328  ;;  %vm7769_vm15 = vcmask 990208   ;;  %vm5684_vm8 = vmand %vm7770_vm10, %vm694_vm11  ;;  %s5316_s8 = smov 118   ;;  %s5317_s9 = smov 117  }
   0x7   :  { %v83_v11 = vrot.slane %v25_v5, %v5369_v10  ;;  %v5373_v12 = vrot.slane %v195_v7, %v5369_v10  ;;  %v35_v13 = vrot.slane %v24_v1, %v5369_v10  ;;  %v5377_v14 = vrot.slane %v28_v8, %v5369_v10  ;;  %vm5711_vm11 = vmand %vm752_vm13, %vm753_vm14  ;;  %s5318_s10 = smov 116   ;;  %s5319_s11 = smov 115  }
   0x8   :  { %v227_v15 = vrot.slane %v220_v9, %v5369_v10  ;;  %vm993_vm14 = vcmask 1045508   ;;  %s5320_s12 = smov 114   ;;  %s5321_s13 = smov 113  }
   0x9   :  { %v5382_v16 = vrot.slane %v5373_v12, %v5369_v10  ;;  %v43_v17 = vcombine.high %v35_v13, %v35_v13  ;;  %v203_v18 = vcombine.high %v5373_v12, %v5373_v12  ;;  %v5387_v19 = vrot.slane %v35_v13, %v5369_v10  ;;  %s5322_s14 = smov 111   ;;  %s5323_s15 = smov 110  }
   0xa   :  { %v44_v20 = vcombine.high %v5377_v14, %v5377_v14  ;;  %v5393_v21 = vrot.slane %v5377_v14, %v5369_v10  ;;  %v340_v43 = vcombine.low %v35_v13, %v35_v13  ;;  %v84_v44 = vcombine.high %v83_v11, %v83_v11  ;;  %s5324_s16 = smov 109   ;;  %s5325_s17 = smov 108  }
   0xb   :  { %245 = vrot.lane.b32.xlu1 %v5382_v16, %s5301_s0  ;;  %v217_v22 = vrot.slane %v203_v18, %v5369_v10  ;;  %v5399_v23 = vrot.slane %v43_v17, %v5369_v10  ;;  %v5402_v24 = vshll.u32 %v5387_v19, 16  ;;  %v5409_v26 = vcombine.high %v5387_v19, %v5387_v19  ;;  %s5326_s18 = smov 107   ;;  %s5327_s19 = smov 106  }
   0xc   :  { %v5405_v25 = vrot.slane %v44_v20, %v5369_v10  ;;  %v5421_v29 = vcombine.high %v5382_v16, %v5382_v16  ;;  %v5424_v30 = vshll.u32 %v5393_v21, 16  ;;  %v5453_v45 = vrot.slane %v83_v11, %v5369_v10  ;;  %s5328_s20 = smov 105   ;;  %s5329_s21 = smov 103  }
   0xd   :  { %247 = vrot.lane.b32.xlu0 %v217_v22, %s5301_s0  ;;  %v5413_v27 = vshll.u32 %v5399_v23, 16  ;;  %v5417_v28 = vcombine.high %v5399_v23, %v5399_v23  ;;  %v5434_v33 = vshll.u32 %v5409_v26, 16  ;;  %v219_v35 = vcombine.high %v217_v22, %v217_v22 }
   0xe   :  { %v5431_v32 = vshll.u32 %v5405_v25, 16  ;;  %v281_v40 = vrot.slane %v5402_v24, 7  ;;  %v5456_v46 = vrot.slane %v227_v15, %v5369_v10  ;;  %v285_v48 = vrot.slane %v5424_v30, 7 }
   0xf   :  { %253 = vrot.lane.b32.xlu1 %v5387_v19, %s5301_s0  ;;  %v5094_v31 = vpack.i.bf16 %v5413_v27, %v5402_v24  ;;  %v5437_v34 = vshll.u32 %v5417_v28, 16  ;;  %v283_v37 = vrot.slane %v5434_v33, 7  ;;  %v282_v41 = vrot.slane %v5413_v27, 7 }
  0x10   :  { %v5099_v36 = vpack.i.bf16 %v5431_v32, %v5424_v30  ;;  %v286_v49 = vrot.slane %v5431_v32, 7  ;;  %v5462_v50 = vrot.slane %v84_v44, %v5369_v10  ;;  %v348_v51 = vrot.slane %v340_v43, %v5369_v10 }
  0x11   :  { %5095 = vrot.lane.b32.xlu0 %v5094_v31, %s5302_s22  ;;  %v284_v38 = vrot.slane %v5437_v34, 7  ;;  %v5104_v39 = vpack.i.bf16 %v5437_v34, %v5434_v33  ;;  %v5109_v47 = vpack.i.bf16 %v282_v41, %v281_v40  ;;  %v228_v52 = vcombine.high %v227_v15, %v227_v15 }
  0x12   :  { %v358_v53 = vcombine.low %v83_v11, %v83_v11  ;;  %v5114_v54 = vpack.i.bf16 %v286_v49, %v285_v48  ;;  %v471_v57 = vcombine.low %v227_v15, %v227_v15  ;;  %v356_v58 = vcombine.high %v348_v51, %v348_v51 }
  0x13   :  { %249 = vrot.lane.b32.xlu1 %v5421_v29, %s5301_s0  ;;  %v5119_v42 = vpack.i.bf16 %v284_v38, %v283_v37  ;;  %v5468_v55 = vrot.slane %v228_v52, %v5369_v10  ;;  %v341_v59 = vcombine.low %v5377_v14, %v5377_v14  ;;  %v405_v62 = vrot.slane %v5434_v33, 6 }
  0x14   :  { %v5471_v56 = vrot.slane %v358_v53, %v5369_v10  ;;  %v5477_v60 = vrot.slane %v471_v57, %v5369_v10  ;;  %v406_v63 = vrot.slane %v5437_v34, 6  ;;  %v403_v0 = vrot.slane %v5402_v24, 6 }
  0x15   :  { %251 = vrot.lane.b32.xlu0 %v219_v35, %s5301_s0  ;;  %v355_v61 = vrot.slane %v341_v59, %v5369_v10  ;;  %v404_v1 = vrot.slane %v5413_v27, 6  ;;  %v462_v3 = vcombine.low %v5373_v12, %v5373_v12  ;;  %v407_v6 = vrot.slane %v5424_v30, 6 }
  0x16   :  { %v5129_v2 = vpack.i.bf16 %v406_v63, %v405_v62  ;;  %v408_v7 = vrot.slane %v5431_v32, 6  ;;  %v518_v12 = vrot.slane %v5434_v33, 5  ;;  %v519_v13 = vrot.slane %v5437_v34, 5 }
  0x17   :  { %5100 = vrot.lane.b32.xlu1 %v5099_v36, %s5302_s22  ;;  %v5124_v5 = vpack.i.bf16 %v404_v1, %v403_v0  ;;  %v469_v8 = vrot.slane %v462_v3, %v5369_v10  ;;  %v5505_v14 = vcombine.high %v5393_v21, %v5393_v21  ;;  %v5509_v10 = vcombine.high %v5405_v25, %v5405_v25 }
  0x18   :  { %v5134_v9 = vpack.i.bf16 %v408_v7, %v407_v6  ;;  %v516_v15 = vrot.slane %v5402_v24, 5  ;;  %v517_v17 = vrot.slane %v5413_v27, 5  ;;  %v5144_v18 = vpack.i.bf16 %v519_v13, %v518_v12 }
  0x19   :  { %5105 = vrot.lane.b32.xlu0 %v5104_v39, %s5302_s22  ;;  %v470_v11 = vcombine.high %v469_v8, %v469_v8  ;;  %v131_v20 = vshll.u32 %v5505_v14, 16  ;;  %v134_v22 = vshll.u32 %v5509_v10, 16  ;;  %v520_v33 = vrot.slane %v5424_v30, 5 }
  0x1a   :  { %v5139_v31 = vpack.i.bf16 %v517_v17, %v516_v15  ;;  %v521_v34 = vrot.slane %v5431_v32, 5  ;;  %v357_v30 = vcombine.high %v355_v61, %v355_v61  ;;  %v137_v32 = vshll.u32 %v5453_v45, 16 }
  0x1b   :  { %5120 = vrot.lane.b32.xlu1 %v5119_v42, %s5303_s23  ;;  %v287_v27 = vrot.slane %v131_v20, 7  ;;  %v140_v35 = vshll.u32 %v5462_v50, 16  ;;  %v522_v37 = vrot.slane %v131_v20, 5  ;;  %v288_v38 = vrot.slane %v134_v22, 7 }
  0x1c   :  { %v5149_v24 = vpack.i.bf16 %v521_v34, %v520_v33  ;;  %v289_v39 = vrot.slane %v137_v32, 7  ;;  %v5544_v40 = vcombine.high %v5453_v45, %v5453_v45  ;;  %v5554_v43 = vcombine.high %v5456_v46, %v5456_v46 }
  0x1d   :  { %5110 = vrot.lane.b32.xlu0 %v5109_v47, %s5303_s23  ;;  %v5159_v36 = vpack.i.bf16 %v140_v35, %v137_v32  ;;  %v410_v44 = vrot.slane %v134_v22, 6  ;;  %v411_v47 = vrot.slane %v137_v32, 6  ;;  %v290_v48 = vrot.slane %v140_v35, 7 }
  0x1e   :  { %v5164_v41 = vpack.i.bf16 %v289_v39, %v288_v38  ;;  %v143_v42 = vshll.u32 %v5544_v40, 16  ;;  %v366_v53 = vcombine.high %v5471_v56, %v5471_v56  ;;  %v524_v57 = vrot.slane %v137_v32, 5 }
  0x1f   :  { %367 = vrot.lane.b32.xlu1 %v348_v51, %s5304_s24  ;;  %v525_v63 = vrot.slane %v140_v35, 5 }
  0x20   :  { %v291_v49 = vrot.slane %v143_v42, 7  ;;  %v413_v59 = vrot.slane %v143_v42, 6  ;;  %v526_v0 = vrot.slane %v143_v42, 5 }
  0x21   :  { %5115 = vrot.lane.b32.xlu0 %v5114_v54, %s5303_s23  ;;  %v523_v54 = vrot.slane %v134_v22, 5 }
  0x22   :  { %v5169_v52 = vpack.i.bf16 %v291_v49, %v290_v48  ;;  %v5189_v1 = vpack.i.bf16 %v526_v0, %v525_v63 }
  0x23   :  { %371 = vrot.lane.b32.xlu1 %v356_v58, %s5304_s24 }
  0x25   :  { %369 = vrot.lane.b32.xlu0 %v5387_v19, %s5304_s24 }
  0x27   :  { %375 = vrot.lane.b32.xlu1 %v355_v61, %s5304_s24  ;;  %v5184_v61 = vpack.i.bf16 %v524_v57, %v523_v54 }
  0x29   :  { %373 = vrot.lane.b32.xlu0 %v5409_v26, %s5304_s24 }
  0x2b   :  { %5130 = vrot.lane.b32.xlu1 %v5129_v2, %s5305_s25 }
  0x2d   :  { %5125 = vrot.lane.b32.xlu0 %v5124_v5, %s5305_s25 }
  0x2f   :  { %480 = vrot.lane.b32.xlu1 %v469_v8, %s5306_s26 }
  0x31   :  { %5135 = vrot.lane.b32.xlu0 %v5134_v9, %s5305_s25 }
  0x33   :  { %484 = vrot.lane.b32.xlu1 %v470_v11, %s5306_s26 }
  0x35   :  { %482 = vrot.lane.b32.xlu0 %v5382_v16, %s5306_s26  ;;  %v5154_v16 = vpack.i.bf16 %v134_v22, %v131_v20 }
  0x37   :  { %488 = vrot.lane.b32.xlu1 %v348_v51, %s5306_s26  ;;  %v5174_v51 = vpack.i.bf16 %v411_v47, %v410_v44 }
  0x39   :  { %486 = vrot.lane.b32.xlu0 %v5421_v29, %s5306_s26  ;;  %v409_v29 = vrot.slane %v131_v20, 6 }
  0x3b   :  { %5145 = vrot.lane.b32.xlu1 %v5144_v18, %s5307_s27 }
  0x3d   :  { %5140 = vrot.lane.b32.xlu0 %v5139_v31, %s5307_s27 }
  0x3f   :  { %5155 = vrot.lane.b32.xlu1 %v5154_v16, %s5302_s22 }
  0x41   :  { %5150 = vrot.lane.b32.xlu0 %v5149_v24, %s5307_s27 }
  0x43   :  { %257 = vrot.lane.b32.xlu1 %v5409_v26, %s5301_s0 }
  0x45   :  { %255 = vrot.lane.b32.xlu0 %v5399_v23, %s5301_s0 }
  0x47   :  { %377 = vrot.lane.b32.xlu1 %v5393_v21, %s5304_s24 }
  0x49   :  { %305 = vrot.lane.b32.xlu0 %v287_v27, %s5303_s23 }
  0x4b   :  { %427 = vrot.lane.b32.xlu1 %v409_v29, %s5305_s25 }
  0x4d   :  { %379 = vrot.lane.b32.xlu0 %v357_v30, %s5304_s24 }
  0x4f   :  { %492 = vrot.lane.b32.xlu1 %v356_v58, %s5306_s26  ;;  %v412_v58 = vrot.slane %v140_v35, 6 }
  0x51   :  { %490 = vrot.lane.b32.xlu0 %v5387_v19, %s5306_s26  ;;  %v5179_v62 = vpack.i.bf16 %v413_v59, %v412_v58 }
  0x53   :  { %5160 = vrot.lane.b32.xlu1 %v5159_v36, %s5302_s22 }
  0x55   :  { %540 = vrot.lane.b32.xlu0 %v522_v37, %s5307_s27 }
  0x57   :  { %261 = vrot.lane.b32.xlu1 %v5456_v46, %s5301_s0 }
  0x59   :  { %259 = vrot.lane.b32.xlu0 %v5417_v28, %s5301_s0 }
  0x5b   :  { %5165 = vrot.lane.b32.xlu1 %v5164_v41, %s5303_s23 }
  0x5d   :  { %168 = vrot.lane.b32.xlu0 %v143_v42, %s5302_s22 }
  0x5f   :  { %265 = vrot.lane.b32.xlu1 %v5554_v43, %s5301_s0 }
  0x61   :  { %263 = vrot.lane.b32.xlu0 %v5468_v55, %s5301_s0 }
  0x63   :  { %383 = vrot.lane.b32.xlu1 %v5471_v56, %s5304_s24  ;;  %v479_v56 = vcombine.high %v5477_v60, %v5477_v60 }
  0x65   :  { %381 = vrot.lane.b32.xlu0 %v5505_v14, %s5304_s24 }
  0x67   :  { %5175 = vrot.lane.b32.xlu1 %v5174_v51, %s5305_s25 }
  0x69   :  { %5170 = vrot.lane.b32.xlu0 %v5169_v52, %s5303_s23 }
  0x6b   :  { %387 = vrot.lane.b32.xlu1 %v366_v53, %s5304_s24 }
  0x6d   :  { %385 = vrot.lane.b32.xlu0 %v5453_v45, %s5304_s24 }
  0x6f   :  { %496 = vrot.lane.b32.xlu1 %v5477_v60, %s5306_s26 }
  0x71   :  { %494 = vrot.lane.b32.xlu0 %v5409_v26, %s5306_s26 }
  0x73   :  { %5185 = vrot.lane.b32.xlu1 %v5184_v61, %s5307_s27 }
  0x75   :  { %5180 = vrot.lane.b32.xlu0 %v5179_v62, %s5305_s25 }
  0x77   :  { %500 = vrot.lane.b32.xlu1 %v479_v56, %s5306_s26 }
  0x79   :  { %498 = vrot.lane.b32.xlu0 %v5456_v46, %s5306_s26 }
  0x7d   :  { %v5583_v2 = vpop.permute.xlu1 %245  ;;  %5190 = vrot.lane.b32.xlu0 %v5189_v1, %s5307_s27 }
  0x7f   :  { %v248_v3 = vpop.permute.xlu0 %247 }
  0x80   :  { %v270_v58 = vsel %vm7776_vm4, %v5583_v2, %v248_v3 }
  0x81   :  { %v5586_v5 = vpop.permute.xlu1 %253 }
  0x83   :  { %v5096_v6 = vpop.permute.xlu0 %5095 }
  0x84   :  { %v5098_v8 = vunpack.i.h.bf16 %v5096_v6  ;;  %v5097_v9 = vunpack.i.l.bf16 %v5096_v6 }
  0x85   :  { %v5588_v7 = vpop.permute.xlu1 %249 }
  0x86   :  { %v173_v12 = vsel %vm172_vm0, %v5097_v9, %v5098_v8  ;;  %v271_v59 = vsel %vm7776_vm4, %v248_v3, %v5588_v7 }
  0x87   :  { %v5590_v60 = vpop.permute.xlu0 %251  ;;  %v578_v16 = vsel %vm5597_vm3, %v5387_v19, %v173_v12 }
  0x88   :  { %v915_v30 = vsel %vm7774_vm1, %v578_v16, 1065369472  ;;  %v272_v62 = vsel %vm7776_vm4, %v5588_v7, %v5590_v60  ;;  %v273_v1 = vsel %vm7776_vm4, %v5590_v60, %v5586_v5  ;;  %v592_v3 = vsel %vm7774_vm1, %v578_v16, %v270_v58 }
  0x89   :  { %v5592_v11 = vpop.permute.xlu1 %5100 }
  0x8a   :  { %v5102_v13 = vunpack.i.l.bf16 %v5592_v11  ;;  %v5103_v2 = vunpack.i.h.bf16 %v5592_v11 }
  0x8b   :  { %v5106_v46 = vpop.permute.xlu0 %5105 }
  0x8c   :  { %v5108_v15 = vunpack.i.h.bf16 %v5106_v46  ;;  %v5107_v17 = vunpack.i.l.bf16 %v5106_v46 }
  0x8d   :  { %v5121_v20 = vpop.permute.xlu1 %5120 }
  0x8e   :  { %v174_v22 = vsel %vm172_vm0, %v5098_v8, %v5107_v17  ;;  %v175_v31 = vsel %vm172_vm0, %v5107_v17, %v5108_v15  ;;  %v176_v33 = vsel %vm172_vm0, %v5108_v15, %v5102_v13  ;;  %v5123_v53 = vunpack.i.h.bf16 %v5121_v20 }
  0x8f   :  { %v5111_v34 = vpop.permute.xlu0 %5110  ;;  %v579_v24 = vsel %vm5597_vm3, %v5399_v23, %v174_v22  ;;  %v580_v27 = vsel %vm5597_vm3, %v5409_v26, %v175_v31  ;;  %v581_v29 = vsel %vm5597_vm3, %v5417_v28, %v176_v33  ;;  %v5122_v54 = vunpack.i.l.bf16 %v5121_v20 }
  0x90   :  { %v916_v32 = vsel %vm7774_vm1, %v579_v24, 1065369472  ;;  %v917_v19 = vsel %vm7774_vm1, %v580_v27, 1065369472  ;;  %v918_v37 = vsel %vm7774_vm1, %v581_v29, 1065369472  ;;  %v5113_v49 = vunpack.i.h.bf16 %v5111_v34 }
  0x91   :  { %v368_v35 = vpop.permute.xlu1 %367  ;;  %v4660_v36 = vcombine.low %v915_v30, %v916_v32  ;;  %v4661_v26 = vcombine.low %v917_v19, %v918_v37  ;;  %v5112_v51 = vunpack.i.l.bf16 %v5111_v34  ;;  %v320_v9 = vsel %vm7775_vm5, %v5122_v54, %v5123_v53 }
  0x92   :  { %v319_v6 = vsel %vm7775_vm5, %v5113_v49, %v5122_v54  ;;  %v596_v7 = vsel %vm7774_vm1, %v579_v24, %v271_v59  ;;  %v600_v12 = vsel %vm7774_vm1, %v580_v27, %v272_v62  ;;  %v604_v15 = vsel %vm7774_vm1, %v581_v29, %v273_v1 }
  0x93   :  { %957 = vrot.lane.b32.xlu0 %v4660_v36, %s5308_s28  ;;  %v5623_v23 = vpop.permute.xlu0 %5115  ;;  %959 = vrot.lane.b32.xlu1 %v4661_v26, %s5308_s28  ;;  %v318_v56 = vsel %vm7775_vm5, %v5112_v51, %v5113_v49  ;;  %v638_v33 = vsel %vm5659_vm2, %v596_v7, %v319_v6  ;;  %v639_v27 = vsel %vm5659_vm2, %v600_v12, %v320_v9 }
  0x94   :  { %v5117_v57 = vunpack.i.l.bf16 %v5623_v23  ;;  %v637_v17 = vsel %vm5659_vm2, %v592_v3, %v318_v56 }
  0x95   :  { %v372_v38 = vpop.permute.xlu1 %371 }
  0x96   :  { %v321_v46 = vsel %vm7775_vm5, %v5123_v53, %v5117_v57 }
  0x97   :  { %v370_v28 = vpop.permute.xlu0 %369  ;;  %v640_v29 = vsel %vm5659_vm2, %v604_v15, %v321_v46 }
  0x98   :  { %v392_v20 = vsel %vm7777_vm6, %v368_v35, %v370_v28  ;;  %v393_v22 = vsel %vm7777_vm6, %v370_v28, %v372_v38 }
  0x99   :  { %v5626_v39 = vpop.permute.xlu1 %375  ;;  %v651_v36 = vsel %vm7773_vm7, %v637_v17, %v392_v20  ;;  %v655_v19 = vsel %vm7773_vm7, %v638_v33, %v393_v22 }
  0x9b   :  { %v374_v41 = vpop.permute.xlu0 %373 }
  0x9c   :  { %v394_v34 = vsel %vm7777_vm6, %v372_v38, %v374_v41  ;;  %v395_v28 = vsel %vm7777_vm6, %v374_v41, %v5626_v39 }
  0x9d   :  { %v5628_v42 = vpop.permute.xlu1 %5130  ;;  %v663_v17 = vsel %vm7773_vm7, %v640_v29, %v395_v28 }
  0x9e   :  { %v5132_v16 = vunpack.i.l.bf16 %v5628_v42  ;;  %v5133_v30 = vunpack.i.h.bf16 %v5628_v42  ;;  %v659_v42 = vsel %vm7773_vm7, %v639_v27, %v394_v34 }
  0x9f   :  { %v5126_v44 = vpop.permute.xlu0 %5125 }
  0xa0   :  { %v5128_v63 = vunpack.i.h.bf16 %v5126_v44  ;;  %v5127_v0 = vunpack.i.l.bf16 %v5126_v44  ;;  %v442_v62 = vsel %vm7772_vm9, %v5132_v16, %v5133_v30 }
  0xa1   :  { %v481_v47 = vpop.permute.xlu1 %480 }
  0xa2   :  { %v440_v24 = vsel %vm7772_vm9, %v5127_v0, %v5128_v63  ;;  %v441_v37 = vsel %vm7772_vm9, %v5128_v63, %v5132_v16 }
  0xa3   :  { %v5630_v48 = vpop.permute.xlu0 %5135  ;;  %v696_v49 = vsel %vm5684_vm8, %v651_v36, %v440_v24  ;;  %v697_v41 = vsel %vm5684_vm8, %v655_v19, %v441_v37  ;;  %v177_v24 = vsel %vm172_vm0, %v5102_v13, %v5103_v2 }
  0xa4   :  { %v5137_v32 = vunpack.i.l.bf16 %v5630_v48  ;;  %v582_v19 = vsel %vm5597_vm3, %v5393_v21, %v177_v24  ;;  %v5779_v21 = vcombine.high %v5462_v50, %v5462_v50 }
  0xa5   :  { %v5632_v52 = vpop.permute.xlu1 %484 }
  0xa7   :  { %v483_v61 = vpop.permute.xlu0 %482 }
  0xa8   :  { %v505_v38 = vsel %vm7771_vm12, %v481_v47, %v483_v61  ;;  %v506_v44 = vsel %vm7771_vm12, %v483_v61, %v5632_v52  ;;  %v443_v47 = vsel %vm7772_vm9, %v5133_v30, %v5137_v32 }
  0xa9   :  { %v5649_v8 = vpop.permute.xlu1 %488  ;;  %v710_v56 = vsel %vm7770_vm10, %v696_v49, %v505_v38  ;;  %v714_v63 = vsel %vm7770_vm10, %v697_v41, %v506_v44  ;;  %v699_v33 = vsel %vm5684_vm8, %v663_v17, %v443_v47  ;;  %v919_v44 = vsel %vm7774_vm1, %v582_v19, 1065369472 }
  0xab   :  { %v487_v31 = vpop.permute.xlu0 %486 }
  0xac   :  { %v507_v9 = vsel %vm7771_vm12, %v5632_v52, %v487_v31  ;;  %v508_v7 = vsel %vm7771_vm12, %v487_v31, %v5649_v8  ;;  %v698_v31 = vsel %vm5684_vm8, %v659_v42, %v442_v62 }
  0xad   :  { %v5146_v35 = vpop.permute.xlu1 %5145  ;;  %v718_v27 = vsel %vm7770_vm10, %v698_v31, %v507_v9  ;;  %v722_v29 = vsel %vm7770_vm10, %v699_v33, %v508_v7 }
  0xae   :  { %v5148_v53 = vunpack.i.h.bf16 %v5146_v35  ;;  %v5147_v54 = vunpack.i.l.bf16 %v5146_v35 }
  0xaf   :  { %v5141_v51 = vpop.permute.xlu0 %5140 }
  0xb0   :  { %v5143_v58 = vunpack.i.h.bf16 %v5141_v51  ;;  %v5142_v59 = vunpack.i.l.bf16 %v5141_v51  ;;  %v555_v22 = vsel %vm7769_vm15, %v5147_v54, %v5148_v53 }
  0xb1   :  { %v5703_v61 = vpop.permute.xlu1 %5155  ;;  %v5757_v11 = vsel %vm5711_vm11, %v718_v27, %v555_v22 }
  0xb2   :  { %v5157_v0 = vunpack.i.l.bf16 %v5703_v61  ;;  %v553_v1 = vsel %vm7769_vm15, %v5142_v59, %v5143_v58  ;;  %v554_v6 = vsel %vm7769_vm15, %v5143_v58, %v5147_v54  ;;  %v5158_v27 = vunpack.i.h.bf16 %v5703_v61 }
  0xb3   :  { %v5719_v46 = vpop.permute.xlu0 %5150  ;;  %v5723_v12 = vsel %vm5711_vm11, %v710_v56, %v553_v1  ;;  %v756_v15 = vsel %vm5711_vm11, %v714_v63, %v554_v6  ;;  %v7803_v1 = vmov 0  }
  0xb4   :  { %v178_v20 = vsel %vm172_vm0, %v5103_v2, %v5157_v0  ;;  %v5152_v52 = vunpack.i.l.bf16 %v5719_v46  ;;  %v5740_v16 = vcombine.low %v5723_v12, %v756_v15  ;;  %1214 = vmatprep.mubr.bf16.mxu1 %v7803_v1  ;;  %1296 = vmatprep.mubr.bf16.mxu0 %v7803_v1  ;;  %v5153_v17 = vunpack.i.h.bf16 %v5719_v46 }
  0xb5   :  { %v5737_v34 = vpop.permute.xlu1 %257  ;;  %v583_v36 = vsel %vm5597_vm3, %v5405_v25, %v178_v20  ;;  %v5118_v25 = vunpack.i.h.bf16 %v5623_v23  ;;  %v146_v23 = vshll.u32 %v5779_v21, 16 }
  0xb6   :  { %v556_v30 = vsel %vm7769_vm15, %v5148_v53, %v5152_v52  ;;  %830 = vrot.lane.b32.xlu0 %v5740_v16, %s5309_s29  ;;  %v920_v28 = vsel %vm7774_vm1, %v583_v36, 1065369472 }
  0xb7   :  { %v256_v35 = vpop.permute.xlu0 %255  ;;  %v758_v13 = vsel %vm5711_vm11, %v722_v29, %v556_v30  ;;  %v4662_v51 = vcombine.low %v919_v44, %v920_v28  ;;  %v322_v53 = vsel %vm7775_vm5, %v5117_v57, %v5118_v25  ;;  %v5138_v57 = vunpack.i.h.bf16 %v5630_v48 }
  0xb8   :  { %v5762_v2 = vcombine.low %v5757_v11, %v758_v13  ;;  %v274_v37 = vsel %vm7776_vm4, %v5586_v5, %v256_v35  ;;  %v275_v54 = vsel %vm7776_vm4, %v256_v35, %v5737_v34  ;;  %v292_v7 = vrot.slane %v146_v23, 7 }
  0xb9   :  { %v378_v38 = vpop.permute.xlu1 %377  ;;  %v608_v5 = vsel %vm7774_vm1, %v582_v19, %v274_v37  ;;  %v612_v63 = vsel %vm7774_vm1, %v583_v36, %v275_v54  ;;  %v444_v15 = vsel %vm7772_vm9, %v5137_v32, %v5138_v57  ;;  %v414_v35 = vrot.slane %v146_v23, 6 }
  0xba   :  { %832 = vrot.lane.b32.xlu1 %v5762_v2, %s5309_s29  ;;  %874 = vrot.lane.b32.xlu0 %v5762_v2, %s5310_s30  ;;  %v641_v58 = vsel %vm5659_vm2, %v608_v5, %v322_v53  ;;  %v396_v59 = vsel %vm7777_vm6, %v5626_v39, %v378_v38  ;;  %v557_v37 = vsel %vm7769_vm15, %v5152_v52, %v5153_v17 }
  0xbb   :  { %v5775_v42 = vpop.permute.xlu0 %305  ;;  %v667_v39 = vsel %vm7773_vm7, %v641_v58, %v396_v59  ;;  %v179_v5 = vsel %vm172_vm0, %v5157_v0, %v5158_v27  ;;  %v244_v58 = vcombine.high %v5468_v55, %v5468_v55 }
  0xbc   :  { %v323_v47 = vsel %vm7775_vm5, %v5118_v25, %v5775_v42  ;;  %v700_v33 = vsel %vm5684_vm8, %v667_v39, %v444_v15  ;;  %v584_v61 = vsel %vm5597_vm3, %v5505_v14, %v179_v5 }
  0xbd   :  { %v5783_v49 = vpop.permute.xlu1 %427  ;;  %v642_v6 = vsel %vm5659_vm2, %v612_v63, %v323_v47 }
  0xbe   :  { %872 = vrot.lane.b32.xlu1 %v5740_v16, %s5310_s30  ;;  %961 = vrot.lane.b32.xlu0 %v4662_v51, %s5308_s28  ;;  %v445_v48 = vsel %vm7772_vm9, %v5138_v57, %v5783_v49  ;;  %v527_v51 = vrot.slane %v146_v23, 5 }
  0xbf   :  { %v5797_v62 = vpop.permute.xlu0 %379 }
  0xc0   :  { %v397_v41 = vsel %vm7777_vm6, %v378_v38, %v5797_v62 }
  0xc1   :  { %v5805_v56 = vpop.permute.xlu1 %492  ;;  %v671_v20 = vsel %vm7773_vm7, %v642_v6, %v397_v41 }
  0xc2   :  { %170 = vrot.lane.b32.xlu0 %v146_v23, %s5302_s22  ;;  %v701_v30 = vsel %vm5684_vm8, %v671_v20, %v445_v48 }
  0xc3   :  { %v491_v9 = vpop.permute.xlu0 %490 }
  0xc4   :  { %v509_v22 = vsel %vm7771_vm12, %v5649_v8, %v491_v9  ;;  %v510_v31 = vsel %vm7771_vm12, %v491_v9, %v5805_v56 }
  0xc5   :  { %v5161_v24 = vpop.permute.xlu1 %5160  ;;  %v726_v32 = vsel %vm7770_vm10, %v700_v33, %v509_v22  ;;  %v730_v36 = vsel %vm7770_vm10, %v701_v30, %v510_v31 }
  0xc6   :  { %v5162_v29 = vunpack.i.l.bf16 %v5161_v24  ;;  %315 = vrot.lane.b32.xlu0 %v292_v7, %s5303_s23  ;;  %v5843_v25 = vsel %vm5711_vm11, %v726_v32, %v557_v37  ;;  %v5163_v55 = vunpack.i.h.bf16 %v5161_v24 }
  0xc7   :  { %v5832_v8 = vpop.permute.xlu0 %540 }
  0xc8   :  { %v180_v13 = vsel %vm172_vm0, %v5158_v27, %v5162_v29  ;;  %v558_v19 = vsel %vm7769_vm15, %v5153_v17, %v5832_v8  ;;  %v181_v31 = vsel %vm172_vm0, %v5162_v29, %v5163_v55 }
  0xc9   :  { %v262_v38 = vpop.permute.xlu1 %261  ;;  %v760_v28 = vsel %vm5711_vm11, %v730_v36, %v558_v19  ;;  %v585_v52 = vsel %vm5597_vm3, %v5509_v10, %v180_v13  ;;  %v921_v10 = vsel %vm7774_vm1, %v584_v61, 1065369472 }
  0xca   :  { %v5851_v44 = vcombine.low %v5843_v25, %v760_v28  ;;  %437 = vrot.lane.b32.xlu0 %v414_v35, %s5305_s25  ;;  %v922_v0 = vsel %vm7774_vm1, %v585_v52, 1065369472 }
  0xcb   :  { %v260_v46 = vpop.permute.xlu0 %259  ;;  %v4663_v23 = vcombine.low %v921_v10, %v922_v0 }
  0xcc   :  { %834 = vrot.lane.b32.xlu1 %v5851_v44, %s5309_s29  ;;  %v276_v7 = vsel %vm7776_vm4, %v5737_v34, %v260_v46  ;;  %v277_v15 = vsel %vm7776_vm4, %v260_v46, %v262_v38 }
  0xcd   :  { %v5166_v53 = vpop.permute.xlu1 %5165  ;;  %v616_v33 = vsel %vm7774_vm1, %v584_v61, %v276_v7  ;;  %v620_v48 = vsel %vm7774_vm1, %v585_v52, %v277_v15  ;;  %v586_v7 = vsel %vm5597_vm3, %v5453_v45, %v181_v31 }
  0xce   :  { %550 = vrot.lane.b32.xlu0 %v527_v51, %s5307_s27  ;;  %v5168_v39 = vunpack.i.h.bf16 %v5166_v53  ;;  %v5167_v6 = vunpack.i.l.bf16 %v5166_v53 }
  0xcf   :  { %v5864_v54 = vpop.permute.xlu0 %168 }
  0xd0   :  { %876 = vrot.lane.b32.xlu1 %v5851_v44, %s5310_s30  ;;  %v325_v24 = vsel %vm7775_vm5, %v5167_v6, %v5168_v39  ;;  %v182_v34 = vsel %vm172_vm0, %v5163_v55, %v5864_v54 }
  0xd1   :  { %v5871_v59 = vpop.permute.xlu1 %265  ;;  %v644_v37 = vsel %vm5659_vm2, %v620_v48, %v325_v24 }
  0xd2   :  { %963 = vrot.lane.b32.xlu0 %v4663_v23, %s5308_s28 }
  0xd3   :  { %v264_v14 = vpop.permute.xlu0 %263 }
  0xd4   :  { %267 = vrot.lane.b32.xlu1 %v244_v58, %s5301_s0  ;;  %v279_v5 = vsel %vm7776_vm4, %v264_v14, %v5871_v59 }
  0xd5   :  { %v384_v57 = vpop.permute.xlu1 %383 }
  0xd7   :  { %v382_v47 = vpop.permute.xlu0 %381 }
  0xd8   :  { %389 = vrot.lane.b32.xlu1 %v5544_v40, %s5304_s24  ;;  %v398_v32 = vsel %vm7777_vm6, %v5797_v62, %v382_v47  ;;  %v399_v30 = vsel %vm7777_vm6, %v382_v47, %v384_v57 }
  0xd9   :  { %v5176_v41 = vpop.permute.xlu1 %5175  ;;  %v679_v52 = vsel %vm7773_vm7, %v644_v37, %v399_v30 }
  0xda   :  { %v5178_v17 = vunpack.i.h.bf16 %v5176_v41  ;;  %v5177_v20 = vunpack.i.l.bf16 %v5176_v41 }
  0xdb   :  { %v5877_v63 = vpop.permute.xlu0 %5170 }
  0xdc   :  { %502 = vrot.lane.b32.xlu1 %v5554_v43, %s5306_s26  ;;  %v324_v43 = vsel %vm7775_vm5, %v5775_v42, %v5167_v6  ;;  %v446_v29 = vsel %vm7772_vm9, %v5783_v49, %v5177_v20  ;;  %v447_v35 = vsel %vm7772_vm9, %v5177_v20, %v5178_v17  ;;  %v5173_v42 = vunpack.i.h.bf16 %v5877_v63 }
  0xdd   :  { %v5881_v9 = vpop.permute.xlu1 %387  ;;  %v5172_v36 = vunpack.i.l.bf16 %v5877_v63  ;;  %v643_v19 = vsel %vm5659_vm2, %v616_v33, %v324_v43  ;;  %v278_v49 = vsel %vm7776_vm4, %v262_v38, %v264_v14  ;;  %v703_v53 = vsel %vm5684_vm8, %v679_v52, %v447_v35 }
  0xde   :  { %v675_v46 = vsel %vm7773_vm7, %v643_v19, %v398_v32  ;;  %v624_v33 = vsel %vm7774_vm1, %v586_v7, %v278_v49 }
  0xdf   :  { %v386_v22 = vpop.permute.xlu0 %385  ;;  %v702_v61 = vsel %vm5684_vm8, %v675_v46, %v446_v29  ;;  %v326_v10 = vsel %vm7775_vm5, %v5168_v39, %v5172_v36  ;;  %v327_v38 = vsel %vm7775_vm5, %v5172_v36, %v5173_v42  ;;  %v587_v39 = vsel %vm5597_vm3, %v5462_v50, %v182_v34 }
  0xe0   :  { %v400_v50 = vsel %vm7777_vm6, %v384_v57, %v386_v22  ;;  %v401_v24 = vsel %vm7777_vm6, %v386_v22, %v5881_v9  ;;  %v645_v45 = vsel %vm5659_vm2, %v624_v33, %v326_v10 }
  0xe1   :  { %v497_v27 = vpop.permute.xlu1 %496  ;;  %v683_v57 = vsel %vm7773_vm7, %v645_v45, %v400_v50 }
  0xe3   :  { %v495_v13 = vpop.permute.xlu0 %494 }
  0xe4   :  { %v511_v62 = vsel %vm7771_vm12, %v5805_v56, %v495_v13  ;;  %v512_v28 = vsel %vm7771_vm12, %v495_v13, %v497_v27 }
  0xe5   :  { %v5186_v51 = vpop.permute.xlu1 %5185  ;;  %v734_v58 = vsel %vm7770_vm10, %v702_v61, %v511_v62  ;;  %v738_v23 = vsel %vm7770_vm10, %v703_v53, %v512_v28  ;;  %v923_v61 = vsel %vm7774_vm1, %v586_v7, 1065369472 }
  0xe6   :  { %v5188_v0 = vunpack.i.h.bf16 %v5186_v51  ;;  %v5187_v56 = vunpack.i.l.bf16 %v5186_v51  ;;  %v924_v51 = vsel %vm7774_vm1, %v587_v39, 1065369472 }
  0xe7   :  { %v5924_v14 = vpop.permute.xlu0 %5180  ;;  %v4664_v53 = vcombine.low %v923_v61, %v924_v51 }
  0xe8   :  { %v5183_v47 = vunpack.i.h.bf16 %v5924_v14  ;;  %v5182_v41 = vunpack.i.l.bf16 %v5924_v14  ;;  %v559_v55 = vsel %vm7769_vm15, %v5832_v8, %v5187_v56  ;;  %v560_v6 = vsel %vm7769_vm15, %v5187_v56, %v5188_v0 }
  0xe9   :  { %v5939_v15 = vsel %vm5711_vm11, %v734_v58, %v559_v55  ;;  %v762_v20 = vsel %vm5711_vm11, %v738_v23, %v560_v6  ;;  %v628_v8 = vsel %vm7774_vm1, %v587_v39, %v279_v5  ;;  %v5959_v30 = vpop.permute.xlu1 %500  ;;  %v997_v23 = vld [vmem:[#allocation2 + $0x84] sm:$0x33] }
  0xea   :  { %v5946_v43 = vcombine.low %v5939_v15, %v762_v20  ;;  %v646_v31 = vsel %vm5659_vm2, %v628_v8, %v327_v38  ;;  %v448_v34 = vsel %vm7772_vm9, %v5178_v17, %v5182_v41  ;;  %v449_v32 = vsel %vm7772_vm9, %v5182_v41, %v5183_v47 }
  0xeb   :  { %v499_v48 = vpop.permute.xlu0 %498  ;;  %v687_v22 = vsel %vm7773_vm7, %v646_v31, %v401_v24  ;;  %v704_v17 = vsel %vm5684_vm8, %v683_v57, %v448_v34  ;;  %vm1146_vm7 = vcmask 1045504   ;;  %v5312_v31 = vmov 65535  }
  0xec   :  { %878 = vrot.lane.b32.xlu0 %v5946_v43, %s5310_s30  ;;  %836 = vrot.lane.b32.xlu1 %v5946_v43, %s5309_s29  ;;  %v513_v29 = vsel %vm7771_vm12, %v497_v27, %v499_v48  ;;  %v705_v35 = vsel %vm5684_vm8, %v687_v22, %v449_v32  ;;  %v514_v36 = vsel %vm7771_vm12, %v499_v48, %v5959_v30  ;;  %vm976_vm12 = vcmask 850944  }
  0xed   :  { %v742_v62 = vsel %vm7770_vm10, %v704_v17, %v513_v29  ;;  %v746_v28 = vsel %vm7770_vm10, %v705_v35, %v514_v36  ;;  %v1000_v35 = vld [vmem:[#allocation2 + $0x8c] sm:$0x33] }
  0xef   :  { %v5974_v13 = vpop.permute.xlu0 %5190 }
  0xf0   :  { %v5193_v19 = vunpack.i.h.bf16 %v5974_v13  ;;  %v5192_v37 = vunpack.i.l.bf16 %v5974_v13 }
  0xf2   :  { %v561_v27 = vsel %vm7769_vm15, %v5188_v0, %v5192_v37  ;;  %v562_v49 = vsel %vm7769_vm15, %v5192_v37, %v5193_v19  ;;  %vm994_vm15 = vsmask.f32 5376 }
  0xf3   :  { %v5986_v5 = vsel %vm5711_vm11, %v742_v62, %v561_v27  ;;  %v764_v46 = vsel %vm5711_vm11, %v746_v28, %v562_v49  ;;  %vm995_vm10 = vmand %vm993_vm14, %vm994_vm15  ;;  %vm849_vm15 = vcmask 982016   ;;  %vm1145_vm14 = vcmask 1044480  }
  0xf4   :  { %v5991_v52 = vcombine.low %v5986_v5, %v764_v46  ;;  %vm6002_vm9 = vmor %vm995_vm10, %vm5659_vm2  ;;  %vm891_vm10 = vcmask 916480   ;;  %v1147_v48 = vsel %vm1145_vm14, 4294967295, %v5312_v31  ;;  %vm7857_vm14 = vcmask 1041408  }
  0xf5   :  { %v6021_v27 = vsel %vm1146_vm7, %v1147_v48, 0  ;;  %vm1141_vm7 = vcmask 220160  }
  0xf6   :  { %880 = vrot.lane.b32.xlu0 %v5991_v52, %s5310_s30  ;;  %838 = vrot.lane.b32.xlu1 %v5991_v52, %s5309_s29 }
  0xfa   :  { %965 = vrot.lane.b32.xlu1 %v4664_v53, %s5308_s28 }
 0x105   :  { %v958_v0 = vpop.permute.xlu0 %957  ;;  %v960_v10 = vpop.permute.xlu1 %959 }
 0x106   :  { %v969_v56 = vrot.slane %v958_v0, 4  ;;  %v970_v38 = vrot.slane %v960_v10, 4 }
 0x108   :  { %v975_v41 = vsel %vm752_vm13, %v969_v56, %v970_v38 }
 0x109   :  { %v977_v55 = vsel %vm976_vm12, %v958_v0, %v975_v41 }
 0x10a   :  { %v998_v6 = vsel %vm6002_vm9, %v977_v55, %v997_v23 }
 0x10b   :  { %999 = vst [vmem:[#allocation2 + $0x84] sm:$0x33] %v998_v6 }
 0x112   :  { %v1034_v28 = vld [vmem:[#allocation2 + $0x84] sm:$0x33] }
 0x128   :  { %v831_v39 = vpop.permute.xlu0 %830 }
 0x129   :  { %v842_v20 = vrot.slane %v831_v39, 4 }
 0x12c   :  { %v833_v7 = vpop.permute.xlu1 %832  ;;  %v875_v33 = vpop.permute.xlu0 %874 }
 0x12d   :  { %v843_v8 = vrot.slane %v833_v7, 4  ;;  %v885_v34 = vrot.slane %v875_v33, 4 }
 0x12f   :  { %v848_v50 = vsel %vm752_vm13, %v842_v20, %v843_v8 }
 0x130   :  { %v850_v24 = vsel %vm849_vm15, %v831_v39, %v848_v50  ;;  %v873_v45 = vpop.permute.xlu1 %872  ;;  %v6012_v32 = vpop.permute.xlu0 %961 }
 0x131   :  { %v884_v57 = vrot.slane %v873_v45, 4  ;;  %v4667_v22 = vcombine.high %v5740_v16, %v850_v24  ;;  %v5295_v29 = vcombine.low %v5723_v12, %v850_v24  ;;  %v971_v17 = vrot.slane %v6012_v32, 4 }
 0x133   :  { %v890_v36 = vsel %vm752_vm13, %v884_v57, %v885_v34  ;;  %1182 = vmatprep.subr.bf16.mxu1 %v4667_v22  ;;  %v978_v37 = vsel %vm752_vm13, %v970_v38, %v971_v17 }
 0x134   :  { %v892_v62 = vsel %vm891_vm10, %v873_v45, %v890_v36  ;;  %1183 = vmatpush1.bf16.msra.mxu1 %v5295_v29  ;;  %v979_v49 = vsel %vm976_vm12, %v960_v10, %v978_v37  ;;  %v171_v16 = vpop.permute.xlu0 %170  ;;  %v1003_v37 = vld [vmem:[#allocation2 + $0x94] sm:$0x33] }
 0x135   :  { %v4678_v46 = vcombine.high %v892_v62, %v1034_v28  ;;  %v4677_v12 = vcombine.low %v892_v62, %v1034_v28  ;;  %v1001_v51 = vsel %vm6002_vm9, %v979_v49, %v1000_v35  ;;  %v183_v61 = vsel %vm172_vm0, %v5864_v54, %v171_v16 }
 0x136   :  { %v811_v53 = vsel %vm5597_vm3, %v5779_v21, %v171_v16  ;;  %1002 = vst [vmem:[#allocation2 + $0x8c] sm:$0x33] %v1001_v51  ;;  %v588_v0 = vsel %vm5597_vm3, %v5544_v40, %v183_v61  ;;  %v6041_v21 = vld [vmem:[%s7764_s1] sm:$0xf]  ;;  %s5315_s1 = smov 119  }
 0x137   :  { %v926_v56 = vsel %vm7774_vm1, %v811_v53, 1065369472  ;;  %v1153_v10 = vand.u32 %v4678_v46, %v6021_v27  ;;  %v1150_v38 = vand.u32 %v4677_v12, %v6021_v27  ;;  %v925_v23 = vsel %vm7774_vm1, %v588_v0, 1065369472 }
 0x138   :  { %v316_v41 = vpop.permute.xlu0 %315  ;;  %v4665_v55 = vcombine.low %v925_v23, %v926_v56 }
 0x139   :  { %1184 = vmatprep.subr.bf16.mxu1 %v1153_v10  ;;  %v328_v46 = vsel %vm7775_vm5, %v5173_v42, %v316_v41  ;;  %vm7859_vm5 = vcmask 1006592  }
 0x13a   :  { %1185 = vmatpush1.bf16.msra.mxu1 %v1150_v38  ;;  %967 = vrot.lane.b32.xlu0 %v4665_v55, %s5308_s28 }
 0x13c   :  { %v438_v40 = vpop.permute.xlu0 %437 }
 0x13d   :  { %4688 = vmatmul.mubr.msk.bf16.vlgmr.msra.gmra.mrb[0].mxu1 %vm1141_vm7, %v6041_v21  ;;  %v450_v63 = vsel %vm7859_vm5, %v5183_v47, %v438_v40 }
 0x13e   :  { %v6046_v54 = vpop.permute.xlu1 %834  ;;  %1255 = vmatprep.mubr.bf16.mxu1 %v7803_v1 }
 0x13f   :  { %v844_v6 = vrot.slane %v6046_v54, 4 }
 0x140   :  { %v551_v20 = vpop.permute.xlu0 %550 }
 0x141   :  { %v851_v39 = vsel %vm752_vm13, %v843_v8, %v844_v6  ;;  %v1035_v8 = vld [vmem:[#allocation2 + $0x8c] sm:$0x33] }
 0x142   :  { %v852_v50 = vsel %vm849_vm15, %v833_v7, %v851_v39  ;;  %v877_v24 = vpop.permute.xlu1 %876 }
 0x143   :  { %v886_v45 = vrot.slane %v877_v24, 4  ;;  %v4669_v31 = vcombine.high %v5762_v2, %v852_v50  ;;  %v5296_v48 = vcombine.low %v5757_v11, %v852_v50 }
 0x144   :  { %v6055_v22 = vpop.permute.xlu0 %963 }
 0x145   :  { %v893_v57 = vsel %vm752_vm13, %v885_v34, %v886_v45  ;;  %1223 = vmatprep.subr.bf16.mxu1 %v4669_v31  ;;  %v972_v35 = vrot.slane %v6055_v22, 4 }
 0x146   :  { %v894_v29 = vsel %vm891_vm10, %v875_v33, %v893_v57  ;;  %v268_v36 = vpop.permute.xlu1 %267  ;;  %1224 = vmatpush1.bf16.msra.mxu1 %v5296_v48 }
 0x147   :  { %v280_v7 = vsel %vm7776_vm4, %v5871_v59, %v268_v36  ;;  %v814_v2 = vsel %vm7774_vm1, %v811_v53, %v268_v36  ;;  %v4680_v62 = vcombine.high %v894_v29, %v1035_v8  ;;  %v4679_v11 = vcombine.low %v894_v29, %v1035_v8 }
 0x148   :  { %v980_v34 = vsel %vm752_vm13, %v971_v17, %v972_v35  ;;  %v632_v28 = vsel %vm7774_vm1, %v588_v0, %v280_v7  ;;  %v816_v33 = vsel %vm5659_vm2, %v814_v2, %v316_v41  ;;  %vm7858_vm1 = vmmov %vm7857_vm14  ;;  %vm7860_vm4 = vcmask 998400   ;;  %v1006_v2 = vld [vmem:[#allocation2 + $0x9c] sm:$0x33] }
 0x149   :  { %v981_v49 = vsel %vm976_vm12, %v6012_v32, %v980_v34  ;;  %v1159_v16 = vand.u32 %v4680_v62, %v6021_v27  ;;  %v1156_v59 = vand.u32 %v4679_v11, %v6021_v27  ;;  %v647_v51 = vsel %vm5659_vm2, %v632_v28, %v328_v46 }
 0x14a   :  { %v1004_v12 = vsel %vm6002_vm9, %v981_v49, %v1003_v37  ;;  %v390_v17 = vpop.permute.xlu1 %389 }
 0x14b   :  { %1005 = vst [vmem:[#allocation2 + $0x94] sm:$0x33] %v1004_v12  ;;  %v402_v61 = vsel %vm7777_vm6, %v5881_v9, %v390_v17  ;;  %v819_v32 = vsel %vm7857_vm14, %v816_v33, %v390_v17  ;;  %1225 = vmatprep.subr.bf16.mxu1 %v1159_v16  ;;  %vm7861_vm6 = vcmask 1042432   ;;  %v1012_v17 = vld [vmem:[#allocation2 + $0xac] sm:$0x3]  ;;  %vm7871_vm14 = vcmask 1022976  }
 0x14c   :  { %v691_v53 = vsel %vm7858_vm1, %v647_v51, %v402_v61  ;;  %1226 = vmatpush1.bf16.msra.mxu1 %v1156_v59  ;;  %v821_v42 = vsel %vm5684_vm8, %v819_v32, %v438_v40  ;;  %vm7862_vm1 = vcmask 990208   ;;  %vm7863_vm5 = vmmov %vm7861_vm6  ;;  %v1009_v61 = vld [vmem:[#allocation2 + $0xa4] sm:$0x33] }
 0x14d   :  { %v706_v56 = vsel %vm5684_vm8, %v691_v53, %v450_v63  ;;  %v563_v14 = vsel %vm7862_vm1, %v5193_v19, %v551_v20  ;;  %vm7872_vm1 = vmmov %vm7871_vm14 }
 0x14e   :  { %v503_v0 = vpop.permute.xlu1 %502 }
 0x14f   :  { %v515_v9 = vsel %vm7860_vm4, %v5959_v30, %v503_v0  ;;  %v824_v10 = vsel %vm7861_vm6, %v821_v42, %v503_v0  ;;  %4689 = vmatmul.mubr.msk.bf16.vlgmr.msra.gmra.mrb[4].mxu1 %vm1141_vm7, %v6041_v21  ;;  %vm5314_vm4 = vmmov 0   ;;  %vm2463_vm6 = vcmask 1044484  }
 0x150   :  { %v750_v47 = vsel %vm7863_vm5, %v706_v56, %v515_v9  ;;  %v826_v38 = vsel %vm5711_vm11, %v824_v10, %v551_v20  ;;  %1337 = vmatprep.mubr.bf16.mxu1 %v7803_v1  ;;  %vm7873_vm5 = vcmask 1014784  }
 0x151   :  { %v765_v26 = vsel %vm5711_vm11, %v750_v47, %v563_v14  ;;  %vm7869_vm11 = vcmask 1031168  }
 0x152   :  { %v4658_v30 = vcombine.low %v765_v26, %v765_v26  ;;  %v4659_v23 = vcombine.low %v765_v26, %v826_v38  ;;  %v1036_v50 = vld [vmem:[#allocation2 + $0x94] sm:$0x33] }
 0x154   :  { %805 = vst [vmem:[#allocation2 + $0x28] sm:$0xf] %v4658_v30  ;;  %840 = vrot.lane.b32.xlu1 %v4659_v23, %s5309_s29 }
 0x158   :  { %882 = vrot.lane.b32.xlu1 %v4659_v23, %s5310_s30 }
 0x15e   :  { %v879_v13 = vpop.permute.xlu0 %878  ;;  %v837_v41 = vpop.permute.xlu1 %836 }
 0x15f   :  { %v887_v19 = vrot.slane %v879_v13, 4  ;;  %v845_v55 = vrot.slane %v837_v41, 4 }
 0x161   :  { %v895_v40 = vsel %vm752_vm13, %v886_v45, %v887_v19  ;;  %v853_v39 = vsel %vm752_vm13, %v844_v6, %v845_v55 }
 0x162   :  { %v896_v20 = vsel %vm891_vm10, %v877_v24, %v895_v40  ;;  %v854_v3 = vsel %vm849_vm15, %v6046_v54, %v853_v39 }
 0x163   :  { %v4671_v31 = vcombine.high %v5851_v44, %v854_v3  ;;  %v5297_v48 = vcombine.low %v5843_v25, %v854_v3  ;;  %v4682_v57 = vcombine.high %v896_v20, %v1036_v50  ;;  %v4681_v29 = vcombine.low %v896_v20, %v1036_v50 }
 0x165   :  { %1264 = vmatprep.subr.bf16.mxu0 %v4671_v31  ;;  %v1165_v36 = vand.u32 %v4682_v57, %v6021_v27  ;;  %v1162_v6 = vand.u32 %v4681_v29, %v6021_v27 }
 0x166   :  { %1265 = vmatpush1.bf16.msra.mxu0 %v5297_v48 }
 0x167   :  { %1266 = vmatprep.subr.bf16.mxu0 %v1165_v36 }
 0x168   :  { %v839_v45 = vpop.permute.xlu1 %838  ;;  %v881_v62 = vpop.permute.xlu0 %880 }
 0x169   :  { %v846_v8 = vrot.slane %v839_v45, 4  ;;  %v888_v33 = vrot.slane %v881_v62, 4 }
 0x16a   :  { %1267 = vmatpush1.bf16.msra.mxu0 %v1162_v6 }
 0x16b   :  { %v855_v24 = vsel %vm752_vm13, %v845_v55, %v846_v8 }
 0x16c   :  { %v856_v54 = vsel %vm849_vm15, %v837_v41, %v855_v24  ;;  %v966_v37 = vpop.permute.xlu1 %965 }
 0x16d   :  { %v973_v44 = vrot.slane %v966_v37, 4  ;;  %4690 = vmatmul.mubr.msk.bf16.vlgmr.msra.gmra.mrb[0].mxu0 %vm1141_vm7, %v6041_v21  ;;  %v4673_v25 = vcombine.high %v5946_v43, %v856_v54  ;;  %v5298_v7 = vcombine.low %v5939_v15, %v856_v54  ;;  %v897_v15 = vsel %vm752_vm13, %v887_v19, %v888_v33 }
 0x16e   :  { %1378 = vmatprep.mubr.bf16.mxu0 %v7803_v1  ;;  %v898_v43 = vsel %vm891_vm10, %v879_v13, %v897_v15 }
 0x16f   :  { %v982_v11 = vsel %vm752_vm13, %v972_v35, %v973_v44  ;;  %1305 = vmatprep.subr.bf16.mxu1 %v4673_v25 }
 0x170   :  { %v983_v34 = vsel %vm976_vm12, %v6055_v22, %v982_v11  ;;  %1306 = vmatpush1.bf16.msra.mxu1 %v5298_v7  ;;  %v5313_v22 = vmov 0.0  }
 0x171   :  { %v1007_v28 = vsel %vm6002_vm9, %v983_v34, %v1006_v2 }
 0x172   :  { %1008 = vst [vmem:[#allocation2 + $0x9c] sm:$0x33] %v1007_v28 }
 0x179   :  { %v1037_v49 = vld [vmem:[#allocation2 + $0x9c] sm:$0x33] }
 0x17a   :  { %v4684_v16 = vcombine.high %v898_v43, %v1037_v49  ;;  %v4683_v59 = vcombine.low %v898_v43, %v1037_v49 }
 0x17c   :  { %v1171_v46 = vand.u32 %v4684_v16, %v6021_v27  ;;  %v1168_v35 = vand.u32 %v4683_v59, %v6021_v27 }
 0x17e   :  { %1307 = vmatprep.subr.bf16.mxu1 %v1171_v46 }
 0x17f   :  { %1308 = vmatpush1.bf16.msra.mxu1 %v1168_v35 }
 0x180   :  { %5056 = vmatprep.subr.bf16.mxu1 %v5313_v22 }
 0x182   :  { %4691 = vmatmul.mubr.msk.bf16.vlgmr.msra.gmra.mrb[8].mxu1 %vm1141_vm7, %v6041_v21 }
 0x183   :  { %5060 = vmatprep.mubr.msk.bf16.mxu1 %vm5314_vm4, %v5313_v22  ;;  %vm7874_vm4 = vmmov %vm7873_vm5 }
 0x1ac   :  { %v968_v12 = vpop.permute.xlu0 %967 }
 0x1ad   :  { %v974_v51 = vrot.slane %v968_v12, 4 }
 0x1af   :  { %v984_v32 = vsel %vm752_vm13, %v973_v44, %v974_v51  ;;  %v986_v53 = vsel %vm976_vm12, %v968_v12, %v974_v51 }
 0x1b0   :  { %v985_v63 = vsel %vm976_vm12, %v966_v37, %v984_v32  ;;  %v1013_v42 = vsel %vm5659_vm2, %v986_v53, %v1012_v17 }
 0x1b1   :  { %v1010_v0 = vsel %vm6002_vm9, %v985_v63, %v1009_v61  ;;  %1014 = vst [vmem:[#allocation2 + $0xac] sm:$0x3] %v1013_v42  ;;  %vm2464_vm9 = vsmask.f32 4352 }
 0x1b2   :  { %1011 = vst [vmem:[#allocation2 + $0xa4] sm:$0x33] %v1010_v0  ;;  %vm2465_vm2 = vmand %vm2463_vm6, %vm2464_vm9  ;;  %vm7875_vm6 = vcmask 1006592  }
 0x1b3   :  { %vm6382_vm8 = vmor %vm2465_vm2, %vm5597_vm3  ;;  %vm3303_vm3 = vcmask 662528   ;;  %vm7877_vm2 = vcmask 998400  }
 0x1b4   :  { %vm7876_vm9 = vmmov %vm7875_vm6 }
 0x1b9   :  { %v1038_v41 = vld [vmem:[#allocation2 + $0xa4] sm:$0x33] }
 0x1c6   :  { %v841_v56 = vpop.permute.xlu1 %840 }
 0x1c7   :  { %v847_v9 = vrot.slane %v841_v56, 4 }
 0x1c9   :  { %v857_v10 = vsel %vm752_vm13, %v846_v8, %v847_v9  ;;  %v859_v14 = vsel %vm849_vm15, %v841_v56, %v847_v9 }
 0x1ca   :  { %v858_v47 = vsel %vm849_vm15, %v839_v45, %v857_v10  ;;  %871 = vst [vmem:[#allocation2 + $0x54] sm:$0xf] %v859_v14  ;;  %v883_v38 = vpop.permute.xlu1 %882 }
 0x1cb   :  { %v889_v26 = vrot.slane %v883_v38, 4  ;;  %v4675_v60 = vcombine.high %v5991_v52, %v858_v47  ;;  %v5299_v58 = vcombine.low %v5986_v5, %v858_v47 }
 0x1cd   :  { %v899_v30 = vsel %vm752_vm13, %v888_v33, %v889_v26  ;;  %v901_v23 = vsel %vm891_vm10, %v883_v38, %v889_v26  ;;  %1346 = vmatprep.subr.bf16.mxu0 %v4675_v60 }
 0x1ce   :  { %v900_v13 = vsel %vm891_vm10, %v881_v62, %v899_v30  ;;  %913 = vst [vmem:[#allocation2 + $0x80] sm:$0xf] %v901_v23  ;;  %1347 = vmatpush1.bf16.msra.mxu0 %v5299_v58 }
 0x1cf   :  { %v4686_v19 = vcombine.high %v900_v13, %v1038_v41  ;;  %v4685_v55 = vcombine.low %v900_v13, %v1038_v41 }
 0x1d1   :  { %v5197_v40 = vld [vmem:[#allocation2 + $0x28] ss:$44 sps:$4 sm:$0xff]   ;;  %v1177_v39 = vand.u32 %v4686_v19, %v6021_v27  ;;  %v1174_v20 = vand.u32 %v4685_v55, %v6021_v27 }
 0x1d2   :  { %5057 = vmatpush3.bf16.msra.mxu1 %v5197_v40 }
 0x1d3   :  { %1348 = vmatprep.subr.bf16.mxu0 %v1177_v39  ;;  %5058 = vmatprep.subr.bf16.mxu1 %v5313_v22 }
 0x1d4   :  { %1349 = vmatpush1.bf16.msra.mxu0 %v1174_v20 }
 0x1d5   :  { %v5198_v5 = vld [vmem:[#allocation2 + $0x80] ss:$44 sps:$4 sm:$0x3f]  }
 0x1d6   :  { %v1180_v52 = vand.u32 %v5198_v5, %v6021_v27 }
 0x1d7   :  { %4692 = vmatmul.mubr.msk.bf16.vlgmr.msra.gmra.mrb[4].mxu0 %vm1141_vm7, %v6041_v21 }
 0x1d8   :  { %5059 = vmatpush3.bf16.msra.mxu1 %v1180_v52 }
 0x1db   :  { %5061 = vmatmul.mubr.msk.bf16.vlgmr.msra.gmra.mrb[12].mxu1 %vm1141_vm7, %v6041_v21  ;;  %vm7870_vm7 = vmmov %vm7869_vm11 }
 0x210   :  { %v1216_v3 = vpop.f32.mrb[0].mxu1 }
 0x211   :  { %v1427_v50 = vmul.f32 0.1, %v1216_v3  ;;  %v1218_v31 = vpop.f32.mrb[1].mxu1 }
 0x212   :  { %v1428_v48 = vmul.f32 0.1, %v1218_v31  ;;  %v1220_v57 = vpop.f32.mrb[2].mxu1 }
 0x213   :  { %v1438_v29 = vmax.f32 %v1216_v3, %v1427_v50  ;;  %v1221_v36 = vpop.f32.mrb[3].mxu1 }
 0x214   :  { %v1439_v45 = vmax.f32 %v1218_v31, %v1428_v48 }
 0x216   :  { %v6157_v6 = vpack.c.bf16 %v1439_v45, %v1438_v29 }
 0x218   :  { %1498 = vrot.lane.b32.xlu0 %v6157_v6, %s5302_s22 }
 0x21c   :  { %1536 = vrot.lane.b32.xlu0 %v6157_v6, %s5301_s0 }
 0x220   :  { %1574 = vrot.lane.b32.xlu0 %v6157_v6, %s5303_s23 }
 0x222   :  { %v1257_v27 = vpop.f32.mrb[4].mxu1 }
 0x223   :  { %v1429_v21 = vmul.f32 0.1, %v1257_v27  ;;  %v1259_v8 = vpop.f32.mrb[5].mxu1 }
 0x224   :  { %1612 = vrot.lane.b32.xlu0 %v6157_v6, %s5304_s24  ;;  %v1430_v24 = vmul.f32 0.1, %v1259_v8  ;;  %v1261_v54 = vpop.f32.mrb[6].mxu1 }
 0x225   :  { %v1440_v37 = vmax.f32 %v1257_v27, %v1429_v21  ;;  %v1262_v44 = vpop.f32.mrb[7].mxu1 }
 0x226   :  { %v1441_v25 = vmax.f32 %v1259_v8, %v1430_v24 }
 0x228   :  { %1650 = vrot.lane.b32.xlu0 %v6157_v6, %s5305_s25  ;;  %v6169_v7 = vpack.c.bf16 %v1441_v25, %v1440_v37  ;;  %v2467_v37 = vld [vmem:[#allocation2 + $0x478] sm:$0x11] }
 0x229   :  { %v2468_v44 = vsel %vm6382_vm8, 1065369472, %v2467_v37 }
 0x22a   :  { %2469 = vst [vmem:[#allocation2 + $0x478] sm:$0x11] %v2468_v44 }
 0x22c   :  { %1688 = vrot.lane.b32.xlu0 %v6157_v6, %s5306_s26 }
 0x230   :  { %1726 = vrot.lane.b32.xlu0 %v6157_v6, %s5307_s27 }
 0x234   :  { %1764 = vrot.lane.b32.xlu0 %v6157_v6, %s5309_s29 }
 0x238   :  { %1802 = vrot.lane.b32.xlu0 %v6157_v6, %s5315_s1 }
 0x23c   :  { %1841 = vrot.lane.b32.xlu0 %v6157_v6, %s5316_s8 }
 0x240   :  { %1880 = vrot.lane.b32.xlu0 %v6157_v6, %s5317_s9  ;;  %v1298_v2 = vpop.f32.mrb[0].mxu0 }
 0x241   :  { %v1431_v62 = vmul.f32 0.1, %v1298_v2  ;;  %v1300_v11 = vpop.f32.mrb[1].mxu0 }
 0x242   :  { %v1432_v34 = vmul.f32 0.1, %v1300_v11  ;;  %v1302_v28 = vpop.f32.mrb[2].mxu0 }
 0x243   :  { %v1442_v33 = vmax.f32 %v1298_v2, %v1431_v62  ;;  %v1303_v15 = vpop.f32.mrb[3].mxu0  ;;  %v5201_v28 = vld [vmem:[%s7765_s2 + $0x4] ss:$8 sps:$4 sm:$0xff]  }
 0x244   :  { %v1443_v43 = vmax.f32 %v1300_v11, %v1432_v34  ;;  %1919 = vrot.lane.b32.xlu0 %v6157_v6, %s5318_s10  ;;  %4842 = vmatprep.mubr.msk.bf16.mxu0 %vm3303_vm3, %v5201_v28 }
 0x245   :  { %4843 = vmatprep.mubr.msk.bf16.mxu1 %vm3303_vm3, %v5201_v28 }
 0x246   :  { %v6185_v49 = vpack.c.bf16 %v1443_v43, %v1442_v33 }
 0x248   :  { %1492 = vst [vmem:[#allocation2 + $0x10] sm:$0xff] %v6185_v49  ;;  %1958 = vrot.lane.b32.xlu0 %v6157_v6, %s5319_s11  ;;  %1578 = vrot.lane.b32.xlu1 %v6185_v49, %s5303_s23 }
 0x24c   :  { %1997 = vrot.lane.b32.xlu0 %v6157_v6, %s5320_s12  ;;  %1654 = vrot.lane.b32.xlu1 %v6185_v49, %s5305_s25 }
 0x250   :  { %2036 = vrot.lane.b32.xlu0 %v6157_v6, %s5321_s13  ;;  %1730 = vrot.lane.b32.xlu1 %v6185_v49, %s5307_s27 }
 0x254   :  { %2075 = vrot.lane.b32.xlu0 %v6157_v6, %s5310_s30  ;;  %1806 = vrot.lane.b32.xlu1 %v6185_v49, %s5315_s1 }
 0x255   :  { %v1339_v16 = vpop.f32.mrb[8].mxu1 }
 0x256   :  { %v1433_v59 = vmul.f32 0.1, %v1339_v16  ;;  %v1341_v46 = vpop.f32.mrb[9].mxu1 }
 0x257   :  { %v1434_v35 = vmul.f32 0.1, %v1341_v46  ;;  %v1343_v22 = vpop.f32.mrb[10].mxu1 }
 0x258   :  { %2113 = vrot.lane.b32.xlu0 %v6157_v6, %s5322_s14  ;;  %1884 = vrot.lane.b32.xlu1 %v6185_v49, %s5317_s9  ;;  %v1444_v12 = vmax.f32 %v1339_v16, %v1433_v59  ;;  %v1344_v17 = vpop.f32.mrb[11].mxu1 }
 0x259   :  { %v1445_v51 = vmax.f32 %v1341_v46, %v1434_v35 }
 0x25b   :  { %v6212_v61 = vpack.c.bf16 %v1445_v51, %v1444_v12  ;;  %v2470_v51 = vld [vmem:[#allocation2 + $0x480] sm:$0x11] }
 0x25c   :  { %2152 = vrot.lane.b32.xlu0 %v6157_v6, %s5323_s15  ;;  %1962 = vrot.lane.b32.xlu1 %v6185_v49, %s5319_s11 }
 0x25d   :  { %1493 = vst [vmem:[#allocation2 + $0x18] sm:$0xff] %v6212_v61 }
 0x260   :  { %2191 = vrot.lane.b32.xlu0 %v6157_v6, %s5324_s16  ;;  %2040 = vrot.lane.b32.xlu1 %v6185_v49, %s5321_s13 }
 0x264   :  { %2230 = vrot.lane.b32.xlu0 %v6157_v6, %s5325_s17  ;;  %2117 = vrot.lane.b32.xlu1 %v6185_v49, %s5322_s14 }
 0x268   :  { %2269 = vrot.lane.b32.xlu0 %v6157_v6, %s5326_s18  ;;  %2195 = vrot.lane.b32.xlu1 %v6185_v49, %s5324_s16 }
 0x26c   :  { %2308 = vrot.lane.b32.xlu0 %v6157_v6, %s5327_s19  ;;  %2273 = vrot.lane.b32.xlu1 %v6185_v49, %s5326_s18 }
 0x270   :  { %2347 = vrot.lane.b32.xlu0 %v6157_v6, %s5328_s20  ;;  %2351 = vrot.lane.b32.xlu1 %v6185_v49, %s5328_s20 }
 0x274   :  { %2386 = vrot.lane.b32.xlu0 %v6157_v6, %s5308_s28  ;;  %2428 = vrot.lane.b32.xlu1 %v6185_v49, %s5329_s21 }
 0x278   :  { %2424 = vrot.lane.b32.xlu0 %v6157_v6, %s5329_s21  ;;  %1500 = vrot.lane.b32.xlu1 %v6169_v7, %s5302_s22 }
 0x27c   :  { %1538 = vrot.lane.b32.xlu1 %v6169_v7, %s5301_s0  ;;  %1502 = vrot.lane.b32.xlu0 %v6185_v49, %s5302_s22 }
 0x280   :  { %1576 = vrot.lane.b32.xlu1 %v6169_v7, %s5303_s23  ;;  %1540 = vrot.lane.b32.xlu0 %v6185_v49, %s5301_s0 }
 0x284   :  { %1614 = vrot.lane.b32.xlu1 %v6169_v7, %s5304_s24  ;;  %1616 = vrot.lane.b32.xlu0 %v6185_v49, %s5304_s24 }
 0x288   :  { %1652 = vrot.lane.b32.xlu1 %v6169_v7, %s5305_s25  ;;  %1692 = vrot.lane.b32.xlu0 %v6185_v49, %s5306_s26 }
 0x28a   :  { %v6259_v32 = vpop.permute.xlu0 %1498 }
 0x28b   :  { %v1510_v22 = vrot.slane %v6259_v32, 4 }
 0x28c   :  { %1690 = vrot.lane.b32.xlu1 %v6169_v7, %s5306_s26  ;;  %1768 = vrot.lane.b32.xlu0 %v6185_v49, %s5309_s29 }
 0x28e   :  { %v6265_v53 = vpop.permute.xlu0 %1536 }
 0x290   :  { %1728 = vrot.lane.b32.xlu1 %v6169_v7, %s5307_s27  ;;  %1845 = vrot.lane.b32.xlu0 %v6185_v49, %s5316_s8 }
 0x292   :  { %v6271_v63 = vpop.permute.xlu0 %1574 }
 0x294   :  { %1766 = vrot.lane.b32.xlu1 %v6169_v7, %s5309_s29  ;;  %1923 = vrot.lane.b32.xlu0 %v6185_v49, %s5318_s10 }
 0x296   :  { %v6277_v42 = vpop.permute.xlu0 %1612 }
 0x298   :  { %1804 = vrot.lane.b32.xlu1 %v6169_v7, %s5315_s1  ;;  %2001 = vrot.lane.b32.xlu0 %v6185_v49, %s5320_s12 }
 0x29a   :  { %v6283_v0 = vpop.permute.xlu0 %1650 }
 0x29c   :  { %1843 = vrot.lane.b32.xlu1 %v6169_v7, %s5316_s8  ;;  %2079 = vrot.lane.b32.xlu0 %v6185_v49, %s5310_s30 }
 0x29e   :  { %v6289_v56 = vpop.permute.xlu0 %1688 }
 0x2a0   :  { %1882 = vrot.lane.b32.xlu1 %v6169_v7, %s5317_s9  ;;  %2156 = vrot.lane.b32.xlu0 %v6185_v49, %s5323_s15 }
 0x2a2   :  { %v6295_v9 = vpop.permute.xlu0 %1726 }
 0x2a4   :  { %1921 = vrot.lane.b32.xlu1 %v6169_v7, %s5318_s10  ;;  %2234 = vrot.lane.b32.xlu0 %v6185_v49, %s5325_s17 }
 0x2a6   :  { %v6301_v10 = vpop.permute.xlu0 %1764 }
 0x2a8   :  { %1960 = vrot.lane.b32.xlu1 %v6169_v7, %s5319_s11  ;;  %2312 = vrot.lane.b32.xlu0 %v6185_v49, %s5327_s19 }
 0x2aa   :  { %v6307_v14 = vpop.permute.xlu0 %1802  ;;  %v1380_v47 = vpop.f32.mrb[4].mxu0 }
 0x2ab   :  { %v1435_v38 = vmul.f32 0.1, %v1380_v47  ;;  %v1382_v26 = vpop.f32.mrb[5].mxu0 }
 0x2ac   :  { %v1436_v60 = vmul.f32 0.1, %v1382_v26  ;;  %1999 = vrot.lane.b32.xlu1 %v6169_v7, %s5320_s12  ;;  %2390 = vrot.lane.b32.xlu0 %v6185_v49, %s5308_s28  ;;  %v1384_v58 = vpop.f32.mrb[6].mxu0 }
 0x2ad   :  { %v1446_v30 = vmax.f32 %v1380_v47, %v1435_v38  ;;  %v1385_v23 = vpop.f32.mrb[7].mxu0  ;;  %v1548_v47 = vrot.slane %v6265_v53, 4  ;;  %v2471_v58 = vsel %vm6382_vm8, 1065369472, %v2470_v51 }
 0x2ae   :  { %v1447_v13 = vmax.f32 %v1382_v26, %v1436_v60  ;;  %v6313_v41 = vpop.permute.xlu0 %1841  ;;  %v6315_v19 = vpop.f32.mrb[12].mxu1  ;;  %2472 = vst [vmem:[#allocation2 + $0x480] sm:$0x11] %v2471_v58  ;;  %v1624_v58 = vrot.slane %v6277_v42, 4 }
 0x2af   :  { %v5062_v40 = vpop.f32.mrb[13].mxu1 }
 0x2b0   :  { %v6317_v55 = vpack.c.bf16 %v1447_v13, %v1446_v30  ;;  %2038 = vrot.lane.b32.xlu1 %v6169_v7, %s5321_s13  ;;  %v1424_v39 = vpop.f32.mrb[14].mxu1 }
 0x2b1   :  { %v5063_v5 = vpop.f32.mrb[15].mxu1 }
 0x2b2   :  { %1494 = vst [vmem:[#allocation2 + $0x20] sm:$0xff] %v6317_v55  ;;  %v6322_v20 = vpop.permute.xlu0 %1880  ;;  %1506 = vrot.lane.b32.xlu0 %v6317_v55, %s5302_s22  ;;  %v1586_v5 = vrot.slane %v6271_v63, 4 }
 0x2b4   :  { %2077 = vrot.lane.b32.xlu1 %v6169_v7, %s5310_s30 }
 0x2b6   :  { %v6328_v52 = vpop.permute.xlu0 %1919  ;;  %1544 = vrot.lane.b32.xlu0 %v6317_v55, %s5301_s0 }
 0x2b8   :  { %2115 = vrot.lane.b32.xlu1 %v6169_v7, %s5322_s14 }
 0x2ba   :  { %v6334_v3 = vpop.permute.xlu0 %1958  ;;  %1620 = vrot.lane.b32.xlu0 %v6317_v55, %s5304_s24  ;;  %v6338_v50 = vpop.permute.xlu1 %1578 }
 0x2bb   :  { %v7780_v37 = vrot.slane %v6338_v50, 4 }
 0x2bc   :  { %2154 = vrot.lane.b32.xlu1 %v6169_v7, %s5323_s15 }
 0x2be   :  { %v6342_v31 = vpop.permute.xlu0 %1997  ;;  %1696 = vrot.lane.b32.xlu0 %v6317_v55, %s5306_s26  ;;  %v6346_v48 = vpop.permute.xlu1 %1654 }
 0x2c0   :  { %2193 = vrot.lane.b32.xlu1 %v6169_v7, %s5324_s16 }
 0x2c2   :  { %v6350_v57 = vpop.permute.xlu0 %2036  ;;  %1772 = vrot.lane.b32.xlu0 %v6317_v55, %s5309_s29  ;;  %v6354_v29 = vpop.permute.xlu1 %1730 }
 0x2c4   :  { %2232 = vrot.lane.b32.xlu1 %v6169_v7, %s5325_s17 }
 0x2c6   :  { %v6358_v36 = vpop.permute.xlu0 %2075  ;;  %1849 = vrot.lane.b32.xlu0 %v6317_v55, %s5316_s8  ;;  %v6362_v45 = vpop.permute.xlu1 %1806 }
 0x2c8   :  { %2271 = vrot.lane.b32.xlu1 %v6169_v7, %s5326_s18 }
 0x2ca   :  { %v6366_v27 = vpop.permute.xlu0 %2113  ;;  %1927 = vrot.lane.b32.xlu0 %v6317_v55, %s5318_s10  ;;  %v6370_v21 = vpop.permute.xlu1 %1884 }
 0x2cc   :  { %2310 = vrot.lane.b32.xlu1 %v6169_v7, %s5327_s19 }
 0x2ce   :  { %v6374_v8 = vpop.permute.xlu0 %2152  ;;  %2005 = vrot.lane.b32.xlu0 %v6317_v55, %s5320_s12  ;;  %v6378_v24 = vpop.permute.xlu1 %1962 }
 0x2d0   :  { %2349 = vrot.lane.b32.xlu1 %v6169_v7, %s5328_s20 }
 0x2d2   :  { %v6390_v25 = vpop.permute.xlu0 %2191  ;;  %2083 = vrot.lane.b32.xlu0 %v6317_v55, %s5310_s30  ;;  %v6394_v2 = vpop.permute.xlu1 %2040 }
 0x2d4   :  { %2388 = vrot.lane.b32.xlu1 %v6169_v7, %s5308_s28 }
 0x2d6   :  { %v6398_v18 = vpop.permute.xlu0 %2230  ;;  %2160 = vrot.lane.b32.xlu0 %v6317_v55, %s5323_s15  ;;  %v6402_v62 = vpop.permute.xlu1 %2117 }
 0x2d8   :  { %2426 = vrot.lane.b32.xlu1 %v6169_v7, %s5329_s21 }
 0x2da   :  { %v6406_v11 = vpop.permute.xlu0 %2269  ;;  %2238 = vrot.lane.b32.xlu0 %v6317_v55, %s5325_s17  ;;  %v6410_v34 = vpop.permute.xlu1 %2195 }
 0x2dc   :  { %1582 = vrot.lane.b32.xlu1 %v6317_v55, %s5303_s23 }
 0x2de   :  { %v6417_v33 = vpop.permute.xlu0 %2308  ;;  %v6419_v15 = vpop.permute.xlu1 %2273  ;;  %1542 = vrot.lane.b32.xlu0 %v6212_v61, %s5301_s0 }
 0x2df   :  { %7866 = vst [vmem:[#allocation4_spill] sm:$0xff] %v6419_v15 }
 0x2e0   :  { %1658 = vrot.lane.b32.xlu1 %v6317_v55, %s5305_s25 }
 0x2e2   :  { %v6427_v43 = vpop.permute.xlu0 %2347  ;;  %v6429_v49 = vpop.permute.xlu1 %2351  ;;  %1618 = vrot.lane.b32.xlu0 %v6212_v61, %s5304_s24 }
 0x2e3   :  { %7867 = vst [vmem:[#allocation5_spill] sm:$0xff] %v6429_v49 }
 0x2e4   :  { %1734 = vrot.lane.b32.xlu1 %v6317_v55, %s5307_s27 }
 0x2e6   :  { %v6435_v16 = vpop.permute.xlu0 %2386  ;;  %v6437_v59 = vpop.permute.xlu1 %2428  ;;  %1694 = vrot.lane.b32.xlu0 %v6212_v61, %s5306_s26 }
 0x2e7   :  { %7868 = vst [vmem:[#allocation6_spill] sm:$0xff] %v6437_v59 }
 0x2e8   :  { %1810 = vrot.lane.b32.xlu1 %v6317_v55, %s5315_s1 }
 0x2ea   :  { %v6443_v46 = vpop.permute.xlu0 %2424  ;;  %v1501_v35 = vpop.permute.xlu1 %1500  ;;  %1770 = vrot.lane.b32.xlu0 %v6212_v61, %s5309_s29 }
 0x2eb   :  { %v1511_v12 = vrot.slane %v1501_v35, 4 }
 0x2ec   :  { %1888 = vrot.lane.b32.xlu1 %v6317_v55, %s5317_s9 }
 0x2ed   :  { %v1516_v17 = vsel %vm752_vm13, %v1510_v22, %v1511_v12 }
 0x2ee   :  { %v1517_v38 = vsel %vm172_vm0, %v6259_v32, %v1516_v17  ;;  %v6454_v26 = vpop.permute.xlu0 %1502  ;;  %v1539_v60 = vpop.permute.xlu1 %1538  ;;  %1847 = vrot.lane.b32.xlu0 %v6212_v61, %s5316_s8 }
 0x2ef   :  { %v7782_v30 = vrot.slane %v6454_v26, 4  ;;  %v1549_v23 = vrot.slane %v1539_v60, 4  ;;  %v4702_v13 = vcombine.low %v6157_v6, %v1517_v38  ;;  %v4703_v40 = vcombine.high %v6157_v6, %v1517_v38 }
 0x2f0   :  { %1966 = vrot.lane.b32.xlu1 %v6317_v55, %s5319_s11 }
 0x2f1   :  { %v1518_v32 = vsel %vm752_vm13, %v1511_v12, %v7782_v30  ;;  %v1554_v39 = vsel %vm752_vm13, %v1548_v47, %v1549_v23  ;;  %3339 = vmatprep.subr.bf16.mxu0 %v4703_v40 }
 0x2f2   :  { %v1519_v44 = vsel %vm172_vm0, %v1501_v35, %v1518_v32  ;;  %v1555_v6 = vsel %vm7869_vm11, %v6265_v53, %v1554_v39  ;;  %v6474_v28 = vpop.permute.xlu0 %1540  ;;  %v1577_v22 = vpop.permute.xlu1 %1576  ;;  %1925 = vrot.lane.b32.xlu0 %v6212_v61, %s5318_s10  ;;  %3340 = vmatpush1.bf16.msra.mxu0 %v4702_v13  ;;  %vm7878_vm11 = vmmov %vm7877_vm2 }
 0x2f3   :  { %v1550_v12 = vrot.slane %v6474_v28, 4  ;;  %v1587_v17 = vrot.slane %v1577_v22, 4  ;;  %v4704_v51 = vcombine.low %v6169_v7, %v1519_v44  ;;  %v4705_v47 = vcombine.high %v6169_v7, %v1519_v44 }
 0x2f4   :  { %2044 = vrot.lane.b32.xlu1 %v6317_v55, %s5321_s13 }
 0x2f5   :  { %v1556_v53 = vsel %vm752_vm13, %v1549_v23, %v1550_v12  ;;  %v1592_v35 = vsel %vm752_vm13, %v1586_v5, %v1587_v17  ;;  %v1594_v38 = vsel %vm752_vm13, %v1587_v17, %v7780_v37  ;;  %3382 = vmatprep.subr.bf16.mxu1 %v4705_v47 }
 0x2f6   :  { %v1557_v13 = vsel %vm7870_vm7, %v1539_v60, %v1556_v53  ;;  %v1593_v7 = vsel %vm7871_vm14, %v6271_v63, %v1592_v35  ;;  %v1595_v40 = vsel %vm7872_vm1, %v1577_v22, %v1594_v38  ;;  %v6495_v32 = vpop.permute.xlu0 %1616  ;;  %v1615_v39 = vpop.permute.xlu1 %1614  ;;  %2003 = vrot.lane.b32.xlu0 %v6212_v61, %s5320_s12  ;;  %3383 = vmatpush1.bf16.msra.mxu1 %v4704_v51  ;;  %v1662_v38 = vrot.slane %v6283_v0, 4 }
 0x2f7   :  { %1607 = vst [vmem:[#allocation2 + $0x84] sm:$0xff] %v1593_v7  ;;  %1608 = vst [vmem:[#allocation2 + $0x8c] sm:$0xff] %v1595_v40  ;;  %v7809_v23 = vrot.slane %v6495_v32, 4  ;;  %v1625_v5 = vrot.slane %v1615_v39, 4  ;;  %v4712_v44 = vcombine.low %v1555_v6, %v1593_v7  ;;  %v4713_v17 = vcombine.high %v1555_v6, %v1593_v7 }
 0x2f8   :  { %2121 = vrot.lane.b32.xlu1 %v6317_v55, %s5322_s14  ;;  %v4714_v63 = vcombine.low %v1557_v13, %v1595_v40  ;;  %v4715_v60 = vcombine.high %v1557_v13, %v1595_v40  ;;  %v1700_v40 = vrot.slane %v6289_v56, 4  ;;  %vm7879_vm7 = vcmask 990208  }
 0x2f9   :  { %v1630_v22 = vsel %vm752_vm13, %v1624_v58, %v1625_v5  ;;  %v1632_v47 = vsel %vm752_vm13, %v1625_v5, %v7809_v23  ;;  %3341 = vmatprep.subr.bf16.mxu0 %v4713_v17  ;;  %v7778_v58 = vrot.slane %v6346_v48, 4  ;;  %vm7880_vm14 = vmmov %vm7879_vm7  ;;  %vm1821_vm1 = vcmask 973824  }
 0x2fa   :  { %v1631_v51 = vsel %vm7873_vm5, %v6277_v42, %v1630_v22  ;;  %v1633_v53 = vsel %vm7874_vm4, %v1615_v39, %v1632_v47  ;;  %v6509_v35 = vpop.permute.xlu0 %1692  ;;  %v1653_v6 = vpop.permute.xlu1 %1652  ;;  %2081 = vrot.lane.b32.xlu0 %v6212_v61, %s5310_s30  ;;  %3384 = vmatprep.subr.bf16.mxu1 %v4715_v60  ;;  %vm1860_vm5 = vcmask 965632   ;;  %vm7802_vm4 = vcmask 957440  }
 0x2fb   :  { %v1663_v13 = vrot.slane %v1653_v6, 4  ;;  %3342 = vmatpush1.bf16.msra.mxu0 %v4712_v44  ;;  %3385 = vmatpush1.bf16.msra.mxu1 %v4714_v63  ;;  %v7808_v63 = vrot.slane %v6509_v35, 4 }
 0x2fc   :  { %2199 = vrot.lane.b32.xlu1 %v6317_v55, %s5324_s16 }
 0x2fd   :  { %v1668_v42 = vsel %vm752_vm13, %v1662_v38, %v1663_v13  ;;  %v1670_v7 = vsel %vm752_vm13, %v1663_v13, %v7778_v58 }
 0x2fe   :  { %v1669_v39 = vsel %vm7875_vm6, %v6283_v0, %v1668_v42  ;;  %v1671_v5 = vsel %vm7876_vm9, %v1653_v6, %v1670_v7  ;;  %v6525_v17 = vpop.permute.xlu0 %1768  ;;  %v1691_v44 = vpop.permute.xlu1 %1690  ;;  %2158 = vrot.lane.b32.xlu0 %v6212_v61, %s5323_s15  ;;  %vm1938_vm6 = vcmask 949248   ;;  %vm7796_vm9 = vcmask 941056  }
 0x2ff   :  { %v1701_v60 = vrot.slane %v1691_v44, 4  ;;  %v4722_v22 = vcombine.low %v1631_v51, %v1669_v39  ;;  %v4723_v47 = vcombine.high %v1631_v51, %v1669_v39  ;;  %v4724_v38 = vcombine.low %v1633_v53, %v1671_v5 }
 0x300   :  { %2277 = vrot.lane.b32.xlu1 %v6317_v55, %s5326_s18  ;;  %v4725_v13 = vcombine.high %v1633_v53, %v1671_v5  ;;  %v1738_v53 = vrot.slane %v6295_v9, 4 }
 0x301   :  { %v1706_v0 = vsel %vm752_vm13, %v1700_v40, %v1701_v60  ;;  %v1708_v6 = vsel %vm752_vm13, %v1701_v60, %v7808_v63  ;;  %3343 = vmatprep.subr.bf16.mxu0 %v4723_v47  ;;  %v7779_v40 = vrot.slane %v6354_v29, 4 }
 0x302   :  { %v1707_v42 = vsel %vm7877_vm2, %v6289_v56, %v1706_v0  ;;  %v1709_v7 = vsel %vm7878_vm11, %v1691_v44, %v1708_v6  ;;  %v6539_v58 = vpop.permute.xlu0 %1845  ;;  %v1729_v51 = vpop.permute.xlu1 %1728  ;;  %2236 = vrot.lane.b32.xlu0 %v6212_v61, %s5325_s17  ;;  %3386 = vmatprep.subr.bf16.mxu1 %v4725_v13  ;;  %v1776_v44 = vrot.slane %v6301_v10, 4  ;;  %vm2016_vm2 = vcmask 932864  }
 0x303   :  { %v1739_v39 = vrot.slane %v1729_v51, 4  ;;  %3344 = vmatpush1.bf16.msra.mxu0 %v4722_v22  ;;  %3387 = vmatpush1.bf16.msra.mxu1 %v4724_v38  ;;  %v7807_v38 = vrot.slane %v6525_v17, 4  ;;  %vm7792_vm11 = vcmask 924672  }
 0x304   :  { %1504 = vrot.lane.b32.xlu1 %v6212_v61, %s5302_s22 }
 0x305   :  { %v1744_v56 = vsel %vm752_vm13, %v1738_v53, %v1739_v39  ;;  %v1746_v5 = vsel %vm752_vm13, %v1739_v39, %v7779_v40 }
 0x306   :  { %v1745_v60 = vsel %vm7879_vm7, %v6295_v9, %v1744_v56  ;;  %v1747_v47 = vsel %vm7880_vm14, %v1729_v51, %v1746_v5  ;;  %v6555_v13 = vpop.permute.xlu0 %1923  ;;  %v1767_v22 = vpop.permute.xlu1 %1766  ;;  %2314 = vrot.lane.b32.xlu0 %v6212_v61, %s5327_s19  ;;  %vm7791_vm7 = vcmask 908288   ;;  %vm2171_vm14 = vcmask 900096  }
 0x307   :  { %v1777_v0 = vrot.slane %v1767_v22, 4  ;;  %v4732_v6 = vcombine.low %v1707_v42, %v1745_v60  ;;  %v4733_v53 = vcombine.high %v1707_v42, %v1745_v60  ;;  %v4734_v39 = vcombine.low %v1709_v7, %v1747_v47 }
 0x308   :  { %1580 = vrot.lane.b32.xlu1 %v6212_v61, %s5303_s23  ;;  %v4735_v40 = vcombine.high %v1709_v7, %v1747_v47  ;;  %v1437_v7 = vmul.f32 0.1, %v6315_v19  ;;  %v7781_v60 = vrot.slane %v6362_v45, 4 }
 0x309   :  { %v1782_v9 = vsel %vm752_vm13, %v1776_v44, %v1777_v0  ;;  %v1784_v51 = vsel %vm752_vm13, %v1777_v0, %v7807_v38  ;;  %3345 = vmatprep.subr.bf16.mxu0 %v4733_v53  ;;  %v1814_v44 = vrot.slane %v6307_v14, 4 }
 0x30a   :  { %v1783_v56 = vsel %vm849_vm15, %v6301_v10, %v1782_v9  ;;  %v1785_v5 = vsel %vm849_vm15, %v1767_v22, %v1784_v51  ;;  %v6569_v37 = vpop.permute.xlu0 %2001  ;;  %v1805_v42 = vpop.permute.xlu1 %1804  ;;  %2392 = vrot.lane.b32.xlu0 %v6212_v61, %s5308_s28  ;;  %3388 = vmatprep.subr.bf16.mxu1 %v4735_v40  ;;  %v1853_v40 = vrot.slane %v6313_v41, 4  ;;  %v7784_v51 = vrot.slane %v6539_v58, 4 }
 0x30b   :  { %v1815_v47 = vrot.slane %v1805_v42, 4  ;;  %3346 = vmatpush1.bf16.msra.mxu0 %v4732_v6  ;;  %3389 = vmatpush1.bf16.msra.mxu1 %v4734_v39  ;;  %v1448_v39 = vmax.f32 %v6315_v19, %v1437_v7 }
 0x30c   :  { %1656 = vrot.lane.b32.xlu1 %v6212_v61, %s5305_s25 }
 0x30d   :  { %v1820_v10 = vsel %vm752_vm13, %v1814_v44, %v1815_v47  ;;  %v1823_v22 = vsel %vm752_vm13, %v1815_v47, %v7781_v60 }
 0x30e   :  { %v1822_v0 = vsel %vm1821_vm1, %v6307_v14, %v1820_v10  ;;  %v1824_v53 = vsel %vm1821_vm1, %v1805_v42, %v1823_v22  ;;  %v6586_v9 = vpop.permute.xlu0 %2079  ;;  %v1844_v6 = vpop.permute.xlu1 %1843  ;;  %2316 = vrot.lane.b32.xlu0 %v6317_v55, %s5327_s19  ;;  %v6601_v22 = vpack.c.bf16 %v1448_v39, %v1448_v39 }
 0x30f   :  { %v1854_v44 = vrot.slane %v1844_v6, 4  ;;  %v4742_v47 = vcombine.low %v1783_v56, %v1822_v0  ;;  %v4743_v60 = vcombine.high %v1783_v56, %v1822_v0  ;;  %v4744_v30 = vcombine.low %v1785_v5, %v1824_v53 }
 0x310   :  { %1732 = vrot.lane.b32.xlu1 %v6212_v61, %s5307_s27  ;;  %v4745_v14 = vcombine.high %v1785_v5, %v1824_v53  ;;  %v1892_v5 = vrot.slane %v6322_v20, 4 }
 0x311   :  { %v1859_v42 = vsel %vm752_vm13, %v1853_v40, %v1854_v44  ;;  %v1862_v10 = vsel %vm752_vm13, %v1854_v44, %v7784_v51  ;;  %3347 = vmatprep.subr.bf16.mxu0 %v4743_v60  ;;  %v7783_v40 = vrot.slane %v6370_v21, 4 }
 0x312   :  { %v1861_v19 = vsel %vm1860_vm5, %v6313_v41, %v1859_v42  ;;  %v1863_v7 = vsel %vm1860_vm5, %v1844_v6, %v1862_v10  ;;  %v6603_v56 = vpop.permute.xlu0 %2156  ;;  %v1883_v0 = vpop.permute.xlu1 %1882  ;;  %2394 = vrot.lane.b32.xlu0 %v6317_v55, %s5308_s28  ;;  %3390 = vmatprep.subr.bf16.mxu1 %v4745_v14  ;;  %v1931_v6 = vrot.slane %v6328_v52, 4 }
 0x313   :  { %v1893_v60 = vrot.slane %v1883_v0, 4  ;;  %3348 = vmatpush1.bf16.msra.mxu0 %v4742_v47  ;;  %3391 = vmatpush1.bf16.msra.mxu1 %v4744_v30  ;;  %v7787_v47 = vrot.slane %v6555_v13, 4 }
 0x314   :  { %1808 = vrot.lane.b32.xlu1 %v6212_v61, %s5315_s1 }
 0x315   :  { %v1898_v41 = vsel %vm752_vm13, %v1892_v5, %v1893_v60  ;;  %v1901_v53 = vsel %vm752_vm13, %v1893_v60, %v7783_v40 }
 0x316   :  { %v1900_v39 = vsel %vm7802_vm4, %v6322_v20, %v1898_v41  ;;  %v1902_v44 = vsel %vm7802_vm4, %v1883_v0, %v1901_v53  ;;  %v6619_v14 = vpop.permute.xlu0 %2234  ;;  %v1922_v30 = vpop.permute.xlu1 %1921  ;;  %1546 = vrot.lane.b32.xlu0 %v6601_v22, %s5301_s0  ;;  %vm7885_vm4 = vcmask 1040384  }
 0x317   :  { %v1932_v42 = vrot.slane %v1922_v30, 4  ;;  %v4752_v10 = vcombine.low %v1861_v19, %v1900_v39  ;;  %v4753_v5 = vcombine.high %v1861_v19, %v1900_v39  ;;  %v4754_v60 = vcombine.low %v1863_v7, %v1902_v44 }
 0x318   :  { %1886 = vrot.lane.b32.xlu1 %v6212_v61, %s5317_s9  ;;  %v4755_v40 = vcombine.high %v1863_v7, %v1902_v44  ;;  %v1970_v7 = vrot.slane %v6334_v3, 4 }
 0x319   :  { %v1937_v20 = vsel %vm752_vm13, %v1931_v6, %v1932_v42  ;;  %v1940_v0 = vsel %vm752_vm13, %v1932_v42, %v7787_v47  ;;  %3349 = vmatprep.subr.bf16.mxu0 %v4753_v5  ;;  %v7785_v6 = vrot.slane %v6378_v24, 4 }
 0x31a   :  { %v1939_v41 = vsel %vm1938_vm6, %v6328_v52, %v1937_v20  ;;  %v1941_v53 = vsel %vm1938_vm6, %v1922_v30, %v1940_v0  ;;  %v6633_v51 = vpop.permute.xlu0 %2312  ;;  %v1961_v19 = vpop.permute.xlu1 %1960  ;;  %1622 = vrot.lane.b32.xlu0 %v6601_v22, %s5304_s24  ;;  %3392 = vmatprep.subr.bf16.mxu1 %v4755_v40  ;;  %v2009_v30 = vrot.slane %v6342_v31, 4 }
 0x31b   :  { %v1971_v39 = vrot.slane %v1961_v19, 4  ;;  %3350 = vmatpush1.bf16.msra.mxu0 %v4752_v10  ;;  %3393 = vmatpush1.bf16.msra.mxu1 %v4754_v60  ;;  %v7786_v10 = vrot.slane %v6569_v37, 4 }
 0x31c   :  { %1964 = vrot.lane.b32.xlu1 %v6212_v61, %s5319_s11 }
 0x31d   :  { %v1976_v52 = vsel %vm752_vm13, %v1970_v7, %v1971_v39  ;;  %v1979_v44 = vsel %vm752_vm13, %v1971_v39, %v7785_v6 }
 0x31e   :  { %v1978_v40 = vsel %vm7796_vm9, %v6334_v3, %v1976_v52  ;;  %v1980_v42 = vsel %vm7796_vm9, %v1961_v19, %v1979_v44  ;;  %v2000_v5 = vpop.permute.xlu1 %1999  ;;  %1698 = vrot.lane.b32.xlu0 %v6601_v22, %s5306_s26  ;;  %v6652_v7 = vpop.permute.xlu0 %2390  ;;  %vm2327_vm9 = vcmask 867328  }
 0x31f   :  { %v2010_v60 = vrot.slane %v2000_v5, 4  ;;  %v4762_v20 = vcombine.low %v1939_v41, %v1978_v40  ;;  %v4763_v0 = vcombine.high %v1939_v41, %v1978_v40  ;;  %v4764_v39 = vcombine.low %v1941_v53, %v1980_v42 }
 0x320   :  { %2042 = vrot.lane.b32.xlu1 %v6212_v61, %s5321_s13  ;;  %v4765_v6 = vcombine.high %v1941_v53, %v1980_v42  ;;  %v2048_v40 = vrot.slane %v6350_v57, 4  ;;  %v7788_v53 = vrot.slane %v6394_v2, 4 }
 0x321   :  { %v2015_v3 = vsel %vm752_vm13, %v2009_v30, %v2010_v60  ;;  %v2018_v19 = vsel %vm752_vm13, %v2010_v60, %v7786_v10  ;;  %3351 = vmatprep.subr.bf16.mxu0 %v4763_v0  ;;  %v7789_v60 = vrot.slane %v6586_v9, 4 }
 0x322   :  { %v2017_v52 = vsel %vm2016_vm2, %v6342_v31, %v2015_v3  ;;  %v2019_v44 = vsel %vm2016_vm2, %v2000_v5, %v2018_v19  ;;  %v2039_v41 = vpop.permute.xlu1 %2038  ;;  %1774 = vrot.lane.b32.xlu0 %v6601_v22, %s5309_s29  ;;  %3394 = vmatprep.subr.bf16.mxu1 %v4765_v6  ;;  %v2087_v6 = vrot.slane %v6358_v36, 4 }
 0x323   :  { %v2049_v30 = vrot.slane %v2039_v41, 4  ;;  %3352 = vmatpush1.bf16.msra.mxu0 %v4762_v20  ;;  %3395 = vmatpush1.bf16.msra.mxu1 %v4764_v39 }
 0x324   :  { %v6667_v42 = vpop.permute.xlu0 %1506  ;;  %2119 = vrot.lane.b32.xlu1 %v6212_v61, %s5322_s14 }
 0x325   :  { %7881 = vst [vmem:[#allocation7_spill] sm:$0xff] %v6667_v42  ;;  %v2054_v31 = vsel %vm752_vm13, %v2048_v40, %v2049_v30  ;;  %v2057_v5 = vsel %vm752_vm13, %v2049_v30, %v7788_v53 }
 0x326   :  { %v2056_v0 = vsel %vm7792_vm11, %v6350_v57, %v2054_v31  ;;  %v2058_v20 = vsel %vm7792_vm11, %v2039_v41, %v2057_v5  ;;  %v2078_v39 = vpop.permute.xlu1 %2077  ;;  %1851 = vrot.lane.b32.xlu0 %v6601_v22, %s5316_s8  ;;  %v2125_v5 = vrot.slane %v6366_v27, 4  ;;  %vm2249_vm11 = vcmask 883712  }
 0x327   :  { %v2088_v3 = vrot.slane %v2078_v39, 4  ;;  %v4772_v19 = vcombine.low %v2017_v52, %v2056_v0  ;;  %v4773_v40 = vcombine.high %v2017_v52, %v2056_v0  ;;  %v4774_v10 = vcombine.low %v2019_v44, %v2058_v20 }
 0x328   :  { %v6682_v47 = vpop.permute.xlu0 %1544  ;;  %2197 = vrot.lane.b32.xlu1 %v6212_v61, %s5324_s16  ;;  %v4775_v30 = vcombine.high %v2019_v44, %v2058_v20  ;;  %v7790_v44 = vrot.slane %v6402_v62, 4 }
 0x329   :  { %v2093_v53 = vsel %vm752_vm13, %v2087_v6, %v2088_v3  ;;  %v2095_v57 = vsel %vm752_vm13, %v2088_v3, %v7789_v60  ;;  %3353 = vmatprep.subr.bf16.mxu0 %v4773_v40  ;;  %v7793_v3 = vrot.slane %v6603_v56, 4 }
 0x32a   :  { %v2094_v41 = vsel %vm891_vm10, %v6358_v36, %v2093_v53  ;;  %v2096_v31 = vsel %vm891_vm10, %v2078_v39, %v2095_v57  ;;  %v2116_v52 = vpop.permute.xlu1 %2115  ;;  %1929 = vrot.lane.b32.xlu0 %v6601_v22, %s5318_s10  ;;  %3396 = vmatprep.subr.bf16.mxu1 %v4775_v30  ;;  %v2164_v36 = vrot.slane %v6374_v8, 4  ;;  %v2473_v39 = vld [vmem:[#allocation2 + $0x488] sm:$0x11] }
 0x32b   :  { %v2126_v6 = vrot.slane %v2116_v52, 4  ;;  %3354 = vmatpush1.bf16.msra.mxu0 %v4772_v19  ;;  %3397 = vmatpush1.bf16.msra.mxu1 %v4774_v10  ;;  %v2474_v30 = vsel %vm6382_vm8, 1065369472, %v2473_v39 }
 0x32c   :  { %v6697_v0 = vpop.permute.xlu0 %1620  ;;  %2275 = vrot.lane.b32.xlu1 %v6212_v61, %s5326_s18  ;;  %2475 = vst [vmem:[#allocation2 + $0x488] sm:$0x11] %v2474_v30 }
 0x32d   :  { %v2131_v53 = vsel %vm752_vm13, %v2125_v5, %v2126_v6  ;;  %v2134_v20 = vsel %vm752_vm13, %v2126_v6, %v7790_v44 }
 0x32e   :  { %v2133_v10 = vsel %vm7791_vm7, %v6366_v27, %v2131_v53  ;;  %v2135_v19 = vsel %vm7791_vm7, %v2116_v52, %v2134_v20  ;;  %v2155_v40 = vpop.permute.xlu1 %2154  ;;  %2007 = vrot.lane.b32.xlu0 %v6601_v22, %s5320_s12  ;;  %v2476_v20 = vld [vmem:[#allocation2 + $0x490] sm:$0x11]  ;;  %vm7795_vm7 = vcmask 891904  }
 0x32f   :  { %v2165_v57 = vrot.slane %v2155_v40, 4  ;;  %v4782_v5 = vcombine.low %v2094_v41, %v2133_v10  ;;  %v4783_v60 = vcombine.high %v2094_v41, %v2133_v10  ;;  %v4784_v6 = vcombine.low %v2096_v31, %v2135_v19 }
 0x330   :  { %v6714_v44 = vpop.permute.xlu0 %1696  ;;  %2353 = vrot.lane.b32.xlu1 %v6212_v61, %s5328_s20  ;;  %v4785_v27 = vcombine.high %v2096_v31, %v2135_v19  ;;  %v2477_v31 = vsel %vm6382_vm8, 1065369472, %v2476_v20  ;;  %v7794_v19 = vrot.slane %v6410_v34, 4 }
 0x331   :  { %v2170_v52 = vsel %vm752_vm13, %v2164_v36, %v2165_v57  ;;  %v2173_v53 = vsel %vm752_vm13, %v2165_v57, %v7793_v3  ;;  %3355 = vmatprep.subr.bf16.mxu0 %v4783_v60  ;;  %v2203_v36 = vrot.slane %v6390_v25, 4  ;;  %2478 = vst [vmem:[#allocation2 + $0x490] sm:$0x11] %v2477_v31  ;;  %v2242_v57 = vrot.slane %v6398_v18, 4 }
 0x332   :  { %v2172_v39 = vsel %vm2171_vm14, %v6374_v8, %v2170_v52  ;;  %v2174_v41 = vsel %vm2171_vm14, %v2155_v40, %v2173_v53  ;;  %v2194_v10 = vpop.permute.xlu1 %2193  ;;  %2085 = vrot.lane.b32.xlu0 %v6601_v22, %s5310_s30  ;;  %3398 = vmatprep.subr.bf16.mxu1 %v4785_v27  ;;  %v7806_v27 = vrot.slane %v6619_v14, 4 }
 0x333   :  { %v2204_v60 = vrot.slane %v2194_v10, 4  ;;  %3356 = vmatpush1.bf16.msra.mxu0 %v4782_v5  ;;  %3399 = vmatpush1.bf16.msra.mxu1 %v4784_v6 }
 0x334   :  { %v6731_v8 = vpop.permute.xlu0 %1772  ;;  %2355 = vrot.lane.b32.xlu1 %v6317_v55, %s5328_s20 }
 0x335   :  { %v2209_v40 = vsel %vm752_vm13, %v2203_v36, %v2204_v60  ;;  %v2212_v30 = vsel %vm752_vm13, %v2204_v60, %v7794_v19 }
 0x336   :  { %v2211_v5 = vsel %vm7795_vm7, %v6390_v25, %v2209_v40  ;;  %v2213_v6 = vsel %vm7795_vm7, %v2194_v10, %v2212_v30  ;;  %v2233_v52 = vpop.permute.xlu1 %2232  ;;  %2162 = vrot.lane.b32.xlu0 %v6601_v22, %s5323_s15  ;;  %vm7797_vm7 = vcmask 875520  }
 0x337   :  { %v2243_v53 = vrot.slane %v2233_v52, 4  ;;  %v4792_v20 = vcombine.low %v2172_v39, %v2211_v5  ;;  %v4793_v31 = vcombine.high %v2172_v39, %v2211_v5  ;;  %v4794_v36 = vcombine.low %v2174_v41, %v2213_v6 }
 0x338   :  { %v6746_v3 = vpop.permute.xlu0 %1849  ;;  %2430 = vrot.lane.b32.xlu1 %v6212_v61, %s5329_s21  ;;  %v4795_v60 = vcombine.high %v2174_v41, %v2213_v6  ;;  %v2281_v61 = vrot.slane %v6406_v11, 4  ;;  %v7798_v41 = vrot.slane %v6419_v15, 4  ;;  %v2320_v5 = vrot.slane %v6417_v33, 4 }
 0x339   :  { %v2248_v19 = vsel %vm752_vm13, %v2242_v57, %v2243_v53  ;;  %v2251_v25 = vsel %vm752_vm13, %v2243_v53, %v7806_v27  ;;  %3357 = vmatprep.subr.bf16.mxu0 %v4793_v31  ;;  %v7799_v6 = vrot.slane %v6633_v51, 4 }
 0x33a   :  { %v2250_v10 = vsel %vm2249_vm11, %v6398_v18, %v2248_v19  ;;  %v2252_v40 = vsel %vm2249_vm11, %v2233_v52, %v2251_v25  ;;  %v2272_v39 = vpop.permute.xlu1 %2271  ;;  %2240 = vrot.lane.b32.xlu0 %v6601_v22, %s5325_s17  ;;  %3400 = vmatprep.subr.bf16.mxu1 %v4795_v60 }
 0x33b   :  { %v2282_v30 = vrot.slane %v2272_v39, 4  ;;  %3358 = vmatpush1.bf16.msra.mxu0 %v4792_v20  ;;  %3401 = vmatpush1.bf16.msra.mxu1 %v4794_v36 }
 0x33c   :  { %v6761_v57 = vpop.permute.xlu0 %1927  ;;  %2432 = vrot.lane.b32.xlu1 %v6317_v55, %s5329_s21 }
 0x33d   :  { %v2287_v18 = vsel %vm752_vm13, %v2281_v61, %v2282_v30  ;;  %v2290_v19 = vsel %vm752_vm13, %v2282_v30, %v7798_v41 }
 0x33e   :  { %v2289_v52 = vsel %vm7797_vm7, %v6406_v11, %v2287_v18  ;;  %v2291_v53 = vsel %vm7797_vm7, %v2272_v39, %v2290_v19  ;;  %v2311_v20 = vpop.permute.xlu1 %2310  ;;  %2318 = vrot.lane.b32.xlu0 %v6601_v22, %s5327_s19  ;;  %v2359_v19 = vrot.slane %v6427_v43, 4  ;;  %vm7801_vm7 = vcmask 859136  }
 0x33f   :  { %v2321_v55 = vrot.slane %v2311_v20, 4  ;;  %v4802_v31 = vcombine.low %v2250_v10, %v2289_v52  ;;  %v4803_v36 = vcombine.high %v2250_v10, %v2289_v52  ;;  %v4804_v60 = vcombine.low %v2252_v40, %v2291_v53 }
 0x340   :  { %v6776_v25 = vpop.permute.xlu0 %2005  ;;  %1508 = vrot.lane.b32.xlu1 %v6601_v22, %s5302_s22  ;;  %v4805_v61 = vcombine.high %v2252_v40, %v2291_v53  ;;  %v7800_v40 = vrot.slane %v6429_v49, 4 }
 0x341   :  { %7882 = vst [vmem:[#allocation8_spill] sm:$0xff] %v6776_v25  ;;  %v2326_v30 = vsel %vm752_vm13, %v2320_v5, %v2321_v55  ;;  %v2329_v11 = vsel %vm752_vm13, %v2321_v55, %v7799_v6  ;;  %3359 = vmatprep.subr.bf16.mxu0 %v4803_v36  ;;  %v7805_v55 = vrot.slane %v6652_v7, 4  ;;  %v2614_v6 = vld [vmem:[#allocation2 + $0x478] sm:$0x11]  ;;  %v7820_v54 = vrot.slane %v6776_v25, 4 }
 0x342   :  { %v2328_v39 = vsel %vm2327_vm9, %v6417_v33, %v2326_v30  ;;  %v2330_v18 = vsel %vm2327_vm9, %v2311_v20, %v2329_v11  ;;  %v2350_v10 = vpop.permute.xlu1 %2349  ;;  %2396 = vrot.lane.b32.xlu0 %v6601_v22, %s5308_s28  ;;  %3402 = vmatprep.subr.bf16.mxu1 %v4805_v61  ;;  %v2398_v20 = vrot.slane %v6435_v16, 4  ;;  %v7908_v25 = vrot.slane %v6667_v42, 4  ;;  %v2487_v42 = vld [vmem:[#allocation2 + $0x18] sm:$0xff] }
 0x343   :  { %v2360_v5 = vrot.slane %v2350_v10, 4  ;;  %3360 = vmatpush1.bf16.msra.mxu0 %v4802_v31  ;;  %3403 = vmatpush1.bf16.msra.mxu1 %v4804_v60 }
 0x344   :  { %v6791_v52 = vpop.permute.xlu0 %2083  ;;  %1584 = vrot.lane.b32.xlu1 %v6601_v22, %s5303_s23 }
 0x345   :  { %7883 = vst [vmem:[#allocation9_spill] sm:$0xff] %v6791_v52  ;;  %v2365_v33 = vsel %vm752_vm13, %v2359_v19, %v2360_v5  ;;  %v2368_v53 = vsel %vm752_vm13, %v2360_v5, %v7800_v40 }
 0x346   :  { %v2367_v36 = vsel %vm7801_vm7, %v6427_v43, %v2365_v33  ;;  %v2369_v31 = vsel %vm7801_vm7, %v2350_v10, %v2368_v53  ;;  %v2389_v60 = vpop.permute.xlu1 %2388  ;;  %v2615_v10 = vld [vmem:[#allocation2 + $0x480] sm:$0x11]  ;;  %vm7810_vm7 = vcmask 842752  }
 0x347   :  { %v2399_v61 = vrot.slane %v2389_v60, 4  ;;  %v4812_v30 = vcombine.low %v2328_v39, %v2367_v36  ;;  %v4813_v11 = vcombine.high %v2328_v39, %v2367_v36  ;;  %v4814_v41 = vcombine.low %v2330_v18, %v2369_v31 }
 0x348   :  { %v6804_v19 = vpop.permute.xlu0 %2160  ;;  %1660 = vrot.lane.b32.xlu1 %v6601_v22, %s5305_s25  ;;  %v4815_v5 = vcombine.high %v2330_v18, %v2369_v31  ;;  %v4833_v36 = vcombine.high %v2614_v6, %v2614_v6  ;;  %v7811_v18 = vrot.slane %v6437_v59, 4  ;;  %v4834_v63 = vcombine.low %v2615_v10, %v2615_v10 }
 0x349   :  { %7884 = vst [vmem:[#allocation10_spill] sm:$0xff] %v6804_v19  ;;  %v2404_v40 = vsel %vm752_vm13, %v2398_v20, %v2399_v61  ;;  %v2406_v43 = vsel %vm752_vm13, %v2399_v61, %v7805_v55  ;;  %3361 = vmatprep.subr.bf16.mxu0 %v4813_v11  ;;  %v2436_v20 = vrot.slane %v6443_v46, 4  ;;  %v6819_v61 = vsel %vm7885_vm4, 65535, %v7803_v1 }
 0x34a   :  { %v2405_v33 = vsel %vm976_vm12, %v6435_v16, %v2404_v40  ;;  %v2407_v39 = vsel %vm976_vm12, %v2389_v60, %v2406_v43  ;;  %v2427_v53 = vpop.permute.xlu1 %2426  ;;  %3404 = vmatprep.subr.bf16.mxu1 %v4815_v5  ;;  %3362 = vmatpush1.bf16.msra.mxu0 %v4812_v30  ;;  %7886 = vst [vmem:[#allocation11_spill] sm:$0xff] %v6819_v61  ;;  %vm7888_vm4 = vcmask 1031168  }
 0x34b   :  { %v2437_v31 = vrot.slane %v2427_v53, 4  ;;  %3405 = vmatpush1.bf16.msra.mxu1 %v4814_v41  ;;  %v4835_v16 = vcombine.high %v2615_v10, %v2615_v10  ;;  %v4832_v43 = vcombine.low %v2614_v6, %v2614_v6  ;;  %v3313_v1 = vand.u32 %v4833_v36, %v6819_v61 }
 0x34c   :  { %v6821_v11 = vpop.permute.xlu0 %2238  ;;  %1736 = vrot.lane.b32.xlu1 %v6601_v22, %s5307_s27 }
 0x34d   :  { %7887 = vst [vmem:[#allocation12_spill] sm:$0xff] %v6821_v11  ;;  %v2442_v40 = vsel %vm752_vm13, %v2436_v20, %v2437_v31  ;;  %v2445_v60 = vsel %vm752_vm13, %v2437_v31, %v7811_v18  ;;  %v3319_v31 = vand.u32 %v4835_v16, %v6819_v61  ;;  %v3310_v6 = vand.u32 %v4832_v43, %v6819_v61 }
 0x34e   :  { %v2444_v30 = vsel %vm7810_vm7, %v6443_v46, %v2442_v40  ;;  %v2446_v41 = vsel %vm7810_vm7, %v2427_v53, %v2445_v60  ;;  %v6832_v5 = vpop.permute.xlu1 %1582  ;;  %v7816_v46 = vrot.slane %v6682_v47, 4  ;;  %vm7889_vm7 = vmmov %vm7888_vm4  ;;  %v7813_v43 = vrot.slane %v6714_v44, 4 }
 0x34f   :  { %v4822_v55 = vcombine.low %v2405_v33, %v2444_v30  ;;  %v4823_v27 = vcombine.high %v2405_v33, %v2444_v30  ;;  %v4824_v38 = vcombine.low %v2407_v39, %v2446_v41  ;;  %v4825_v20 = vcombine.high %v2407_v39, %v2446_v41 }
 0x350   :  { %v1543_v23 = vpop.permute.xlu0 %1542  ;;  %1812 = vrot.lane.b32.xlu1 %v6601_v22, %s5315_s1  ;;  %v3316_v39 = vand.u32 %v4834_v63, %v6819_v61  ;;  %v7817_v18 = vrot.slane %v6761_v57, 4 }
 0x351   :  { %v1551_v40 = vrot.slane %v1543_v23, 4  ;;  %3363 = vmatprep.subr.bf16.mxu0 %v4823_v27  ;;  %3406 = vmatprep.subr.bf16.mxu1 %v4825_v20 }
 0x352   :  { %v6839_v53 = vpop.permute.xlu1 %1658  ;;  %3364 = vmatpush1.bf16.msra.mxu0 %v4822_v55  ;;  %3407 = vmatpush1.bf16.msra.mxu1 %v4824_v38 }
 0x353   :  { %v1558_v10 = vsel %vm752_vm13, %v1550_v12, %v1551_v40  ;;  %v1560_v33 = vsel %vm752_vm13, %v1551_v40, %v7816_v46  ;;  %3365 = vmatprep.subr.bf16.mxu0 %v3313_v1  ;;  %3408 = vmatprep.subr.bf16.mxu1 %v3319_v31  ;;  %v7815_v12 = vrot.slane %v6697_v0, 4  ;;  %v5203_v1 = vld [vmem:[%s7765_s2] ss:$8 sps:$4 sm:$0xff]   ;;  %v5292_v40 = vld [vmem:[%s7765_s2 + $0x4] ss:$8 sps:$4 sm:$0xff]   ;;  %v7899_v46 = vrot.slane %v6569_v37, 4 }
 0x354   :  { %v6851_v27 = vsel %vm7888_vm4, %v6474_v28, %v1558_v10  ;;  %v6854_v55 = vsel %vm7889_vm7, %v1543_v23, %v1560_v33  ;;  %v1619_v36 = vpop.permute.xlu0 %1618  ;;  %1890 = vrot.lane.b32.xlu1 %v6601_v22, %s5317_s9  ;;  %v7890_v28 = vrot.slane %v6495_v32, 4  ;;  %vm7891_vm7 = vcmask 1014784  }
 0x355   :  { %v1627_v16 = vrot.slane %v1619_v36, 4  ;;  %vm7892_vm4 = vmmov %vm7891_vm7 }
 0x356   :  { %v6862_v63 = vpop.permute.xlu1 %1734  ;;  %3366 = vmatpush1.bf16.msra.mxu0 %v3310_v6  ;;  %3409 = vmatpush1.bf16.msra.mxu1 %v3316_v39 }
 0x357   :  { %v1634_v23 = vsel %vm752_vm13, %v7890_v28, %v1627_v16  ;;  %v1636_v38 = vsel %vm752_vm13, %v1627_v16, %v7815_v12  ;;  %v7812_v16 = vrot.slane %v6731_v8, 4 }
 0x358   :  { %v6872_v60 = vsel %vm7891_vm7, %v6495_v32, %v1634_v23  ;;  %v6875_v30 = vsel %vm7892_vm4, %v1619_v36, %v1636_v38  ;;  %v1695_v41 = vpop.permute.xlu0 %1694  ;;  %1968 = vrot.lane.b32.xlu1 %v6601_v22, %s5319_s11  ;;  %v7893_v32 = vrot.slane %v6509_v35, 4  ;;  %vm7894_vm7 = vcmask 998400  }
 0x359   :  { %v1703_v20 = vrot.slane %v1695_v41, 4  ;;  %3372 = vmatmul.mubr.bf16.vlgmr.msra.gmra.mrb[8].mxu0 %v5203_v1  ;;  %3415 = vmatmul.mubr.bf16.vlgmr.msra.gmra.mrb[16].mxu1 %v5203_v1  ;;  %vm7895_vm4 = vmmov %vm7894_vm7  ;;  %v7896_v23 = vrot.slane %v6525_v17, 4 }
 0x35a   :  { %v6880_v31 = vpop.permute.xlu1 %1810  ;;  %4844 = vmatprep.mubr.msk.bf16.mxu0 %vm3303_vm3, %v5292_v40  ;;  %4845 = vmatprep.mubr.msk.bf16.mxu1 %vm3303_vm3, %v5292_v40 }
 0x35b   :  { %v1710_v6 = vsel %vm752_vm13, %v7893_v32, %v1703_v20  ;;  %v1712_v10 = vsel %vm752_vm13, %v1703_v20, %v7813_v43  ;;  %v7814_v32 = vrot.slane %v6746_v3, 4  ;;  %v2479_v43 = vld [vmem:[#allocation2 + $0x498] sm:$0x11] }
 0x35c   :  { %v6895_v33 = vsel %vm7894_vm7, %v6509_v35, %v1710_v6  ;;  %v6898_v39 = vsel %vm7895_vm4, %v1695_v41, %v1712_v10  ;;  %v1771_v36 = vpop.permute.xlu0 %1770  ;;  %2046 = vrot.lane.b32.xlu1 %v6601_v22, %s5321_s13  ;;  %vm7916_vm4 = vcmask 1006592  }
 0x35d   :  { %v1779_v1 = vrot.slane %v1771_v36, 4 }
 0x35e   :  { %v6903_v28 = vpop.permute.xlu1 %1888 }
 0x35f   :  { %v1786_v38 = vsel %vm752_vm13, %v7896_v23, %v1779_v1  ;;  %v1788_v35 = vsel %vm752_vm13, %v1779_v1, %v7812_v16  ;;  %v7897_v23 = vrot.slane %v6539_v58, 4 }
 0x360   :  { %v6913_v41 = vsel %vm849_vm15, %v6525_v17, %v1786_v38  ;;  %v6916_v20 = vsel %vm849_vm15, %v1771_v36, %v1788_v35  ;;  %v1848_v40 = vpop.permute.xlu0 %1847  ;;  %2123 = vrot.lane.b32.xlu1 %v6601_v22, %s5322_s14 }
 0x361   :  { %v1856_v6 = vrot.slane %v1848_v40, 4 }
 0x362   :  { %v6921_v10 = vpop.permute.xlu1 %1966 }
 0x363   :  { %v1864_v1 = vsel %vm752_vm13, %v7897_v23, %v1856_v6  ;;  %v1866_v17 = vsel %vm752_vm13, %v1856_v6, %v7814_v32  ;;  %v2480_v6 = vsel %vm6382_vm8, 1065369472, %v2479_v43  ;;  %v7898_v32 = vrot.slane %v6555_v13, 4 }
 0x364   :  { %v6931_v36 = vsel %vm1860_vm5, %v6539_v58, %v1864_v1  ;;  %v6934_v38 = vsel %vm1860_vm5, %v1848_v40, %v1866_v17  ;;  %v1926_v35 = vpop.permute.xlu0 %1925  ;;  %2201 = vrot.lane.b32.xlu1 %v6601_v22, %s5324_s16  ;;  %2481 = vst [vmem:[#allocation2 + $0x498] sm:$0x11] %v2480_v6  ;;  %vm7912_vm8 = vcmask 1022976  }
 0x365   :  { %v1934_v16 = vrot.slane %v1926_v35, 4  ;;  %vm7913_vm7 = vmmov %vm7912_vm8 }
 0x366   :  { %v6939_v23 = vpop.permute.xlu1 %2044 }
 0x367   :  { %v1942_v58 = vsel %vm752_vm13, %v7898_v32, %v1934_v16  ;;  %v1944_v40 = vsel %vm752_vm13, %v1934_v16, %v7817_v18 }
 0x368   :  { %v6951_v1 = vsel %vm1938_vm6, %v6555_v13, %v1942_v58  ;;  %v6954_v17 = vsel %vm1938_vm6, %v1926_v35, %v1944_v40  ;;  %v2004_v12 = vpop.permute.xlu0 %2003  ;;  %2279 = vrot.lane.b32.xlu1 %v6601_v22, %s5326_s18  ;;  %v7825_v40 = vrot.slane %v6791_v52, 4 }
 0x369   :  { %v2012_v43 = vrot.slane %v2004_v12, 4 }
 0x36a   :  { %v6959_v32 = vpop.permute.xlu1 %2121 }
 0x36b   :  { %v2020_v16 = vsel %vm752_vm13, %v7899_v46, %v2012_v43  ;;  %v2022_v13 = vsel %vm752_vm13, %v2012_v43, %v7820_v54  ;;  %v7900_v46 = vrot.slane %v6586_v9, 4  ;;  %v7832_v54 = vrot.slane %v6804_v19, 4 }
 0x36c   :  { %v6969_v35 = vsel %vm2016_vm2, %v6569_v37, %v2020_v16  ;;  %v6972_v6 = vsel %vm2016_vm2, %v2004_v12, %v2022_v13  ;;  %v2082_v58 = vpop.permute.xlu0 %2081  ;;  %2357 = vrot.lane.b32.xlu1 %v6601_v22, %s5328_s20 }
 0x36d   :  { %v2090_v18 = vrot.slane %v2082_v58, 4 }
 0x36e   :  { %v6977_v4 = vpop.permute.xlu1 %2199 }
 0x36f   :  { %v2097_v43 = vsel %vm752_vm13, %v7900_v46, %v2090_v18  ;;  %v2099_v37 = vsel %vm752_vm13, %v2090_v18, %v7825_v40  ;;  %v7901_v46 = vrot.slane %v6603_v56, 4 }
 0x370   :  { %v6987_v12 = vsel %vm891_vm10, %v6586_v9, %v2097_v43  ;;  %v6990_v16 = vsel %vm891_vm10, %v2082_v58, %v2099_v37  ;;  %v2159_v13 = vpop.permute.xlu0 %2158  ;;  %2434 = vrot.lane.b32.xlu1 %v6601_v22, %s5329_s21  ;;  %v7837_v37 = vrot.slane %v6821_v11, 4 }
 0x371   :  { %v2167_v61 = vrot.slane %v2159_v13, 4 }
 0x372   :  { %v6995_v59 = vpop.permute.xlu1 %2277 }
 0x373   :  { %v2175_v18 = vsel %vm752_vm13, %v7901_v46, %v2167_v61  ;;  %v2177_v9 = vsel %vm752_vm13, %v2167_v61, %v7832_v54  ;;  %v7904_v46 = vrot.slane %v6619_v14, 4  ;;  %v7907_v54 = vrot.slane %v6454_v26, 4 }
 0x374   :  { %v7005_v58 = vsel %vm2171_vm14, %v6603_v56, %v2175_v18  ;;  %v7008_v43 = vsel %vm2171_vm14, %v2159_v13, %v2177_v9  ;;  %v2237_v22 = vpop.permute.xlu0 %2236 }
 0x375   :  { %7902 = vst [vmem:[#allocation13_spill] sm:$0xff] %v7005_v58  ;;  %7903 = vst [vmem:[#allocation14_spill] sm:$0xff] %v7008_v43  ;;  %v2245_v40 = vrot.slane %v2237_v22, 4 }
 0x376   :  { %v1505_v52 = vpop.permute.xlu1 %1504 }
 0x377   :  { %v2253_v19 = vsel %vm752_vm13, %v7904_v46, %v2245_v40  ;;  %v2255_v61 = vsel %vm752_vm13, %v2245_v40, %v7837_v37  ;;  %v1513_v56 = vrot.slane %v1505_v52, 4 }
 0x378   :  { %v7020_v13 = vsel %vm2249_vm11, %v6619_v14, %v2253_v19  ;;  %v7023_v18 = vsel %vm2249_vm11, %v2237_v22, %v2255_v61  ;;  %v2315_v9 = vpop.permute.xlu0 %2314  ;;  %v2486_v22 = vld [vmem:[#allocation2 + $0x10] sm:$0xff]  ;;  %v7909_v61 = vrot.slane %v6633_v51, 4 }
 0x379   :  { %7905 = vst [vmem:[#allocation15_spill] sm:$0xff] %v7020_v13  ;;  %7906 = vst [vmem:[#allocation16_spill] sm:$0xff] %v7023_v18  ;;  %v1520_v49 = vsel %vm752_vm13, %v7907_v54, %v1513_v56  ;;  %v1522_v46 = vsel %vm752_vm13, %v1513_v56, %v7908_v25  ;;  %v2323_v11 = vrot.slane %v2315_v9, 4 }
 0x37a   :  { %v1521_v37 = vsel %vm172_vm0, %v6454_v26, %v1520_v49  ;;  %v1523_v14 = vsel %vm172_vm0, %v1505_v52, %v1522_v46  ;;  %v1581_v19 = vpop.permute.xlu1 %1580  ;;  %v1666_v49 = vrot.slane %v6839_v53, 4  ;;  %v7910_v26 = vrot.slane %v6338_v50, 4 }
 0x37b   :  { %v2331_v18 = vsel %vm752_vm13, %v7909_v61, %v2323_v11  ;;  %v1589_v13 = vrot.slane %v1581_v19, 4  ;;  %v4706_v54 = vcombine.low %v2486_v22, %v1521_v37  ;;  %v4707_v15 = vcombine.high %v2486_v22, %v1521_v37 }
 0x37c   :  { %v7040_v25 = vsel %vm2327_vm9, %v6633_v51, %v2331_v18  ;;  %v2393_v56 = vpop.permute.xlu0 %2392  ;;  %v4708_v40 = vcombine.low %v2487_v42, %v1523_v14  ;;  %v4709_v43 = vcombine.high %v2487_v42, %v1523_v14  ;;  %v7911_v46 = vrot.slane %v6832_v5, 4 }
 0x37d   :  { %v1596_v52 = vsel %vm752_vm13, %v7910_v26, %v1589_v13  ;;  %v2401_v58 = vrot.slane %v2393_v56, 4  ;;  %3425 = vmatprep.subr.bf16.mxu0 %v4707_v15  ;;  %v7914_v42 = vrot.slane %v6652_v7, 4  ;;  %v1742_v26 = vrot.slane %v6862_v63, 4 }
 0x37e   :  { %v1598_v61 = vsel %vm752_vm13, %v1589_v13, %v7911_v46  ;;  %v1597_v37 = vsel %vm7912_vm8, %v6338_v50, %v1596_v52  ;;  %v1657_v18 = vpop.permute.xlu1 %1656  ;;  %3468 = vmatprep.subr.bf16.mxu1 %v4709_v43  ;;  %3426 = vmatpush1.bf16.msra.mxu0 %v4706_v54  ;;  %v7915_v52 = vrot.slane %v6346_v48, 4  ;;  %vm7917_vm8 = vmmov %vm7916_vm4 }
 0x37f   :  { %v1599_v51 = vsel %vm7913_vm7, %v1581_v19, %v1598_v61  ;;  %1609 = vst [vmem:[#allocation2 + $0x94] sm:$0xff] %v1597_v37  ;;  %v2408_v14 = vsel %vm752_vm13, %v7914_v42, %v2401_v58  ;;  %v1665_v22 = vrot.slane %v1657_v18, 4  ;;  %3469 = vmatpush1.bf16.msra.mxu1 %v4708_v40  ;;  %v4716_v13 = vcombine.low %v6851_v27, %v1597_v37 }
 0x380   :  { %1610 = vst [vmem:[#allocation2 + $0x9c] sm:$0xff] %v1599_v51  ;;  %v4717_v15 = vcombine.high %v6851_v27, %v1597_v37  ;;  %v7059_v50 = vsel %vm976_vm12, %v6652_v7, %v2408_v14  ;;  %v7061_v19 = vpop.permute.xlu0 %2316  ;;  %v4718_v43 = vcombine.low %v6854_v55, %v1599_v51  ;;  %v4719_v54 = vcombine.high %v6854_v55, %v1599_v51 }
 0x381   :  { %v1672_v40 = vsel %vm752_vm13, %v7915_v52, %v1665_v22  ;;  %v1674_v27 = vsel %vm752_vm13, %v1665_v22, %v1666_v49  ;;  %v2324_v46 = vrot.slane %v7061_v19, 4  ;;  %vm7919_vm7 = vcmask 990208  }
 0x382   :  { %3427 = vmatprep.subr.bf16.mxu0 %v4717_v15  ;;  %v1673_v7 = vsel %vm7916_vm4, %v6346_v48, %v1672_v40  ;;  %v1675_v61 = vsel %vm7917_vm8, %v1657_v18, %v1674_v27  ;;  %v1733_v37 = vpop.permute.xlu1 %1732  ;;  %3470 = vmatprep.subr.bf16.mxu1 %v4719_v54  ;;  %v7918_v54 = vrot.slane %v6354_v29, 4  ;;  %vm7920_vm4 = vmmov %vm7919_vm7  ;;  %vm7923_vm8 = vcmask 1031168  }
 0x383   :  { %3428 = vmatpush1.bf16.msra.mxu0 %v4716_v13  ;;  %v2333_v55 = vsel %vm752_vm13, %v2323_v11, %v2324_v46  ;;  %v1741_v51 = vrot.slane %v1733_v37, 4  ;;  %3471 = vmatpush1.bf16.msra.mxu1 %v4718_v43  ;;  %v4726_v42 = vcombine.low %v6872_v60, %v1673_v7  ;;  %v4727_v14 = vcombine.high %v6872_v60, %v1673_v7 }
 0x384   :  { %v7082_v22 = vsel %vm2327_vm9, %v2315_v9, %v2333_v55  ;;  %v7084_v15 = vpop.permute.xlu0 %2394  ;;  %v4728_v48 = vcombine.low %v6875_v30, %v1675_v61  ;;  %v4729_v18 = vcombine.high %v6875_v30, %v1675_v61  ;;  %v1818_v13 = vrot.slane %v6880_v31, 4 }
 0x385   :  { %v1748_v11 = vsel %vm752_vm13, %v7918_v54, %v1741_v51  ;;  %v1750_v43 = vsel %vm752_vm13, %v1741_v51, %v1742_v26  ;;  %v2402_v60 = vrot.slane %v7084_v15, 4  ;;  %3429 = vmatprep.subr.bf16.mxu0 %v4727_v14  ;;  %v7921_v14 = vrot.slane %v6362_v45, 4 }
 0x386   :  { %v1749_v9 = vsel %vm7919_vm7, %v6354_v29, %v1748_v11  ;;  %v1751_v52 = vsel %vm7920_vm4, %v1733_v37, %v1750_v43  ;;  %v1809_v40 = vpop.permute.xlu1 %1808  ;;  %3472 = vmatprep.subr.bf16.mxu1 %v4729_v18  ;;  %vm7925_vm7 = vcmask 957440  }
 0x387   :  { %3430 = vmatpush1.bf16.msra.mxu0 %v4726_v42  ;;  %v2410_v30 = vsel %vm752_vm13, %v2401_v58, %v2402_v60  ;;  %v1817_v27 = vrot.slane %v1809_v40, 4  ;;  %3473 = vmatpush1.bf16.msra.mxu1 %v4728_v48  ;;  %v4736_v7 = vcombine.low %v6895_v33, %v1749_v9  ;;  %v4737_v61 = vcombine.high %v6895_v33, %v1749_v9  ;;  %vm7926_vm4 = vmmov %vm7925_vm7 }
 0x388   :  { %v7105_v55 = vsel %vm976_vm12, %v2393_v56, %v2410_v30  ;;  %v1547_v51 = vpop.permute.xlu0 %1546  ;;  %v4738_v29 = vcombine.low %v6898_v39, %v1751_v52  ;;  %v4739_v37 = vcombine.high %v6898_v39, %v1751_v52  ;;  %v1896_v42 = vrot.slane %v6903_v28, 4 }
 0x389   :  { %v1825_v58 = vsel %vm752_vm13, %v7921_v14, %v1817_v27  ;;  %v1827_v48 = vsel %vm752_vm13, %v1817_v27, %v1818_v13  ;;  %v1553_v18 = vrot.slane %v1547_v51, 4  ;;  %3431 = vmatprep.subr.bf16.mxu0 %v4737_v61  ;;  %v7922_v39 = vrot.slane %v6682_v47, 4 }
 0x38a   :  { %v1826_v33 = vsel %vm1821_vm1, %v6362_v45, %v1825_v58  ;;  %v1828_v56 = vsel %vm1821_vm1, %v1809_v40, %v1827_v48  ;;  %v1887_v54 = vpop.permute.xlu1 %1886  ;;  %3474 = vmatprep.subr.bf16.mxu1 %v4739_v37  ;;  %v7924_v61 = vrot.slane %v6370_v21, 4 }
 0x38b   :  { %3432 = vmatpush1.bf16.msra.mxu0 %v4736_v7  ;;  %v1562_v11 = vsel %vm752_vm13, %v7922_v39, %v1553_v18  ;;  %v1895_v43 = vrot.slane %v1887_v54, 4  ;;  %3475 = vmatpush1.bf16.msra.mxu1 %v4738_v29  ;;  %v4746_v9 = vcombine.low %v6913_v41, %v1826_v33  ;;  %v4747_v52 = vcombine.high %v6913_v41, %v1826_v33 }
 0x38c   :  { %v7126_v30 = vsel %vm7923_vm8, %v6682_v47, %v1562_v11  ;;  %v1623_v45 = vpop.permute.xlu0 %1622  ;;  %v4748_v40 = vcombine.low %v6916_v20, %v1828_v56  ;;  %v4749_v27 = vcombine.high %v6916_v20, %v1828_v56  ;;  %v1974_v7 = vrot.slane %v6921_v10, 4 }
 0x38d   :  { %v1903_v51 = vsel %vm752_vm13, %v7924_v61, %v1895_v43  ;;  %v1905_v29 = vsel %vm752_vm13, %v1895_v43, %v1896_v42  ;;  %v1629_v41 = vrot.slane %v1623_v45, 4  ;;  %3433 = vmatprep.subr.bf16.mxu0 %v4747_v52  ;;  %v7927_v20 = vrot.slane %v6697_v0, 4 }
 0x38e   :  { %v1904_v47 = vsel %vm7925_vm7, %v6370_v21, %v1903_v51  ;;  %v1906_v37 = vsel %vm7926_vm4, %v1887_v54, %v1905_v29  ;;  %v1965_v14 = vpop.permute.xlu1 %1964  ;;  %3476 = vmatprep.subr.bf16.mxu1 %v4749_v27  ;;  %vm7928_vm8 = vcmask 1014784   ;;  %v2052_v11 = vrot.slane %v6939_v23, 4 }
 0x38f   :  { %3434 = vmatpush1.bf16.msra.mxu0 %v4746_v9  ;;  %v1638_v58 = vsel %vm752_vm13, %v7927_v20, %v1629_v41  ;;  %v1973_v48 = vrot.slane %v1965_v14, 4  ;;  %3477 = vmatpush1.bf16.msra.mxu1 %v4748_v40  ;;  %v4756_v18 = vcombine.low %v6931_v36, %v1904_v47  ;;  %v4757_v33 = vcombine.high %v6931_v36, %v1904_v47 }
 0x390   :  { %v7147_v56 = vsel %vm7928_vm8, %v6697_v0, %v1638_v58  ;;  %v1699_v21 = vpop.permute.xlu0 %1698  ;;  %v4758_v54 = vcombine.low %v6934_v38, %v1906_v37  ;;  %v4759_v39 = vcombine.high %v6934_v38, %v1906_v37  ;;  %v7929_v43 = vrot.slane %v6378_v24, 4 }
 0x391   :  { %v1983_v52 = vsel %vm752_vm13, %v1973_v48, %v1974_v7  ;;  %v1705_v36 = vrot.slane %v1699_v21, 4  ;;  %3435 = vmatprep.subr.bf16.mxu0 %v4757_v33  ;;  %vm7930_vm7 = vcmask 941056   ;;  %v7932_v38 = vrot.slane %v6714_v44, 4 }
 0x392   :  { %v1981_v9 = vsel %vm752_vm13, %v7929_v43, %v1973_v48  ;;  %vm7931_vm4 = vmmov %vm7930_vm7  ;;  %v2043_v40 = vpop.permute.xlu1 %2042  ;;  %3478 = vmatprep.subr.bf16.mxu1 %v4759_v39  ;;  %vm7933_vm8 = vcmask 998400   ;;  %v7934_v20 = vrot.slane %v6394_v2, 4 }
 0x393   :  { %v1982_v0 = vsel %vm7930_vm7, %v6378_v24, %v1981_v9  ;;  %v1984_v45 = vsel %vm7931_vm4, %v1965_v14, %v1983_v52  ;;  %3436 = vmatpush1.bf16.msra.mxu0 %v4756_v18  ;;  %v1714_v27 = vsel %vm752_vm13, %v7932_v38, %v1705_v36  ;;  %v2051_v61 = vrot.slane %v2043_v40, 4  ;;  %3479 = vmatpush1.bf16.msra.mxu1 %v4758_v54 }
 0x394   :  { %v4766_v51 = vcombine.low %v6951_v1, %v1982_v0  ;;  %v4767_v29 = vcombine.high %v6951_v1, %v1982_v0  ;;  %v7168_v41 = vsel %vm7933_vm8, %v6714_v44, %v1714_v27  ;;  %v1775_v24 = vpop.permute.xlu0 %1774  ;;  %v4768_v47 = vcombine.low %v6954_v17, %v1984_v45 }
 0x395   :  { %v4769_v37 = vcombine.high %v6954_v17, %v1984_v45  ;;  %v2129_v14 = vrot.slane %v6959_v32, 4  ;;  %v2059_v58 = vsel %vm752_vm13, %v7934_v20, %v2051_v61  ;;  %v2061_v48 = vsel %vm752_vm13, %v2051_v61, %v2052_v11 }
 0x396   :  { %v1781_v1 = vrot.slane %v1775_v24, 4  ;;  %3437 = vmatprep.subr.bf16.mxu0 %v4767_v29  ;;  %vm7935_vm7 = vcmask 924672   ;;  %v2120_v33 = vpop.permute.xlu1 %2119  ;;  %v7937_v17 = vrot.slane %v6731_v8, 4  ;;  %v2207_v0 = vrot.slane %v6977_v4, 4 }
 0x397   :  { %v2060_v44 = vsel %vm7935_vm7, %v6394_v2, %v2059_v58  ;;  %vm7936_vm4 = vmmov %vm7935_vm7  ;;  %3480 = vmatprep.subr.bf16.mxu1 %v4769_v37  ;;  %3438 = vmatpush1.bf16.msra.mxu0 %v4766_v51  ;;  %v2128_v54 = vrot.slane %v2120_v33, 4  ;;  %v7938_v45 = vrot.slane %v6402_v62, 4 }
 0x398   :  { %v2062_v18 = vsel %vm7936_vm4, %v2043_v40, %v2061_v48  ;;  %v1790_v21 = vsel %vm752_vm13, %v7937_v17, %v1781_v1  ;;  %3481 = vmatpush1.bf16.msra.mxu1 %v4768_v47  ;;  %v4776_v39 = vcombine.low %v6969_v35, %v2060_v44  ;;  %v4777_v43 = vcombine.high %v6969_v35, %v2060_v44  ;;  %v1852_v2 = vpop.permute.xlu0 %1851 }
 0x399   :  { %v7189_v9 = vsel %vm849_vm15, %v6731_v8, %v1790_v21  ;;  %v4778_v52 = vcombine.low %v6972_v6, %v2062_v18  ;;  %v4779_v36 = vcombine.high %v6972_v6, %v2062_v18  ;;  %v2136_v40 = vsel %vm752_vm13, %v7938_v45, %v2128_v54 }
 0x39a   :  { %v2138_v38 = vsel %vm752_vm13, %v2128_v54, %v2129_v14  ;;  %v1858_v35 = vrot.slane %v1852_v2, 4  ;;  %3439 = vmatprep.subr.bf16.mxu0 %v4777_v43  ;;  %vm7939_vm15 = vcmask 908288   ;;  %v2198_v61 = vpop.permute.xlu1 %2197  ;;  %v7941_v6 = vrot.slane %v6746_v3, 4 }
 0x39b   :  { %v2137_v8 = vsel %vm7939_vm15, %v6402_v62, %v2136_v40  ;;  %vm7940_vm8 = vmmov %vm7939_vm15  ;;  %3482 = vmatprep.subr.bf16.mxu1 %v4779_v36  ;;  %3440 = vmatpush1.bf16.msra.mxu0 %v4776_v39  ;;  %v2206_v29 = vrot.slane %v2198_v61, 4  ;;  %v2285_v48 = vrot.slane %v6995_v59, 4  ;;  %v7942_v1 = vrot.slane %v6410_v34, 4  ;;  %v7946_v39 = vld [vmem:[#allocation13_spill] sm:$0xff]  ;;  %v7947_v36 = vld [vmem:[#allocation14_spill] sm:$0xff] }
 0x39c   :  { %v2139_v27 = vsel %vm7940_vm8, %v2120_v33, %v2138_v38  ;;  %v1868_v51 = vsel %vm752_vm13, %v7941_v6, %v1858_v35  ;;  %3483 = vmatpush1.bf16.msra.mxu1 %v4778_v52  ;;  %v4786_v24 = vcombine.low %v6987_v12, %v2137_v8  ;;  %v4787_v47 = vcombine.high %v6987_v12, %v2137_v8  ;;  %v1930_v62 = vpop.permute.xlu0 %1929  ;;  %v7948_v38 = vld [vmem:[#allocation4_spill] sm:$0xff] }
 0x39d   :  { %v7210_v37 = vsel %vm1860_vm5, %v6746_v3, %v1868_v51  ;;  %v4788_v20 = vcombine.low %v6990_v16, %v2139_v27  ;;  %v4789_v58 = vcombine.high %v6990_v16, %v2139_v27  ;;  %v2214_v44 = vsel %vm752_vm13, %v7942_v1, %v2206_v29 }
 0x39e   :  { %v2216_v18 = vsel %vm752_vm13, %v2206_v29, %v2207_v0  ;;  %v1936_v12 = vrot.slane %v1930_v62, 4  ;;  %3441 = vmatprep.subr.bf16.mxu0 %v4787_v47  ;;  %vm7943_vm5 = vcmask 891904   ;;  %v2276_v17 = vpop.permute.xlu1 %2275  ;;  %v7945_v16 = vrot.slane %v6761_v57, 4  ;;  %v7952_v29 = vld [vmem:[#allocation8_spill] sm:$0xff] }
 0x39f   :  { %v2215_v3 = vsel %vm7943_vm5, %v6410_v34, %v2214_v44  ;;  %vm7944_vm7 = vmmov %vm7943_vm5  ;;  %3484 = vmatprep.subr.bf16.mxu1 %v4789_v58  ;;  %3442 = vmatpush1.bf16.msra.mxu0 %v4786_v24  ;;  %v2284_v54 = vrot.slane %v2276_v17, 4  ;;  %v7949_v35 = vrot.slane %v7948_v38, 4  ;;  %vm7950_vm4 = vcmask 875520  }
 0x3a0   :  { %v2217_v33 = vsel %vm7944_vm7, %v2198_v61, %v2216_v18  ;;  %v1946_v21 = vsel %vm752_vm13, %v7945_v16, %v1936_v12  ;;  %3485 = vmatpush1.bf16.msra.mxu1 %v4788_v20  ;;  %v4796_v43 = vcombine.low %v7946_v39, %v2215_v3  ;;  %v4797_v2 = vcombine.high %v7946_v39, %v2215_v3  ;;  %v2008_v34 = vpop.permute.xlu0 %2007  ;;  %v7954_v20 = vld [vmem:[#allocation15_spill] sm:$0xff]  ;;  %v7955_v12 = vld [vmem:[#allocation16_spill] sm:$0xff]  ;;  %vm7980_vm7 = vmmov %vm7950_vm4 }
 0x3a1   :  { %v7231_v52 = vsel %vm1938_vm6, %v6761_v57, %v1946_v21  ;;  %v4798_v45 = vcombine.low %v7947_v36, %v2217_v33  ;;  %v4799_v40 = vcombine.high %v7947_v36, %v2217_v33  ;;  %v2292_v8 = vsel %vm752_vm13, %v7949_v35, %v2284_v54  ;;  %vm7951_vm6 = vmmov %vm7950_vm4  ;;  %v2616_v39 = vld [vmem:[#allocation2 + $0x488] sm:$0x11] }
 0x3a2   :  { %v2294_v27 = vsel %vm752_vm13, %v2284_v54, %v2285_v48  ;;  %v2014_v61 = vrot.slane %v2008_v34, 4  ;;  %3443 = vmatprep.subr.bf16.mxu0 %v4797_v2  ;;  %v2293_v6 = vsel %vm7950_vm4, %v7948_v38, %v2292_v8  ;;  %v2354_v51 = vpop.permute.xlu1 %2353  ;;  %v7953_v24 = vrot.slane %v7952_v29, 4  ;;  %v7959_v34 = vld [vmem:[#allocation9_spill] sm:$0xff] }
 0x3a3   :  { %v2295_v57 = vsel %vm7951_vm6, %v2276_v17, %v2294_v27  ;;  %3486 = vmatprep.subr.bf16.mxu1 %v4799_v40  ;;  %3444 = vmatpush1.bf16.msra.mxu0 %v4796_v43  ;;  %v2362_v62 = vrot.slane %v2354_v51, 4  ;;  %v4806_v58 = vcombine.low %v7954_v20, %v2293_v6  ;;  %v4807_v1 = vcombine.high %v7954_v20, %v2293_v6  ;;  %v7956_v17 = vld [vmem:[#allocation5_spill] sm:$0xff]  ;;  %v7962_v20 = vld [vmem:[#allocation10_spill] sm:$0xff] }
 0x3a4   :  { %v2024_v47 = vsel %vm752_vm13, %v7953_v24, %v2014_v61  ;;  %3487 = vmatpush1.bf16.msra.mxu1 %v4798_v45  ;;  %v2086_v18 = vpop.permute.xlu0 %2085  ;;  %v4808_v3 = vcombine.low %v7955_v12, %v2295_v57  ;;  %v4809_v33 = vcombine.high %v7955_v12, %v2295_v57  ;;  %v7957_v16 = vrot.slane %v7956_v17, 4 }
 0x3a5   :  { %v7251_v44 = vsel %vm2016_vm2, %v7952_v29, %v2024_v47  ;;  %v2092_v54 = vrot.slane %v2086_v18, 4  ;;  %3445 = vmatprep.subr.bf16.mxu0 %v4807_v1  ;;  %vm7958_vm15 = vcmask 859136   ;;  %v7960_v36 = vrot.slane %v7959_v34, 4  ;;  %v2617_v47 = vld [vmem:[#allocation2 + $0x490] sm:$0x11] }
 0x3a6   :  { %v2370_v21 = vsel %vm752_vm13, %v7957_v16, %v2362_v62  ;;  %v7260_v2 = vpop.permute.xlu1 %2355  ;;  %3488 = vmatprep.subr.bf16.mxu1 %v4809_v33  ;;  %vm7961_vm2 = vmmov %vm7958_vm15  ;;  %v4837_v24 = vcombine.high %v2616_v39, %v2616_v39  ;;  %v7964_v33 = vld [vmem:[#allocation6_spill] sm:$0xff] }
 0x3a7   :  { %v2371_v43 = vsel %vm7958_vm15, %v7956_v17, %v2370_v21  ;;  %3446 = vmatpush1.bf16.msra.mxu0 %v4806_v58  ;;  %v2101_v45 = vsel %vm752_vm13, %v7960_v36, %v2092_v54  ;;  %v2363_v40 = vrot.slane %v7260_v2, 4  ;;  %v7963_v58 = vrot.slane %v7962_v20, 4  ;;  %vm7981_vm4 = vmmov %vm7961_vm2 }
 0x3a8   :  { %3489 = vmatpush1.bf16.msra.mxu1 %v4808_v3  ;;  %v4816_v38 = vcombine.low %v7040_v25, %v2371_v43  ;;  %v4817_v35 = vcombine.high %v7040_v25, %v2371_v43  ;;  %v7270_v8 = vsel %vm891_vm10, %v7959_v34, %v2101_v45  ;;  %v2163_v27 = vpop.permute.xlu0 %2162  ;;  %vm7966_vm10 = vcmask 842752   ;;  %v7967_v34 = vld [vmem:[#allocation11_spill] sm:$0xff]  ;;  %v7968_v45 = vld [vmem:[#allocation12_spill] sm:$0xff] }
 0x3a9   :  { %v2372_v61 = vsel %vm752_vm13, %v2362_v62, %v2363_v40  ;;  %v2169_v6 = vrot.slane %v2163_v27, 4  ;;  %v4836_v43 = vcombine.low %v2616_v39, %v2616_v39  ;;  %v4839_v36 = vcombine.high %v2617_v47, %v2617_v47  ;;  %vm7982_vm6 = vmmov %vm7966_vm10 }
 0x3aa   :  { %3447 = vmatprep.subr.bf16.mxu0 %v4817_v35  ;;  %v2373_v57 = vsel %vm7961_vm2, %v2354_v51, %v2372_v61  ;;  %v2431_v29 = vpop.permute.xlu1 %2430  ;;  %v7965_v51 = vrot.slane %v7964_v33, 4 }
 0x3ab   :  { %3448 = vmatpush1.bf16.msra.mxu0 %v4816_v38  ;;  %v2179_v25 = vsel %vm752_vm13, %v7963_v58, %v2169_v6  ;;  %v2439_v1 = vrot.slane %v2431_v29, 4  ;;  %v4818_v18 = vcombine.low %v7082_v22, %v2373_v57  ;;  %v4819_v12 = vcombine.high %v7082_v22, %v2373_v57 }
 0x3ac   :  { %v7283_v62 = vsel %vm2171_vm14, %v7962_v20, %v2179_v25  ;;  %v2241_v3 = vpop.permute.xlu0 %2240  ;;  %v3325_v22 = vand.u32 %v4837_v24, %v7967_v34  ;;  %v7969_v38 = vrot.slane %v7968_v45, 4  ;;  %vm7970_vm14 = vmmov %vm7966_vm10 }
 0x3ad   :  { %v2447_v17 = vsel %vm752_vm13, %v7965_v51, %v2439_v1  ;;  %v2247_v16 = vrot.slane %v2241_v3, 4  ;;  %3490 = vmatprep.subr.bf16.mxu1 %v4819_v12  ;;  %v4838_v12 = vcombine.low %v2617_v47, %v2617_v47 }
 0x3ae   :  { %v2448_v21 = vsel %vm7966_vm10, %v7964_v33, %v2447_v17  ;;  %v7290_v54 = vpop.permute.xlu1 %2432  ;;  %3491 = vmatpush1.bf16.msra.mxu1 %v4818_v18  ;;  %v3322_v18 = vand.u32 %v4836_v43, %v7967_v34 }
 0x3af   :  { %v2257_v35 = vsel %vm752_vm13, %v7969_v38, %v2247_v16  ;;  %v2440_v27 = vrot.slane %v7290_v54, 4  ;;  %v4826_v61 = vcombine.low %v7059_v50, %v2448_v21  ;;  %v4827_v6 = vcombine.high %v7059_v50, %v2448_v21  ;;  %v7971_v16 = vld [vmem:[#allocation7_spill] sm:$0xff] }
 0x3b0   :  { %v7301_v57 = vsel %vm2249_vm11, %v7968_v45, %v2257_v35  ;;  %v2319_v20 = vpop.permute.xlu0 %2318  ;;  %v3331_v50 = vand.u32 %v4839_v36, %v7967_v34  ;;  %v7972_v21 = vrot.slane %v7971_v16, 4  ;;  %vm7979_vm11 = vcmask 924672  }
 0x3b1   :  { %v2449_v39 = vsel %vm752_vm13, %v2439_v1, %v2440_v27  ;;  %v2325_v24 = vrot.slane %v2319_v20, 4  ;;  %3449 = vmatprep.subr.bf16.mxu0 %v4827_v6  ;;  %v7973_v20 = vrot.slane %v6832_v5, 4 }
 0x3b2   :  { %v2450_v58 = vsel %vm7970_vm14, %v2431_v29, %v2449_v39  ;;  %v1509_v25 = vpop.permute.xlu1 %1508  ;;  %3450 = vmatpush1.bf16.msra.mxu0 %v4826_v61  ;;  %v5212_v61 = vld [vmem:[%s7766_s3 + $0x40] sm:$0xff]  }
 0x3b3   :  { %v2335_v3 = vsel %vm752_vm13, %v2324_v46, %v2325_v24  ;;  %v1515_v33 = vrot.slane %v1509_v25, 4  ;;  %3451 = vmatprep.subr.bf16.mxu0 %v3325_v22  ;;  %v4828_v51 = vcombine.low %v7105_v55, %v2450_v58  ;;  %v4829_v1 = vcombine.high %v7105_v55, %v2450_v58  ;;  %v2488_v22 = vld [vmem:[#allocation2 + $0x20] sm:$0xff] }
 0x3b4   :  { %v7316_v29 = vsel %vm2327_vm9, %v7061_v19, %v2335_v3  ;;  %v2397_v17 = vpop.permute.xlu0 %2396  ;;  %v3328_v55 = vand.u32 %v4838_v12, %v7967_v34  ;;  %vm7978_vm9 = vcmask 941056  }
 0x3b5   :  { %v1524_v47 = vsel %vm752_vm13, %v7972_v21, %v1515_v33  ;;  %v2403_v43 = vrot.slane %v2397_v17, 4  ;;  %3492 = vmatprep.subr.bf16.mxu1 %v4829_v1 }
 0x3b6   :  { %v1525_v46 = vsel %vm172_vm0, %v7971_v16, %v1524_v47  ;;  %v1585_v36 = vpop.permute.xlu1 %1584  ;;  %3452 = vmatpush1.bf16.msra.mxu0 %v3322_v18  ;;  %3493 = vmatpush1.bf16.msra.mxu1 %v4828_v51  ;;  %vm7974_vm0 = vcmask 1022976   ;;  %v5215_v51 = vld [vmem:[%s7766_s3 + $0x8] sm:$0xff]  }
 0x3b7   :  { %v2412_v19 = vsel %vm752_vm13, %v2402_v60, %v2403_v43  ;;  %v1591_v45 = vrot.slane %v1585_v36, 4  ;;  %3494 = vmatprep.subr.bf16.mxu1 %v3331_v50  ;;  %v4710_v38 = vcombine.low %v2488_v22, %v1525_v46  ;;  %v4711_v35 = vcombine.high %v2488_v22, %v1525_v46  ;;  %v7340_v60 = vld [vmem:[%s7765_s2] ss:$8 sps:$4 sm:$0xff]   ;;  %v5294_v50 = vld [vmem:[%s7765_s2 + $0x4] ss:$8 sps:$4 sm:$0xff]  }
 0x3b8   :  { %v7332_v6 = vsel %vm976_vm12, %v7084_v15, %v2412_v19  ;;  %v5213_v15 = vld [vmem:[%s7766_s3] sm:$0xff]   ;;  %vm7975_vm12 = vcmask 1006592  }
 0x3b9   :  { %v1600_v39 = vsel %vm752_vm13, %v7973_v20, %v1591_v45  ;;  %3458 = vmatmul.mubr.bf16.vlgmr.msra.gmra.mrb[12].mxu0 %v7340_v60  ;;  %3511 = vmatprep.subr.bf16.mxu0 %v4711_v35 }
 0x3ba   :  { %v1601_v24 = vsel %vm7974_vm0, %v6832_v5, %v1600_v39  ;;  %v1661_v58 = vpop.permute.xlu1 %1660  ;;  %3495 = vmatpush1.bf16.msra.mxu1 %v3328_v55  ;;  %3512 = vmatpush1.bf16.msra.mxu0 %v4710_v38  ;;  %v5214_v5 = vld [vmem:[%s7766_s3 + $0x48] sm:$0xff]  }
 0x3bb   :  { %1611 = vst [vmem:[#allocation2 + $0xa4] sm:$0xff] %v1601_v24  ;;  %v1667_v25 = vrot.slane %v1661_v58, 4  ;;  %v4720_v18 = vcombine.low %v7126_v30, %v1601_v24  ;;  %v4721_v12 = vcombine.high %v7126_v30, %v1601_v24  ;;  %4846 = vmatprep.mubr.msk.bf16.mxu0 %vm3303_vm3, %v5294_v50  ;;  %4946 = vmatprep.subr.bf16.mxu1 %v5212_v61  ;;  %vm7976_vm3 = vcmask 990208  }
 0x3bd   :  { %v1676_v3 = vsel %vm752_vm13, %v1666_v49, %v1667_v25  ;;  %3501 = vmatmul.mubr.bf16.vlgmr.msra.gmra.mrb[20].mxu1 %v7340_v60  ;;  %3513 = vmatprep.subr.bf16.mxu0 %v4721_v12  ;;  %v5216_v49 = vld [vmem:[%s7766_s3 + $0x50] sm:$0xff]  }
 0x3be   :  { %v1677_v30 = vsel %vm7975_vm12, %v6839_v53, %v1676_v3  ;;  %v1737_v33 = vpop.permute.xlu1 %1736  ;;  %3514 = vmatpush1.bf16.msra.mxu0 %v4720_v18  ;;  %4947 = vmatpush3.bf16.msra.mxu1 %v5213_v15 }
 0x3bf   :  { %v1743_v1 = vrot.slane %v1737_v33, 4  ;;  %v4730_v17 = vcombine.low %v7147_v56, %v1677_v30  ;;  %v4731_v16 = vcombine.high %v7147_v56, %v1677_v30  ;;  %4948 = vmatprep.subr.bf16.mxu1 %v5214_v5  ;;  %v5217_v56 = vld [vmem:[%s7766_s3 + $0x10] sm:$0xff]  }
 0x3c1   :  { %v1752_v53 = vsel %vm752_vm13, %v1742_v26, %v1743_v1  ;;  %3515 = vmatprep.subr.bf16.mxu0 %v4731_v16  ;;  %v5218_v26 = vld [vmem:[%s7766_s3 + $0x58] sm:$0xff]  }
 0x3c2   :  { %v1753_v21 = vsel %vm7976_vm3, %v6862_v63, %v1752_v53  ;;  %v1813_v47 = vpop.permute.xlu1 %1812  ;;  %3516 = vmatpush1.bf16.msra.mxu0 %v4730_v17  ;;  %4949 = vmatpush3.bf16.msra.mxu1 %v5215_v51 }
 0x3c3   :  { %v1819_v43 = vrot.slane %v1813_v47, 4  ;;  %v4740_v46 = vcombine.low %v7168_v41, %v1753_v21  ;;  %v4741_v36 = vcombine.high %v7168_v41, %v1753_v21  ;;  %4950 = vmatprep.subr.bf16.mxu1 %v5216_v49  ;;  %v5219_v41 = vld [vmem:[%s7766_s3 + $0x18] sm:$0xff]  }
 0x3c5   :  { %v1829_v63 = vsel %vm752_vm13, %v1818_v13, %v1819_v43  ;;  %3517 = vmatprep.subr.bf16.mxu0 %v4741_v36  ;;  %v5220_v13 = vld [vmem:[%s7766_s3 + $0x60] sm:$0xff]  }
 0x3c6   :  { %v1830_v22 = vsel %vm1821_vm1, %v6880_v31, %v1829_v63  ;;  %v1891_v55 = vpop.permute.xlu1 %1890  ;;  %3518 = vmatpush1.bf16.msra.mxu0 %v4740_v46  ;;  %4951 = vmatpush3.bf16.msra.mxu1 %v5217_v56  ;;  %vm7977_vm1 = vcmask 957440   ;;  %v2618_v63 = vld [vmem:[#allocation2 + $0x498] sm:$0x11] }
 0x3c7   :  { %v1897_v19 = vrot.slane %v1891_v55, 4  ;;  %v4750_v45 = vcombine.low %v7189_v9, %v1830_v22  ;;  %v4751_v38 = vcombine.high %v7189_v9, %v1830_v22  ;;  %4952 = vmatprep.subr.bf16.mxu1 %v5218_v26  ;;  %v5221_v9 = vld [vmem:[%s7766_s3 + $0x20] sm:$0xff]  }
 0x3c9   :  { %v1907_v31 = vsel %vm752_vm13, %v1896_v42, %v1897_v19  ;;  %3519 = vmatprep.subr.bf16.mxu0 %v4751_v38  ;;  %v5222_v42 = vld [vmem:[%s7766_s3 + $0x68] sm:$0xff]   ;;  %v4841_v19 = vcombine.high %v2618_v63, %v2618_v63 }
 0x3ca   :  { %v1908_v35 = vsel %vm7977_vm1, %v6903_v28, %v1907_v31  ;;  %v1969_v61 = vpop.permute.xlu1 %1968  ;;  %3520 = vmatpush1.bf16.msra.mxu0 %v4750_v45  ;;  %4953 = vmatpush3.bf16.msra.mxu1 %v5219_v41  ;;  %v4840_v45 = vcombine.low %v2618_v63, %v2618_v63  ;;  %v5250_v31 = vld [vmem:[%s7766_s3 + $0x150] sm:$0xff]  }
 0x3cb   :  { %v1975_v20 = vrot.slane %v1969_v61, 4  ;;  %v4760_v39 = vcombine.low %v7210_v37, %v1908_v35  ;;  %v4761_v24 = vcombine.high %v7210_v37, %v1908_v35  ;;  %4954 = vmatprep.subr.bf16.mxu1 %v5220_v13  ;;  %v5223_v37 = vld [vmem:[%s7766_s3 + $0x28] sm:$0xff]   ;;  %v3337_v13 = vand.u32 %v4841_v19, %v7967_v34  ;;  %v5252_v35 = vld [vmem:[%s7766_s3 + $0x110] sm:$0xff]   ;;  %v5256_v61 = vld [vmem:[%s7766_s3 + $0x118] sm:$0xff]  }
 0x3cd   :  { %v1985_v28 = vsel %vm752_vm13, %v1974_v7, %v1975_v20  ;;  %3521 = vmatprep.subr.bf16.mxu0 %v4761_v24  ;;  %v5224_v7 = vld [vmem:[%s7766_s3 + $0x70] sm:$0xff]   ;;  %v5260_v20 = vld [vmem:[%s7766_s3 + $0x120] sm:$0xff]  }
 0x3ce   :  { %v1986_v58 = vsel %vm7978_vm9, %v6921_v10, %v1985_v28  ;;  %v2047_v15 = vpop.permute.xlu1 %2046  ;;  %3522 = vmatpush1.bf16.msra.mxu0 %v4760_v39  ;;  %4955 = vmatpush3.bf16.msra.mxu1 %v5221_v9  ;;  %v5258_v9 = vld [vmem:[%s7766_s3 + $0x160] sm:$0xff]   ;;  %v5262_v39 = vld [vmem:[%s7766_s3 + $0x168] sm:$0xff]  }
 0x3cf   :  { %v2053_v25 = vrot.slane %v2047_v15, 4  ;;  %v4770_v18 = vcombine.low %v7231_v52, %v1986_v58  ;;  %v4771_v12 = vcombine.high %v7231_v52, %v1986_v58  ;;  %4956 = vmatprep.subr.bf16.mxu1 %v5222_v42  ;;  %v5225_v52 = vld [vmem:[%s7766_s3 + $0x30] sm:$0xff]   ;;  %v3604_v24 = vld [vmem:[%s7767_s4] sm:$0xff]  ;;  %v7983_v42 = vmov 0   ;;  %v5264_v15 = vld [vmem:[%s7766_s3 + $0x128] sm:$0xff]  }
 0x3d1   :  { %v2063_v10 = vsel %vm752_vm13, %v2052_v11, %v2053_v25  ;;  %3523 = vmatprep.subr.bf16.mxu0 %v4771_v12  ;;  %v5226_v11 = vld [vmem:[%s7766_s3 + $0x78] sm:$0xff]   ;;  %v5266_v12 = vld [vmem:[%s7766_s3 + $0x170] sm:$0xff]  }
 0x3d2   :  { %v2064_v50 = vsel %vm7979_vm11, %v6939_v23, %v2063_v10  ;;  %v2124_v5 = vpop.permute.xlu1 %2123  ;;  %3524 = vmatpush1.bf16.msra.mxu0 %v4770_v18  ;;  %4957 = vmatpush3.bf16.msra.mxu1 %v5223_v37  ;;  %v7984_v37 = vld [vmem:[#allocation3_spill] sm:$0xff]  ;;  %v5268_v10 = vld [vmem:[%s7766_s3 + $0x130] sm:$0xff]  }
 0x3d3   :  { %v2130_v3 = vrot.slane %v2124_v5, 4  ;;  %v4780_v30 = vcombine.low %v7251_v44, %v2064_v50  ;;  %v4781_v33 = vcombine.high %v7251_v44, %v2064_v50  ;;  %4958 = vmatprep.subr.bf16.mxu1 %v5224_v7  ;;  %v5227_v44 = vld [vmem:[%s7766_s3 + $0x38] sm:$0xff]   ;;  %v7524_v25 = vsub.s32 0, %v7984_v37 }
 0x3d4   :  { %v7527_v18 = vsub.s32 2, %v7984_v37  ;;  %v3633_v50 = vsub.s32 6, %v7984_v37 }
 0x3d5   :  { %v2140_v23 = vsel %vm752_vm13, %v2129_v14, %v2130_v3  ;;  %3525 = vmatprep.subr.bf16.mxu0 %v4781_v33  ;;  %v5228_v14 = vld [vmem:[%s7766_s3 + $0xc0] sm:$0xff]   ;;  %v7540_v3 = vsub.s32 4, %v7984_v37  ;;  %v5272_v33 = vld [vmem:[%s7766_s3 + $0x138] sm:$0xff]  }
 0x3d6   :  { %v2141_v51 = vsel %vm7940_vm8, %v6959_v32, %v2140_v23  ;;  %v2202_v1 = vpop.permute.xlu1 %2201  ;;  %3526 = vmatpush1.bf16.msra.mxu0 %v4780_v30  ;;  %4959 = vmatpush3.bf16.msra.mxu1 %v5225_v52  ;;  %v5270_v30 = vld [vmem:[%s7766_s3 + $0x178] sm:$0xff]  }
 0x3d7   :  { %v2208_v17 = vrot.slane %v2202_v1, 4  ;;  %v4790_v16 = vcombine.low %v7270_v8, %v2141_v51  ;;  %v4791_v49 = vcombine.high %v7270_v8, %v2141_v51  ;;  %4960 = vmatprep.subr.bf16.mxu1 %v5226_v11  ;;  %v5276_v51 = vld [vmem:[%s7766_s3 + $0x240] sm:$0xff]  }
 0x3d9   :  { %v2218_v32 = vsel %vm752_vm13, %v2207_v0, %v2208_v17  ;;  %3527 = vmatprep.subr.bf16.mxu0 %v4791_v49 }
 0x3da   :  { %v2219_v53 = vsel %vm7943_vm5, %v6977_v4, %v2218_v32  ;;  %v2280_v21 = vpop.permute.xlu1 %2279  ;;  %3528 = vmatpush1.bf16.msra.mxu0 %v4790_v16  ;;  %4961 = vmatpush3.bf16.msra.mxu1 %v5227_v44 }
 0x3db   :  { %v2286_v47 = vrot.slane %v2280_v21, 4  ;;  %v4800_v56 = vcombine.low %v7283_v62, %v2219_v53  ;;  %v4801_v8 = vcombine.high %v7283_v62, %v2219_v53  ;;  %4968 = vmatprep.subr.bf16.mxu1 %v5228_v14 }
 0x3dd   :  { %v2296_v43 = vsel %vm752_vm13, %v2285_v48, %v2286_v47  ;;  %3529 = vmatprep.subr.bf16.mxu0 %v4801_v8 }
 0x3de   :  { %v2297_v0 = vsel %vm7980_vm7, %v6995_v59, %v2296_v43  ;;  %v2358_v46 = vpop.permute.xlu1 %2357  ;;  %3530 = vmatpush1.bf16.msra.mxu0 %v4800_v56 }
 0x3df   :  { %v2364_v4 = vrot.slane %v2358_v46, 4  ;;  %v4810_v36 = vcombine.low %v7301_v57, %v2297_v0  ;;  %v4811_v26 = vcombine.high %v7301_v57, %v2297_v0 }
 0x3e1   :  { %v2374_v62 = vsel %vm752_vm13, %v2363_v40, %v2364_v4  ;;  %3531 = vmatprep.subr.bf16.mxu0 %v4811_v26 }
 0x3e2   :  { %v2375_v48 = vsel %vm7981_vm4, %v7260_v2, %v2374_v62  ;;  %v2435_v22 = vpop.permute.xlu1 %2434  ;;  %3532 = vmatpush1.bf16.msra.mxu0 %v4810_v36 }
 0x3e3   :  { %v2441_v55 = vrot.slane %v2435_v22, 4  ;;  %v4820_v59 = vcombine.low %v7316_v29, %v2375_v48  ;;  %v4821_v41 = vcombine.high %v7316_v29, %v2375_v48  ;;  %v3334_v29 = vand.u32 %v4840_v45, %v7967_v34  ;;  %v5248_v34 = vld [vmem:[%s7766_s3 + $0x108] sm:$0xff]  }
 0x3e5   :  { %v2451_v57 = vsel %vm752_vm13, %v2440_v27, %v2441_v55  ;;  %3533 = vmatprep.subr.bf16.mxu0 %v4821_v41  ;;  %v5244_v27 = vld [vmem:[%s7766_s3 + $0x140] sm:$0xff]   ;;  %vm3606_vm13 = vcmp.ne.bf16.partialorder %v3604_v24, 0  ;;  %v5232_v24 = vld [vmem:[%s7766_s3 + $0xd0] sm:$0xff]  }
 0x3e6   :  { %v2452_v40 = vsel %vm7982_vm6, %v7290_v54, %v2451_v57  ;;  %3534 = vmatpush1.bf16.msra.mxu0 %v4820_v59  ;;  %v5245_v54 = vld [vmem:[%s7766_s3 + $0x100] sm:$0xff]   ;;  %v7517_v28 = vsel %vm3606_vm13, 65537, %v7983_v42 }
 0x3e7   :  { %v4830_v2 = vcombine.low %v7332_v6, %v2452_v40  ;;  %v4831_v38 = vcombine.high %v7332_v6, %v2452_v40  ;;  %v5246_v6 = vld [vmem:[%s7766_s3 + $0x148] sm:$0xff]   ;;  %v3610_v58 = vunpack.c.l.b16 %v7517_v28 }
 0x3e9   :  { %3535 = vmatprep.subr.bf16.mxu0 %v4831_v38  ;;  %vm3613_vm15 = vcmp.ne.s32.totalorder %v3610_v58, 0  ;;  %v5233_v58 = vld [vmem:[%s7766_s3 + $0x90] sm:$0xff]  }
 0x3ea   :  { %3536 = vmatpush1.bf16.msra.mxu0 %v4830_v2  ;;  %v3616_v7 = vsel %vm3613_vm15, 1, %v7983_v42 }
 0x3eb   :  { %3537 = vmatprep.subr.bf16.mxu0 %v3337_v13  ;;  %v3622_v5 = vrot.slane %v3616_v7, %v7524_v25  ;;  %v3626_v52 = vrot.slane %v3616_v7, %v7527_v18  ;;  %v3630_v11 = vrot.slane %v3616_v7, %v7540_v3  ;;  %v3634_v23 = vrot.slane %v3616_v7, %v3633_v50  ;;  %v5236_v7 = vld [vmem:[%s7766_s3 + $0xe0] sm:$0xff]  }
 0x3ed   :  { %vm3659_vm2 = vcmp.ne.s32.totalorder %v3622_v5, 0  ;;  %vm3660_vm10 = vcmp.ne.s32.totalorder %v3626_v52, 0  ;;  %vm3661_vm14 = vcmp.ne.s32.totalorder %v3630_v11, 0  ;;  %vm3662_vm0 = vcmp.ne.s32.totalorder %v3634_v23, 0  ;;  %v5238_v5 = vld [vmem:[%s7766_s3 + $0xe8] sm:$0xff]   ;;  %v5242_v11 = vld [vmem:[%s7766_s3 + $0xf8] sm:$0xff]  }
 0x3ee   :  { %3538 = vmatpush1.bf16.msra.mxu0 %v3334_v29  ;;  %v3669_v1 = vsel %vm3659_vm2, 1, %v7983_v42  ;;  %v3670_v44 = vsel %vm3660_vm10, 1, %v7983_v42  ;;  %v3671_v17 = vsel %vm3661_vm14, 1, %v7983_v42  ;;  %v3672_v16 = vsel %vm3662_vm0, 1, %v7983_v42  ;;  %v5239_v52 = vld [vmem:[%s7766_s3 + $0xa8] sm:$0xff]   ;;  %v5243_v23 = vld [vmem:[%s7766_s3 + $0xb8] sm:$0xff]  }
 0x3ef   :  { %4990 = vmatprep.subr.bf16.mxu0 %v5244_v27  ;;  %v3682_v49 = vrot.slane %v3669_v1, %v7524_v25  ;;  %v3686_v14 = vrot.slane %v3670_v44, %v7524_v25  ;;  %v3690_v32 = vrot.slane %v3671_v17, %v7524_v25  ;;  %v3694_v53 = vrot.slane %v3672_v16, %v7524_v25  ;;  %v5247_v1 = vld [vmem:[%s7766_s3 + $0x1c0] sm:$0xff]   ;;  %v5251_v17 = vld [vmem:[%s7766_s3 + $0x1c8] sm:$0xff]  }
 0x3f0   :  { %v5249_v44 = vld [vmem:[%s7766_s3 + $0x180] sm:$0xff]   ;;  %v5253_v16 = vld [vmem:[%s7766_s3 + $0x188] sm:$0xff]  }
 0x3f1   :  { %3544 = vmatmul.mubr.bf16.vlgmr.msra.gmra.mrb[16].mxu0 %v7340_v60  ;;  %v5254_v60 = vld [vmem:[%s7766_s3 + $0x158] sm:$0xff]   ;;  %vm3719_vm12 = vcmp.eq.s32.totalorder %v3682_v49, 1  ;;  %vm3720_vm3 = vcmp.eq.s32.totalorder %v3686_v14, 1  ;;  %vm3721_vm1 = vcmp.eq.s32.totalorder %v3690_v32, 1  ;;  %vm3722_vm9 = vcmp.eq.s32.totalorder %v3694_v53, 1  ;;  %v5255_v49 = vld [vmem:[%s7766_s3 + $0x1d0] sm:$0xff]  }
 0x3f2   :  { %4991 = vmatpush3.bf16.msra.mxu0 %v5245_v54  ;;  %vm3729_vm11 = vmpackc.low %vm3720_vm3, %vm3719_vm12  ;;  %v5257_v14 = vld [vmem:[%s7766_s3 + $0x190] sm:$0xff]   ;;  %v5259_v32 = vld [vmem:[%s7766_s3 + $0x1d8] sm:$0xff]  }
 0x3f3   :  { %4992 = vmatprep.subr.bf16.mxu0 %v5246_v6  ;;  %vm3730_vm8 = vmpackc.low %vm3722_vm9, %vm3721_vm1  ;;  %v3734_v21 = vsel %vm3729_vm11, 65537, %v7983_v42  ;;  %v5261_v53 = vld [vmem:[%s7766_s3 + $0x198] sm:$0xff]  }
 0x3f4   :  { %v7564_v0 = vsel %vm3730_vm8, 65537, %v7983_v42  ;;  %v3742_v36 = vrot.slane %v3734_v21, %v7524_v25  ;;  %v3746_v55 = vrot.slane %v3734_v21, %v7540_v3  ;;  %v5263_v21 = vld [vmem:[%s7766_s3 + $0x1e0] sm:$0xff]  }
 0x3f5   :  { %v3754_v27 = vrot.slane %v7564_v0, %v7540_v3 }
 0x3f6   :  { %4993 = vmatpush3.bf16.msra.mxu0 %v5248_v34  ;;  %vm3780_vm5 = vcmp.ne.s16.totalorder %v3746_v55, 0  ;;  %vm3779_vm7 = vcmp.ne.s16.totalorder %v3742_v36, 0  ;;  %v5275_v36 = vld [vmem:[%s7766_s3 + $0x1b8] sm:$0xff]  }
 0x3f7   :  { %4994 = vmatprep.subr.bf16.mxu0 %v5250_v31  ;;  %vm3782_vm4 = vcmp.ne.s16.totalorder %v3754_v27, 0 }
 0x3fa   :  { %4995 = vmatpush3.bf16.msra.mxu0 %v5252_v35 }
 0x3fb   :  { %4996 = vmatprep.subr.bf16.mxu0 %v5254_v60  ;;  %v5229_v60 = vld [vmem:[%s7766_s3 + $0x80] sm:$0xff]  }
 0x3fe   :  { %4997 = vmatpush3.bf16.msra.mxu0 %v5256_v61 }
 0x3ff   :  { %4998 = vmatprep.subr.bf16.mxu0 %v5258_v9  ;;  %v5230_v9 = vld [vmem:[%s7766_s3 + $0xc8] sm:$0xff]  }
 0x402   :  { %4999 = vmatpush3.bf16.msra.mxu0 %v5260_v20 }
 0x403   :  { %5000 = vmatprep.subr.bf16.mxu0 %v5262_v39  ;;  %v5231_v39 = vld [vmem:[%s7766_s3 + $0x88] sm:$0xff]  }
 0x406   :  { %5001 = vmatpush3.bf16.msra.mxu0 %v5264_v15  ;;  %v5234_v15 = vld [vmem:[%s7766_s3 + $0xd8] sm:$0xff]  }
 0x407   :  { %5002 = vmatprep.subr.bf16.mxu0 %v5266_v12  ;;  %v5235_v12 = vld [vmem:[%s7766_s3 + $0x98] sm:$0xff]  }
 0x40a   :  { %5003 = vmatpush3.bf16.msra.mxu0 %v5268_v10  ;;  %v5237_v10 = vld [vmem:[%s7766_s3 + $0xa0] sm:$0xff]  }
 0x40b   :  { %5004 = vmatprep.subr.bf16.mxu0 %v5270_v30  ;;  %v5240_v30 = vld [vmem:[%s7766_s3 + $0xf0] sm:$0xff]  }
 0x40e   :  { %5005 = vmatpush3.bf16.msra.mxu0 %v5272_v33  ;;  %v5241_v33 = vld [vmem:[%s7766_s3 + $0xb0] sm:$0xff]  }
 0x40f   :  { %5034 = vmatprep.subr.bf16.mxu0 %v5276_v51  ;;  %v3750_v51 = vrot.slane %v7564_v0, %v7524_v25  ;;  %v5273_v0 = vld [vmem:[%s7766_s3 + $0x1b0] sm:$0xff]  }
 0x411   :  { %vm3781_vm6 = vcmp.ne.s16.totalorder %v3750_v51, 0 }
 0x42c   :  { %v3373_v47 = vpop.f32.mrb[8].mxu0  ;;  %v3416_v43 = vpop.f32.mrb[16].mxu1 }
 0x42d   :  { %v3554_v56 = vmul.f32 0.1, %v3373_v47  ;;  %v3375_v8 = vpop.f32.mrb[9].mxu0  ;;  %v3556_v26 = vmul.f32 0.1, %v3416_v43  ;;  %v3418_v63 = vpop.f32.mrb[17].mxu1 }
 0x42e   :  { %v3555_v46 = vmul.f32 0.1, %v3375_v8  ;;  %v3377_v4 = vpop.f32.mrb[10].mxu0  ;;  %v3557_v59 = vmul.f32 0.1, %v3418_v63  ;;  %v3420_v41 = vpop.f32.mrb[18].mxu1 }
 0x42f   :  { %v3574_v62 = vmax.f32 %v3373_v47, %v3554_v56  ;;  %v3564_v48 = vmul.f32 0.1, %v3377_v4  ;;  %v3379_v22 = vpop.f32.mrb[11].mxu0  ;;  %v3576_v40 = vmax.f32 %v3416_v43, %v3556_v26  ;;  %v3566_v45 = vmul.f32 0.1, %v3420_v41  ;;  %v3422_v2 = vpop.f32.mrb[19].mxu1 }
 0x430   :  { %v3575_v19 = vmax.f32 %v3375_v8, %v3555_v46  ;;  %v3565_v57 = vmul.f32 0.1, %v3379_v22  ;;  %v3577_v13 = vmax.f32 %v3418_v63, %v3557_v59  ;;  %v3567_v29 = vmul.f32 0.1, %v3422_v2  ;;  %v5265_v47 = vld [vmem:[%s7766_s3 + $0x1a0] sm:$0xff]   ;;  %v5267_v56 = vld [vmem:[%s7766_s3 + $0x1e8] sm:$0xff]  }
 0x431   :  { %v3584_v38 = vmax.f32 %v3377_v4, %v3564_v48  ;;  %v3586_v6 = vmax.f32 %v3420_v41, %v3566_v45  ;;  %v5269_v8 = vld [vmem:[%s7766_s3 + $0x1a8] sm:$0xff]   ;;  %v5271_v43 = vld [vmem:[%s7766_s3 + $0x1f0] sm:$0xff]   ;;  %v3611_v46 = vunpack.c.h.b16 %v7517_v28  ;;  %v5274_v4 = vld [vmem:[%s7766_s3 + $0x1f8] sm:$0xff]  }
 0x432   :  { %v3585_v54 = vmax.f32 %v3379_v22, %v3565_v57  ;;  %v3587_v31 = vmax.f32 %v3422_v2, %v3567_v29 }
 0x433   :  { %v3594_v34 = vpack.c.bf16 %v3584_v38, %v3574_v62  ;;  %v3596_v61 = vpack.c.bf16 %v3586_v6, %v3576_v40  ;;  %vm3614_vm13 = vcmp.ne.s32.totalorder %v3611_v46, 0  ;;  %v5284_v46 = vld [vmem:[%s7766_s3 + $0x260] sm:$0xff]  }
 0x434   :  { %v3595_v35 = vpack.c.bf16 %v3585_v54, %v3575_v19  ;;  %v3597_v20 = vpack.c.bf16 %v3587_v31, %v3577_v13  ;;  %v3617_v26 = vsel %vm3614_vm13, 1, %v7983_v42 }
 0x435   :  { %v3638_v63 = vrot.slane %v3617_v26, %v7524_v25  ;;  %v3642_v62 = vrot.slane %v3617_v26, %v7527_v18  ;;  %v3646_v28 = vrot.slane %v3617_v26, %v7540_v3  ;;  %v3650_v48 = vrot.slane %v3617_v26, %v3633_v50  ;;  %v5286_v26 = vld [vmem:[%s7766_s3 + $0x268] sm:$0xff]  }
 0x436   :  { %4927 = vmatprep.mubr.msk.bf16.mxu1 %vm3780_vm5, %v3595_v35 }
 0x437   :  { %4928 = vmatmul.mubr.msk.bf16.vlgmr.msra.gmra.mrb[24].mxu1 %vm3779_vm7, %v3594_v34  ;;  %vm3663_vm15 = vcmp.ne.s32.totalorder %v3638_v63, 0  ;;  %vm3664_vm2 = vcmp.ne.s32.totalorder %v3642_v62, 0  ;;  %vm3665_vm10 = vcmp.ne.s32.totalorder %v3646_v28, 0  ;;  %vm3666_vm14 = vcmp.ne.s32.totalorder %v3650_v48, 0  ;;  %v5287_v62 = vld [vmem:[%s7766_s3 + $0x228] sm:$0xff]   ;;  %v5288_v28 = vld [vmem:[%s7766_s3 + $0x270] sm:$0xff]  }
 0x438   :  { %4969 = vmatpush3.bf16.msra.mxu1 %v5229_v60  ;;  %4929 = vmatprep.mubr.msk.bf16.mxu1 %vm3782_vm4, %v3597_v20  ;;  %v3673_v22 = vsel %vm3663_vm15, 1, %v7983_v42  ;;  %v3674_v55 = vsel %vm3664_vm2, 1, %v7983_v42  ;;  %v3675_v19 = vsel %vm3665_vm10, 1, %v7983_v42  ;;  %v3676_v57 = vsel %vm3666_vm14, 1, %v7983_v42  ;;  %v5289_v48 = vld [vmem:[%s7766_s3 + $0x230] sm:$0xff]  }
 0x439   :  { %4970 = vmatprep.subr.bf16.mxu1 %v5230_v9  ;;  %v3698_v59 = vrot.slane %v3673_v22, %v7524_v25  ;;  %v3702_v41 = vrot.slane %v3674_v55, %v7524_v25  ;;  %v3706_v40 = vrot.slane %v3675_v19, %v7524_v25  ;;  %v3710_v37 = vrot.slane %v3676_v57, %v7524_v25  ;;  %v5290_v22 = vld [vmem:[%s7766_s3 + $0x278] sm:$0xff]  }
 0x43b   :  { %vm3723_vm0 = vcmp.eq.s32.totalorder %v3698_v59, 1  ;;  %vm3724_vm12 = vcmp.eq.s32.totalorder %v3702_v41, 1  ;;  %vm3725_vm1 = vcmp.eq.s32.totalorder %v3706_v40, 1  ;;  %vm3726_vm9 = vcmp.eq.s32.totalorder %v3710_v37, 1  ;;  %v5291_v59 = vld [vmem:[%s7766_s3 + $0x238] sm:$0xff]  }
 0x43c   :  { %4971 = vmatpush3.bf16.msra.mxu1 %v5231_v39  ;;  %vm3731_vm3 = vmpackc.low %vm3724_vm12, %vm3723_vm0 }
 0x43d   :  { %4972 = vmatprep.subr.bf16.mxu1 %v5232_v24  ;;  %v3736_v50 = vsel %vm3731_vm3, 65537, %v7983_v42  ;;  %vm3732_vm11 = vmpackc.low %vm3726_vm9, %vm3725_vm1  ;;  %vm4646_vm1 = vcmask 15360  }
 0x43e   :  { %v3762_v13 = vrot.slane %v3736_v50, %v7540_v3  ;;  %v3758_v54 = vrot.slane %v3736_v50, %v7524_v25  ;;  %v3737_v60 = vsel %vm3732_vm11, 65537, %v7983_v42 }
 0x440   :  { %4973 = vmatpush3.bf16.msra.mxu1 %v5233_v58  ;;  %vm7684_vm8 = vcmp.ne.s16.totalorder %v3762_v13, 0  ;;  %vm7688_vm5 = vcmp.ne.s16.totalorder %v3758_v54, 0 }
 0x441   :  { %4974 = vmatprep.subr.bf16.mxu1 %v5234_v15 }
 0x444   :  { %4975 = vmatpush3.bf16.msra.mxu1 %v5235_v12 }
 0x445   :  { %4976 = vmatprep.subr.bf16.mxu1 %v5236_v7 }
 0x448   :  { %4977 = vmatpush3.bf16.msra.mxu1 %v5237_v10 }
 0x449   :  { %4978 = vmatprep.subr.bf16.mxu1 %v5238_v5 }
 0x44c   :  { %4979 = vmatpush3.bf16.msra.mxu1 %v5239_v52 }
 0x44d   :  { %4980 = vmatprep.subr.bf16.mxu1 %v5240_v30 }
 0x450   :  { %4981 = vmatpush3.bf16.msra.mxu1 %v5241_v33 }
 0x451   :  { %4982 = vmatprep.subr.bf16.mxu1 %v5242_v11  ;;  %v3770_v11 = vrot.slane %v3737_v60, %v7540_v3 }
 0x453   :  { %vm3786_vm7 = vcmp.ne.s16.totalorder %v3770_v11, 0 }
 0x454   :  { %4983 = vmatpush3.bf16.msra.mxu1 %v5243_v23 }
 0x455   :  { %5012 = vmatprep.subr.bf16.mxu1 %v5247_v1 }
 0x457   :  { %4930 = vmatmul.mubr.msk.bf16.vlgmr.msra.gmra.mrb[28].mxu1 %vm3781_vm6, %v3596_v61 }
 0x458   :  { %5013 = vmatpush3.bf16.msra.mxu1 %v5249_v44  ;;  %v3766_v44 = vrot.slane %v3737_v60, %v7524_v25 }
 0x459   :  { %5014 = vmatprep.subr.bf16.mxu1 %v5251_v17  ;;  %v5277_v17 = vld [vmem:[%s7766_s3 + $0x200] sm:$0xff]  }
 0x45a   :  { %vm3785_vm4 = vcmp.ne.s16.totalorder %v3766_v44, 0 }
 0x45c   :  { %5015 = vmatpush3.bf16.msra.mxu1 %v5253_v16 }
 0x45d   :  { %5016 = vmatprep.subr.bf16.mxu1 %v5255_v49  ;;  %v5278_v49 = vld [vmem:[%s7766_s3 + $0x248] sm:$0xff]  }
 0x460   :  { %5017 = vmatpush3.bf16.msra.mxu1 %v5257_v14 }
 0x461   :  { %5018 = vmatprep.subr.bf16.mxu1 %v5259_v32 }
 0x464   :  { %5019 = vmatpush3.bf16.msra.mxu1 %v5261_v53 }
 0x465   :  { %5020 = vmatprep.subr.bf16.mxu1 %v5263_v21  ;;  %v5279_v21 = vld [vmem:[%s7766_s3 + $0x208] sm:$0xff]  }
 0x468   :  { %5021 = vmatpush3.bf16.msra.mxu1 %v5265_v47  ;;  %v5280_v47 = vld [vmem:[%s7766_s3 + $0x250] sm:$0xff]  }
 0x469   :  { %5022 = vmatprep.subr.bf16.mxu1 %v5267_v56  ;;  %v5281_v56 = vld [vmem:[%s7766_s3 + $0x210] sm:$0xff]  }
 0x46c   :  { %5023 = vmatpush3.bf16.msra.mxu1 %v5269_v8  ;;  %v5282_v8 = vld [vmem:[%s7766_s3 + $0x258] sm:$0xff]  }
 0x46d   :  { %5024 = vmatprep.subr.bf16.mxu1 %v5271_v43  ;;  %v3605_v43 = vld [vmem:[%s7767_s4 + $0x8] sm:$0x3] }
 0x46e   :  { %vm3607_vm6 = vcmp.ne.bf16.partialorder %v3605_v43, 0 }
 0x470   :  { %5025 = vmatpush3.bf16.msra.mxu1 %v5273_v0  ;;  %v5283_v0 = vld [vmem:[%s7766_s3 + $0x218] sm:$0xff]  }
 0x471   :  { %5026 = vmatprep.subr.bf16.mxu1 %v5274_v4  ;;  %v3609_v4 = vsel %vm3607_vm6, 65537, %v7983_v42 }
 0x472   :  { %v3612_v63 = vunpack.c.l.b16 %v3609_v4 }
 0x474   :  { %5027 = vmatpush3.bf16.msra.mxu1 %v5275_v36  ;;  %v5285_v36 = vld [vmem:[%s7766_s3 + $0x220] sm:$0xff]   ;;  %vm3615_vm13 = vcmp.ne.s32.totalorder %v3612_v63, 0 }
 0x475   :  { %v3618_v55 = vsel %vm3615_vm13, 1, %v7983_v42 }
 0x476   :  { %v3654_v41 = vrot.slane %v3618_v55, %v7524_v25  ;;  %v3658_v19 = vrot.slane %v3618_v55, %v7527_v18 }
 0x478   :  { %vm3667_vm15 = vcmp.ne.s32.totalorder %v3654_v41, 0  ;;  %vm3668_vm2 = vcmp.ne.s32.totalorder %v3658_v19, 0 }
 0x479   :  { %v3677_v57 = vsel %vm3667_vm15, 1, %v7983_v42  ;;  %v3678_v40 = vsel %vm3668_vm2, 1, %v7983_v42 }
 0x47a   :  { %v3714_v37 = vrot.slane %v3677_v57, %v7524_v25  ;;  %v3718_v50 = vrot.slane %v3678_v40, %v7524_v25 }
 0x47c   :  { %vm3727_vm10 = vcmp.eq.s32.totalorder %v3714_v37, 1  ;;  %vm3728_vm14 = vcmp.eq.s32.totalorder %v3718_v50, 1 }
 0x47d   :  { %vm3733_vm0 = vmpackc.low %vm3728_vm14, %vm3727_vm10 }
 0x48c   :  { %v3459_v45 = vpop.f32.mrb[12].mxu0 }
 0x48d   :  { %v3558_v2 = vmul.f32 0.1, %v3459_v45  ;;  %v3461_v38 = vpop.f32.mrb[13].mxu0 }
 0x48e   :  { %v3559_v29 = vmul.f32 0.1, %v3461_v38  ;;  %v3463_v27 = vpop.f32.mrb[14].mxu0 }
 0x48f   :  { %v3568_v6 = vmul.f32 0.1, %v3463_v27  ;;  %v3465_v34 = vpop.f32.mrb[15].mxu0  ;;  %v3578_v61 = vmax.f32 %v3459_v45, %v3558_v2  ;;  %v3738_v2 = vsel %vm3733_vm0, 65537, %v7983_v42 }
 0x490   :  { %v3569_v31 = vmul.f32 0.1, %v3465_v34  ;;  %v3502_v35 = vpop.f32.mrb[20].mxu1  ;;  %v3579_v58 = vmax.f32 %v3461_v38, %v3559_v29 }
 0x491   :  { %v3588_v9 = vmax.f32 %v3463_v27, %v3568_v6  ;;  %v3560_v20 = vmul.f32 0.1, %v3502_v35  ;;  %v3504_v39 = vpop.f32.mrb[21].mxu1  ;;  %v3778_v6 = vrot.slane %v3738_v2, %v7540_v3 }
 0x492   :  { %v3589_v15 = vmax.f32 %v3465_v34, %v3569_v31  ;;  %v3561_v12 = vmul.f32 0.1, %v3504_v39  ;;  %v3506_v7 = vpop.f32.mrb[22].mxu1  ;;  %v3774_v31 = vrot.slane %v3738_v2, %v7524_v25 }
 0x493   :  { %v3598_v5 = vpack.c.bf16 %v3588_v9, %v3578_v61  ;;  %v3580_v52 = vmax.f32 %v3502_v35, %v3560_v20  ;;  %v3570_v30 = vmul.f32 0.1, %v3506_v7  ;;  %v3508_v33 = vpop.f32.mrb[23].mxu1  ;;  %vm3788_vm12 = vcmp.ne.s16.totalorder %v3778_v6, 0 }
 0x494   :  { %v3599_v23 = vpack.c.bf16 %v3589_v15, %v3579_v58  ;;  %v3581_v51 = vmax.f32 %v3504_v39, %v3561_v12  ;;  %v3571_v1 = vmul.f32 0.1, %v3508_v33  ;;  %vm3787_vm3 = vcmp.ne.s16.totalorder %v3774_v31, 0 }
 0x495   :  { %v3590_v16 = vmax.f32 %v3506_v7, %v3570_v30 }
 0x496   :  { %v3591_v14 = vmax.f32 %v3508_v33, %v3571_v1  ;;  %4931 = vmatprep.mubr.msk.bf16.mxu0 %vm7684_vm8, %v3599_v23 }
 0x497   :  { %v3600_v32 = vpack.c.bf16 %v3590_v16, %v3580_v52  ;;  %4932 = vmatmul.mubr.msk.bf16.vlgmr.msra.gmra.mrb[20].mxu0 %vm7688_vm5, %v3598_v5 }
 0x498   :  { %v3601_v53 = vpack.c.bf16 %v3591_v14, %v3581_v51  ;;  %5035 = vmatpush3.bf16.msra.mxu0 %v5277_v17 }
 0x499   :  { %5036 = vmatprep.subr.bf16.mxu0 %v5278_v49 }
 0x49a   :  { %4933 = vmatprep.mubr.msk.bf16.mxu1 %vm3786_vm7, %v3601_v53 }
 0x49b   :  { %4934 = vmatmul.mubr.msk.bf16.vlgmr.msra.gmra.mrb[32].mxu1 %vm3785_vm4, %v3600_v32 }
 0x49c   :  { %5037 = vmatpush3.bf16.msra.mxu0 %v5279_v21 }
 0x49d   :  { %5038 = vmatprep.subr.bf16.mxu0 %v5280_v47 }
 0x4a0   :  { %5039 = vmatpush3.bf16.msra.mxu0 %v5281_v56 }
 0x4a1   :  { %5040 = vmatprep.subr.bf16.mxu0 %v5282_v8 }
 0x4a4   :  { %5041 = vmatpush3.bf16.msra.mxu0 %v5283_v0 }
 0x4a5   :  { %5042 = vmatprep.subr.bf16.mxu0 %v5284_v46 }
 0x4a8   :  { %5043 = vmatpush3.bf16.msra.mxu0 %v5285_v36 }
 0x4a9   :  { %5044 = vmatprep.subr.bf16.mxu0 %v5286_v26 }
 0x4ac   :  { %5045 = vmatpush3.bf16.msra.mxu0 %v5287_v62 }
 0x4ad   :  { %5046 = vmatprep.subr.bf16.mxu0 %v5288_v28 }
 0x4b0   :  { %5047 = vmatpush3.bf16.msra.mxu0 %v5289_v48 }
 0x4b1   :  { %5048 = vmatprep.subr.bf16.mxu0 %v5290_v22 }
 0x4b4   :  { %5049 = vmatpush3.bf16.msra.mxu0 %v5291_v59 }
 0x4c4   :  { %v3545_v45 = vpop.f32.mrb[16].mxu0 }
 0x4c5   :  { %v3562_v38 = vmul.f32 0.1, %v3545_v45  ;;  %v3547_v18 = vpop.f32.mrb[17].mxu0 }
 0x4c6   :  { %v3563_v13 = vmul.f32 0.1, %v3547_v18  ;;  %v3549_v29 = vpop.f32.mrb[18].mxu0 }
 0x4c7   :  { %v3572_v27 = vmul.f32 0.1, %v3549_v29  ;;  %v3551_v54 = vpop.f32.mrb[19].mxu0  ;;  %v3582_v35 = vmax.f32 %v3545_v45, %v3562_v38 }
 0x4c8   :  { %v3573_v34 = vmul.f32 0.1, %v3551_v54  ;;  %v3583_v61 = vmax.f32 %v3547_v18, %v3563_v13 }
 0x4c9   :  { %v3592_v60 = vmax.f32 %v3549_v29, %v3572_v27 }
 0x4ca   :  { %v3593_v9 = vmax.f32 %v3551_v54, %v3573_v34 }
 0x4cb   :  { %v3602_v20 = vpack.c.bf16 %v3592_v60, %v3582_v35 }
 0x4cc   :  { %v3603_v39 = vpack.c.bf16 %v3593_v9, %v3583_v61 }
 0x4ce   :  { %4935 = vmatprep.mubr.msk.bf16.mxu0 %vm3788_vm12, %v3603_v39 }
 0x4cf   :  { %4936 = vmatmul.mubr.msk.bf16.vlgmr.msra.gmra.mrb[24].mxu0 %vm3787_vm3, %v3602_v20 }
 0x50a   :  { %v4962_v42 = vpop.f32.mrb[24].mxu1 }
 0x50b   :  { %v4963_v24 = vpop.f32.mrb[25].mxu1 }
 0x50c   :  { %v4964_v58 = vadd.f32 %v4963_v24, %v4962_v42  ;;  %v4965_v15 = vpop.f32.mrb[26].mxu1 }
 0x50d   :  { %v4966_v12 = vpop.f32.mrb[27].mxu1 }
 0x50e   :  { %v4967_v7 = vadd.f32 %v4966_v12, %v4965_v15 }
 0x52a   :  { %v4984_v3 = vpop.f32.mrb[28].mxu1 }
 0x52b   :  { %v4985_v10 = vpop.f32.mrb[29].mxu1 }
 0x52c   :  { %v4986_v5 = vadd.f32 %v4985_v10, %v4984_v3  ;;  %v4987_v25 = vpop.f32.mrb[30].mxu1 }
 0x52d   :  { %v4988_v52 = vpop.f32.mrb[31].mxu1 }
 0x52e   :  { %v4515_v30 = vadd.f32 %v4986_v5, %v4964_v58  ;;  %v4989_v33 = vadd.f32 %v4988_v52, %v4987_v25 }
 0x530   :  { %v4518_v11 = vadd.f32 %v4989_v33, %v4967_v7 }
 0x56a   :  { %v5006_v23 = vpop.f32.mrb[20].mxu0 }
 0x56b   :  { %v5007_v51 = vpop.f32.mrb[21].mxu0 }
 0x56c   :  { %v5008_v1 = vadd.f32 %v5007_v51, %v5006_v23  ;;  %v5009_v44 = vpop.f32.mrb[22].mxu0 }
 0x56d   :  { %v5010_v17 = vpop.f32.mrb[23].mxu0 }
 0x56e   :  { %v4556_v16 = vadd.f32 %v5008_v1, %v4515_v30  ;;  %v5011_v49 = vadd.f32 %v5010_v17, %v5009_v44  ;;  %v5028_v14 = vpop.f32.mrb[32].mxu1 }
 0x56f   :  { %v5029_v32 = vpop.f32.mrb[33].mxu1 }
 0x570   :  { %v4559_v53 = vadd.f32 %v5011_v49, %v4518_v11  ;;  %v5030_v21 = vadd.f32 %v5029_v32, %v5028_v14  ;;  %v5031_v47 = vpop.f32.mrb[34].mxu1 }
 0x571   :  { %v5032_v56 = vpop.f32.mrb[35].mxu1 }
 0x572   :  { %v4597_v8 = vadd.f32 %v5030_v21, %v4556_v16  ;;  %v5033_v43 = vadd.f32 %v5032_v56, %v5031_v47 }
 0x574   :  { %v4600_v0 = vadd.f32 %v5033_v43, %v4559_v53 }
 0x5a2   :  { %v5050_v46 = vpop.f32.mrb[24].mxu0 }
 0x5a3   :  { %v5051_v4 = vpop.f32.mrb[25].mxu0 }
 0x5a4   :  { %v5052_v36 = vadd.f32 %v5051_v4, %v5050_v46  ;;  %v5053_v26 = vpop.f32.mrb[26].mxu0 }
 0x5a5   :  { %v5054_v63 = vpop.f32.mrb[27].mxu0 }
 0x5a6   :  { %v4638_v62 = vadd.f32 %v5052_v36, %v4597_v8  ;;  %v5055_v28 = vadd.f32 %v5054_v63, %v5053_v26 }
 0x5a8   :  { %v4644_v48 = vmul.f32 0.007142857, %v4638_v62  ;;  %v4641_v22 = vadd.f32 %v5055_v28, %v4600_v0 }
 0x5aa   :  { %4647 = vst.msk [vmem:[%s7768_s5] sm:$0xff] %vm4646_vm1, %v4644_v48  ;;  %v4645_v55 = vmul.f32 0.007142857, %v4641_v22 }
 0x5ac   :  { %4648 = vst.msk [vmem:[%s7768_s5 + $0x8] sm:$0xff] %vm4646_vm1, %v4645_v55 }

</bundles_post_ra>
